<compile_context>
chip_gen: v7x
topology: tpu7x:2x2x1
jax: 0.10.0
libtpu: 0.0.40
codegen_flags: <defaults>
</compile_context>

<pallas_src>
import functools

import jax
import jax.numpy as jnp
from jax import lax
from jax.experimental import pallas as pl
from jax.experimental.pallas import tpu as pltpu

LANE = 128          # TPU lane width; all channel dims are padded to this.
_EPS = 1e-5


# ---------------------------------------------------------------------------
# Host-side parameter folding (BatchNorm inference semantics folded into conv).
# ---------------------------------------------------------------------------
def _fold_conv_bn(weight, bn, *, cin_p, cout_p, eps=_EPS):
    """(Cout, Cin, K, K) conv + BN -> (K*K*cin_p, cout_p) bf16 weight + f32 bias."""
    cout, cin_r, K, K2 = weight.shape
    assert K == K2 and cin_r <= cin_p and cout <= cout_p
    gamma, beta, mean, var = bn
    scale = gamma / jnp.sqrt(var + eps)
    bias = beta - mean * scale
    w = weight.astype(jnp.float32) * scale[:, None, None, None]
    w = jnp.transpose(w, (2, 3, 1, 0))                              # (K, K, Cin, Cout)
    w = jnp.pad(w, ((0, 0), (0, 0), (0, cin_p - cin_r), (0, cout_p - cout)))
    w = w.reshape(K * K * cin_p, cout_p).astype(jnp.bfloat16)
    b = jnp.pad(bias, (0, cout_p - cout)).reshape(1, cout_p).astype(jnp.float32)
    return w, b


def _gate_matrix(weight, bn, *, swap_spatial, cp, eps=_EPS):
    """SpatialGate 7x7 conv (2->1 ch) + BN as a banded matmul.

    The gate image is laid out (rows, channels) with channels on the lane axis.
    The channel-axis part of the 7x7 conv becomes a (14*cp, cp) banded matrix so
    the whole gate conv is one MXU GEMM over row-shifted pooled maps:
        contraction index = k_row*(2*cp) + {max=0, mean=1}*cp + c_src
    Returns (M bf16 (14*cp, cp), bias f32 (1, cp)).
    """
    gamma, beta, mean, var = bn                                     # shape (1,)
    scale = gamma / jnp.sqrt(var + eps)
    bias = (beta - mean * scale)[0]
    wf = weight[0].astype(jnp.float32) * scale[0]                   # (2, 7, 7)
    if swap_spatial:                                                # -> [i, k_row, k_chan]
        wf = jnp.transpose(wf, (0, 2, 1))
    c_src = jnp.arange(cp)[:, None]
    c_dst = jnp.arange(cp)[None, :]
    kc = c_src - c_dst + 3
    valid = (kc >= 0) & (kc < 7)
    band = wf[:, :, jnp.clip(kc, 0, 6)]                             # (2, 7, cp, cp)
    band = jnp.where(valid[None, None], band, 0.0)
    M = jnp.transpose(band, (1, 0, 2, 3)).reshape(14 * cp, cp).astype(jnp.bfloat16)
    b = jnp.full((1, cp), bias, jnp.float32)
    return M, b


# ---------------------------------------------------------------------------
# Kernel 1: conv1+bn1+relu -> conv2(3x3,stride,pad=1)+bn2+relu -> conv3+bn3,
#           plus the 1x1 shortcut conv+bn.  One batch element per grid step.
# ---------------------------------------------------------------------------
def _convstack_kernel(x_ref, w1_ref, b1_ref, w2_ref, b2_ref, w3_ref, b3_ref,
                      *rest, stride, has_sc):
    if has_sc:
        wsc_ref, bsc_ref, t_ref, sc_ref, pad_ref = rest
    else:
        t_ref, pad_ref = rest

    _, H, W, Cp = x_ref.shape
    H2 = (H - 1) // stride + 1
    W2 = (W - 1) // stride + 1

    x = x_ref[0]                                                    # (H, W, Cp) bf16

    # conv1 (1x1) + bn1 + relu : one MXU GEMM.
    h1 = jnp.dot(x.reshape(H * W, Cp), w1_ref[...],
                 preferred_element_type=jnp.float32) + b1_ref[0]
    h1 = jnp.maximum(h1, 0.0).astype(jnp.bfloat16).reshape(H, W, Cp)

    # conv2 (3x3, stride, padding=1) + bn2 + relu : in-kernel zero halo in VMEM,
    # then the 9 taps concatenated along the contraction -> one MXU GEMM.
    pad_ref[...] = jnp.zeros_like(pad_ref)
    pad_ref[1:1 + H, 1:1 + W, :] = h1
    xp = pad_ref[...]
    hs = stride * (H2 - 1) + 1
    ws = stride * (W2 - 1) + 1
    patches = []
    for kh in range(3):
        for kw in range(3):
            p = xp[kh:kh + hs:stride, kw:kw + ws:stride, :]         # (H2, W2, Cp)
            patches.append(p.reshape(H2 * W2, Cp))
    pat = jnp.concatenate(patches, axis=-1)                         # (H2*W2, 9*Cp)
    h2 = jnp.dot(pat, w2_ref[...], preferred_element_type=jnp.float32) + b2_ref[0]
    h2 = jnp.maximum(h2, 0.0).astype(jnp.bfloat16)

    # conv3 (1x1) + bn3 (no relu).  Padded output lanes are exactly zero (padded
    # weights/bias are zero), which kernel 2 relies on.
    t = jnp.dot(h2, w3_ref[...], preferred_element_type=jnp.float32) + b3_ref[0]
    t_ref[0] = t.reshape(H2, W2, Cp).astype(t_ref.dtype)

    if has_sc:
        xs = x[0:hs:stride, 0:ws:stride, :].reshape(H2 * W2, Cp)
        sc = jnp.dot(xs, wsc_ref[...], preferred_element_type=jnp.float32) + bsc_ref[0]
        sc_ref[0] = sc.reshape(H2, W2, Cp).astype(sc_ref.dtype)


# ---------------------------------------------------------------------------
# Kernel 2: TripletAttention (no_spatial path) + residual add + final ReLU.
# ---------------------------------------------------------------------------
def _attention_kernel(t_ref, sc_ref, mh_ref, bh_ref, mw_ref, bw_ref, o_ref):
    _, H2, W2, Cp = t_ref.shape
    t = t_ref[0].astype(jnp.float32)                                # (H2, W2, Cp)

    # Pooled maps.  Padded lanes (>= C3) of t are exactly zero, which doubles as
    # the channel-axis zero padding of the 7x7 gate convs.
    ph_max = jnp.max(t, axis=0)                                     # (W2, Cp) gateH input
    ph_mean = jnp.mean(t, axis=0)
    pw_max = jnp.max(t, axis=1)                                     # (H2, Cp) gateW input
    pw_mean = jnp.mean(t, axis=1)

    def gate(pmax, pmean, m_ref, b_ref, R):
        z = jnp.zeros((3, Cp), jnp.float32)
        pbx = jnp.concatenate([z, pmax, z], axis=0)                 # (R + 6, Cp)
        pbm = jnp.concatenate([z, pmean, z], axis=0)
        cols = []
        for kr in range(7):                                         # row-axis taps
            cols.append(pbx[kr:kr + R, :])
            cols.append(pbm[kr:kr + R, :])
        X = jnp.concatenate(cols, axis=-1).astype(jnp.bfloat16)     # (R, 14*Cp)
        g = jnp.dot(X, m_ref[...], preferred_element_type=jnp.float32) + b_ref[0]
        return jax.nn.sigmoid(g)                                    # (R, Cp)

    s_h = gate(ph_max, ph_mean, mh_ref, bh_ref, W2)                 # gate[w, c]
    s_w = gate(pw_max, pw_mean, mw_ref, bw_ref, H2)                 # gate[h, c]
    scale = (s_h[None, :, :] + s_w[:, None, :]) * 0.5
    sc = sc_ref[0].astype(jnp.float32)
    o_ref[0] = jnp.maximum(t * scale + sc, 0.0).astype(o_ref.dtype)


# ---------------------------------------------------------------------------
# Full Bottleneck forward.
# ---------------------------------------------------------------------------
def bottleneck_forward(x_nchw, P, *, inplanes, planes, stride=1):
    N, Cin, H, W = x_nchw.shape
    assert Cin == inplanes
    C3 = planes * 4
    Cp = LANE
    assert max(inplanes, planes, C3) <= Cp, "single 128-lane channel tile assumed"
    # TODO(synk): for channel counts > 128, add channel-tile grid axes and set
    # vmem_limit_bytes explicitly (v7x has 64 MiB VMEM per TensorCore).

    H2 = (H - 1) // stride + 1
    W2 = (W - 1) // stride + 1
    has_sc = (stride != 1) or (inplanes != C3)

    # Single NCHW -> NHWC transpose at the module boundary; channels padded once
    # to the lane width; bf16 activations for the MXU.
    x = jnp.transpose(x_nchw, (0, 2, 3, 1))
    x = jnp.pad(x, ((0, 0), (0, 0), (0, 0), (0, Cp - Cin))).astype(jnp.bfloat16)

    w1, b1 = _fold_conv_bn(P["conv1_w"], P["bn1"], cin_p=Cp, cout_p=Cp)
    w2, b2 = _fold_conv_bn(P["conv2_w"], P["bn2"], cin_p=Cp, cout_p=Cp)
    w3, b3 = _fold_conv_bn(P["conv3_w"], P["bn3"], cin_p=Cp, cout_p=Cp)

    conv_inputs = [x, w1, b1, w2, b2, w3, b3]
    in_specs = [
        pl.BlockSpec((1, H, W, Cp), lambda n: (n, 0, 0, 0)),
        pl.BlockSpec((Cp, Cp), lambda n: (0, 0)),
        pl.BlockSpec((1, Cp), lambda n: (0, 0)),
        pl.BlockSpec((9 * Cp, Cp), lambda n: (0, 0)),
        pl.BlockSpec((1, Cp), lambda n: (0, 0)),
        pl.BlockSpec((Cp, Cp), lambda n: (0, 0)),
        pl.BlockSpec((1, Cp), lambda n: (0, 0)),
    ]
    out_shapes = [jax.ShapeDtypeStruct((N, H2, W2, Cp), jnp.bfloat16)]
    out_specs = [pl.BlockSpec((1, H2, W2, Cp), lambda n: (n, 0, 0, 0))]
    if has_sc:
        wsc, bsc = _fold_conv_bn(P["sc_w"], P["bn_sc"], cin_p=Cp, cout_p=Cp)
        conv_inputs += [wsc, bsc]
        in_specs += [pl.BlockSpec((Cp, Cp), lambda n: (0, 0)),
                     pl.BlockSpec((1, Cp), lambda n: (0, 0))]
        out_shapes.append(jax.ShapeDtypeStruct((N, H2, W2, Cp), jnp.bfloat16))
        out_specs.append(pl.BlockSpec((1, H2, W2, Cp), lambda n: (n, 0, 0, 0)))

    conv_kernel = functools.partial(_convstack_kernel, stride=stride, has_sc=has_sc)
    conv_out = pl.pallas_call(
        conv_kernel,
        out_shape=tuple(out_shapes),
        grid_spec=pltpu.PrefetchScalarGridSpec(
            num_scalar_prefetch=0,
            grid=(N,),
            in_specs=in_specs,
            out_specs=tuple(out_specs),
            scratch_shapes=[pltpu.VMEM((H + 2, W + 2, Cp), jnp.bfloat16)],
        ),
        compiler_params=pltpu.CompilerParams(dimension_semantics=("parallel",)),
    )(*conv_inputs)

    if has_sc:
        t, sc = conv_out
    else:
        t = conv_out[0]
        sc = x                      # identity shortcut: stride==1 and Cin==C3

    # TripletAttention(inplanes): the constructor's first argument is `no_spatial`,
    # so for any nonzero inplanes the spatial-gate branch is statically disabled.
    no_spatial = bool(inplanes)
    assert no_spatial, "Bottleneck always builds TripletAttention(no_spatial=inplanes>0)"
    # TODO(synk): the spatial-gate branch (only reachable if inplanes==0, which a
    # Conv2d cannot have) is not implemented in the fused attention kernel.

    MH, bH = _gate_matrix(P["gateH_w"], P["bnH"], swap_spatial=True, cp=Cp)
    MW, bW = _gate_matrix(P["gateW_w"], P["bnW"], swap_spatial=False, cp=Cp)

    y = pl.pallas_call(
        _attention_kernel,
        out_shape=jax.ShapeDtypeStruct((N, H2, W2, Cp), jnp.float32),
        grid_spec=pltpu.PrefetchScalarGridSpec(
            num_scalar_prefetch=0,
            grid=(N,),
            in_specs=[
                pl.BlockSpec((1, H2, W2, Cp), lambda n: (n, 0, 0, 0)),
                pl.BlockSpec((1, H2, W2, Cp), lambda n: (n, 0, 0, 0)),
                pl.BlockSpec((14 * Cp, Cp), lambda n: (0, 0)),
                pl.BlockSpec((1, Cp), lambda n: (0, 0)),
                pl.BlockSpec((14 * Cp, Cp), lambda n: (0, 0)),
                pl.BlockSpec((1, Cp), lambda n: (0, 0)),
            ],
            out_specs=pl.BlockSpec((1, H2, W2, Cp), lambda n: (n, 0, 0, 0)),
        ),
        compiler_params=pltpu.CompilerParams(dimension_semantics=("parallel",)),
    )(t, sc, MH, bH, MW, bW)

    out = y[..., :C3]
    return jnp.transpose(out, (0, 3, 1, 2))                         # back to NCHW once


# ---------------------------------------------------------------------------
# Pure-JAX reference (mirrors the PyTorch forward literally, eval-mode BN).
# ---------------------------------------------------------------------------
def _ref_conv_bn(x, w, bn, *, stride, padding, relu):
    y = lax.conv_general_dilated(
        x.astype(jnp.float32), w.astype(jnp.float32),
        window_strides=(stride, stride),
        padding=((padding, padding), (padding, padding)),
        dimension_numbers=("NCHW", "OIHW", "NCHW"))
    g, b, m, v = bn
    scale = g / jnp.sqrt(v + _EPS)
    y = y * scale[None, :, None, None] + (b - m * scale)[None, :, None, None]
    return jnp.maximum(y, 0.0) if relu else y


def _ref_spatial_gate(x, w, bn):
    mx = jnp.max(x, axis=1, keepdims=True)
    mn = jnp.mean(x, axis=1, keepdims=True)
    xc = jnp.concatenate([mx, mn], axis=1)
    g = _ref_conv_bn(xc, w, bn, stride=1, padding=3, relu=False)
    return x * jax.nn.sigmoid(g)


def _ref_bottleneck(x, P, *, inplanes, planes, stride):
    out = _ref_conv_bn(x, P["conv1_w"], P["bn1"], stride=1, padding=0, relu=True)
    out = _ref_conv_bn(out, P["conv2_w"], P["bn2"], stride=stride, padding=1, relu=True)
    out = _ref_conv_bn(out, P["conv3_w"], P["bn3"], stride=1, padding=0, relu=False)
    no_spatial = bool(inplanes)   # TripletAttention(inplanes) -> no_spatial=inplanes
    xp1 = jnp.transpose(out, (0, 2, 1, 3))
    xo11 = jnp.transpose(_ref_spatial_gate(xp1, P["gateH_w"], P["bnH"]), (0, 2, 1, 3))
    xp2 = jnp.transpose(out, (0, 3, 2, 1))
    xo21 = jnp.transpose(_ref_spatial_gate(xp2, P["gateW_w"], P["bnW"]), (0, 3, 2, 1))
    if not no_spatial:
        xo = _ref_spatial_gate(out, P["gateS_w"], P["bnS"])
        out = (xo + xo11 + xo21) / 3.0
    else:
        out = (xo11 + xo21) / 2.0
    if stride != 1 or inplanes != planes * 4:
        sc = _ref_conv_bn(x, P["sc_w"], P["bn_sc"], stride=stride, padding=0, relu=False)
    else:
        sc = x
    return jnp.maximum(out + sc, 0.0)


if __name__ == "__main__":
    # Bottleneck(inplanes=4, planes=4, stride=1) on a (2, 4, 16, 16) input.
    N, inplanes, planes, H, W, stride = 2, 4, 4, 16, 16, 1
    key = jax.random.PRNGKey(0)
    keys = jax.random.split(key, 16)

    def conv_w(k, cout, cin, ksz):
        fan_in = cin * ksz * ksz
        return jax.random.uniform(k, (cout, cin, ksz, ksz), jnp.float32,
                                  -1.0, 1.0) / jnp.sqrt(fan_in)

    def bn_p(k, c):
        k1, k2, k3, k4 = jax.random.split(k, 4)
        return (1.0 + 0.1 * jax.random.normal(k1, (c,), jnp.float32),
                0.1 * jax.random.normal(k2, (c,), jnp.float32),
                0.1 * jax.random.normal(k3, (c,), jnp.float32),
                jnp.abs(1.0 + 0.1 * jax.random.normal(k4, (c,), jnp.float32)))

    P = {
        "conv1_w": conv_w(keys[0], planes, inplanes, 1), "bn1": bn_p(keys[1], planes),
        "conv2_w": conv_w(keys[2], planes, planes, 3),   "bn2": bn_p(keys[3], planes),
        "conv3_w": conv_w(keys[4], planes * 4, planes, 1), "bn3": bn_p(keys[5], planes * 4),
        "gateH_w": conv_w(keys[6], 1, 2, 7), "bnH": bn_p(keys[7], 1),
        "gateW_w": conv_w(keys[8], 1, 2, 7), "bnW": bn_p(keys[9], 1),
        "sc_w": conv_w(keys[10], planes * 4, inplanes, 1), "bn_sc": bn_p(keys[11], planes * 4),
    }
    x = jax.random.normal(keys[12], (N, inplanes, H, W), jnp.float32)

    out = bottleneck_forward(x, P, inplanes=inplanes, planes=planes, stride=stride)
    out = jax.block_until_ready(out)

    ref = _ref_bottleneck(x, P, inplanes=inplanes, planes=planes, stride=stride)
    assert out.shape == (N, planes * 4, H, W), out.shape
    # bf16 MXU operands -> allow a few % numerical slack vs the fp32 reference.
    assert jnp.allclose(out, ref, atol=5e-2, rtol=5e-2), "mismatch vs reference"

    print("KERNEL_OK")
</pallas_src>

<mosaic_0001>
module attributes {stable_mosaic.version = 11 : i64} {
  func.func @_convstack_kernel(%arg0: i32, %arg1: memref<1x16x16x128xbf16, #tpu.memory_space<vmem>>, %arg2: memref<128x128xbf16, #tpu.memory_space<vmem>>, %arg3: memref<1x128xf32, #tpu.memory_space<vmem>>, %arg4: memref<1152x128xbf16, #tpu.memory_space<vmem>>, %arg5: memref<1x128xf32, #tpu.memory_space<vmem>>, %arg6: memref<128x128xbf16, #tpu.memory_space<vmem>>, %arg7: memref<1x128xf32, #tpu.memory_space<vmem>>, %arg8: memref<128x128xbf16, #tpu.memory_space<vmem>>, %arg9: memref<1x128xf32, #tpu.memory_space<vmem>>, %arg10: memref<1x16x16x128xbf16, #tpu.memory_space<vmem>>, %arg11: memref<1x16x16x128xbf16, #tpu.memory_space<vmem>>, %arg12: memref<18x18x128xbf16, #tpu.memory_space<vmem>>) attributes {dimension_semantics = [#tpu.dimension_semantics<parallel>], iteration_bounds = array<i64: 2>, scalar_prefetch = 0 : i64, scratch_operands = 1 : i64, tpu.core_type = #tpu.core_type<tc>, window_params = [{transform_indices = @transform_0, window_bounds = array<i64: 1, 16, 16, 128>}, {pipeline_mode = #tpu.pipeline_mode<synchronous>, transform_indices = @transform_1, window_bounds = array<i64: 128, 128>}, {pipeline_mode = #tpu.pipeline_mode<synchronous>, transform_indices = @transform_2, window_bounds = array<i64: 1, 128>}, {pipeline_mode = #tpu.pipeline_mode<synchronous>, transform_indices = @transform_3, window_bounds = array<i64: 1152, 128>}, {pipeline_mode = #tpu.pipeline_mode<synchronous>, transform_indices = @transform_4, window_bounds = array<i64: 1, 128>}, {pipeline_mode = #tpu.pipeline_mode<synchronous>, transform_indices = @transform_5, window_bounds = array<i64: 128, 128>}, {pipeline_mode = #tpu.pipeline_mode<synchronous>, transform_indices = @transform_6, window_bounds = array<i64: 1, 128>}, {pipeline_mode = #tpu.pipeline_mode<synchronous>, transform_indices = @transform_7, window_bounds = array<i64: 128, 128>}, {pipeline_mode = #tpu.pipeline_mode<synchronous>, transform_indices = @transform_8, window_bounds = array<i64: 1, 128>}, {transform_indices = @transform_9, window_bounds = array<i64: 1, 16, 16, 128>}, {transform_indices = @transform_10, window_bounds = array<i64: 1, 16, 16, 128>}]} {
    %c0 = arith.constant 0 : index
    %c0_0 = arith.constant 0 : index
    %c0_1 = arith.constant 0 : index
    %c0_2 = arith.constant 0 : index
    %0 = vector.load %arg1[%c0, %c0_0, %c0_1, %c0_2] : memref<1x16x16x128xbf16, #tpu.memory_space<vmem>>, vector<1x16x16x128xbf16>
    %1 = vector.shape_cast %0 : vector<1x16x16x128xbf16> to vector<16x16x128xbf16>
    %2 = vector.shape_cast %1 : vector<16x16x128xbf16> to vector<256x128xbf16>
    %c0_3 = arith.constant 0 : index
    %c0_4 = arith.constant 0 : index
    %3 = vector.load %arg2[%c0_3, %c0_4] : memref<128x128xbf16, #tpu.memory_space<vmem>>, vector<128x128xbf16>
    %cst = arith.constant dense<0.000000e+00> : vector<256x128xf32>
    %4 = tpu.matmul %2, %3, %cst {dimension_numbers = #tpu.dot_dimension_numbers<[1], [0], [0], [1], [0, 0, 1, 1], [], []>} : vector<256x128xbf16>, vector<128x128xbf16>, vector<256x128xf32> -> vector<256x128xf32>
    %c0_5 = arith.constant 0 : index
    %c0_6 = arith.constant 0 : index
    %5 = vector.load %arg3[%c0_5, %c0_6] : memref<1x128xf32, #tpu.memory_space<vmem>>, vector<1x128xf32>
    %6 = vector.shape_cast %5 : vector<1x128xf32> to vector<128xf32>
    %7 = vector.shape_cast %6 : vector<128xf32> to vector<1x128xf32>
    %8 = vector.broadcast %7 : vector<1x128xf32> to vector<256x128xf32>
    %9 = arith.addf %4, %8 : vector<256x128xf32>
    %cst_7 = arith.constant 0.000000e+00 : f32
    %10 = vector.broadcast %cst_7 : f32 to vector<256x128xf32>
    %11 = arith.maximumf %9, %10 : vector<256x128xf32>
    %12 = arith.truncf %11 : vector<256x128xf32> to vector<256x128xbf16>
    %13 = vector.shape_cast %12 : vector<256x128xbf16> to vector<16x16x128xbf16>
    %cst_8 = arith.constant 0.000000e+00 : bf16
    %14 = vector.broadcast %cst_8 : bf16 to vector<18x18x128xbf16>
    %c0_9 = arith.constant 0 : index
    %c0_10 = arith.constant 0 : index
    %c0_11 = arith.constant 0 : index
    %15 = vector.load %arg12[%c0_9, %c0_10, %c0_11] : memref<18x18x128xbf16, #tpu.memory_space<vmem>>, vector<18x18x128xbf16>
    tpu.vector_store %arg12[%c0_9, %c0_10, %c0_11], %14 {strides = array<i32>} : memref<18x18x128xbf16, #tpu.memory_space<vmem>>, vector<18x18x128xbf16>,
    %c1 = arith.constant 1 : index
    %c1_12 = arith.constant 1 : index
    %c0_13 = arith.constant 0 : index
    %16 = vector.load %arg12[%c1, %c1_12, %c0_13] : memref<18x18x128xbf16, #tpu.memory_space<vmem>>, vector<16x16x128xbf16>
    tpu.vector_store %arg12[%c1, %c1_12, %c0_13], %13 {strides = array<i32>} : memref<18x18x128xbf16, #tpu.memory_space<vmem>>, vector<16x16x128xbf16>,
    %c0_14 = arith.constant 0 : index
    %c0_15 = arith.constant 0 : index
    %c0_16 = arith.constant 0 : index
    %17 = vector.load %arg12[%c0_14, %c0_15, %c0_16] : memref<18x18x128xbf16, #tpu.memory_space<vmem>>, vector<18x18x128xbf16>
    %18 = vector.extract_strided_slice %17 {offsets = [0, 0, 0], sizes = [16, 16, 128], strides = [1, 1, 1]} : vector<18x18x128xbf16> to vector<16x16x128xbf16>
    %19 = vector.shape_cast %18 : vector<16x16x128xbf16> to vector<256x128xbf16>
    %20 = vector.extract_strided_slice %17 {offsets = [0, 1, 0], sizes = [16, 16, 128], strides = [1, 1, 1]} : vector<18x18x128xbf16> to vector<16x16x128xbf16>
    %21 = vector.shape_cast %20 : vector<16x16x128xbf16> to vector<256x128xbf16>
    %22 = vector.extract_strided_slice %17 {offsets = [0, 2, 0], sizes = [16, 16, 128], strides = [1, 1, 1]} : vector<18x18x128xbf16> to vector<16x16x128xbf16>
    %23 = vector.shape_cast %22 : vector<16x16x128xbf16> to vector<256x128xbf16>
    %24 = vector.extract_strided_slice %17 {offsets = [1, 0, 0], sizes = [16, 16, 128], strides = [1, 1, 1]} : vector<18x18x128xbf16> to vector<16x16x128xbf16>
    %25 = vector.shape_cast %24 : vector<16x16x128xbf16> to vector<256x128xbf16>
    %26 = vector.extract_strided_slice %17 {offsets = [1, 1, 0], sizes = [16, 16, 128], strides = [1, 1, 1]} : vector<18x18x128xbf16> to vector<16x16x128xbf16>
    %27 = vector.shape_cast %26 : vector<16x16x128xbf16> to vector<256x128xbf16>
    %28 = vector.extract_strided_slice %17 {offsets = [1, 2, 0], sizes = [16, 16, 128], strides = [1, 1, 1]} : vector<18x18x128xbf16> to vector<16x16x128xbf16>
    %29 = vector.shape_cast %28 : vector<16x16x128xbf16> to vector<256x128xbf16>
    %30 = vector.extract_strided_slice %17 {offsets = [2, 0, 0], sizes = [16, 16, 128], strides = [1, 1, 1]} : vector<18x18x128xbf16> to vector<16x16x128xbf16>
    %31 = vector.shape_cast %30 : vector<16x16x128xbf16> to vector<256x128xbf16>
    %32 = vector.extract_strided_slice %17 {offsets = [2, 1, 0], sizes = [16, 16, 128], strides = [1, 1, 1]} : vector<18x18x128xbf16> to vector<16x16x128xbf16>
    %33 = vector.shape_cast %32 : vector<16x16x128xbf16> to vector<256x128xbf16>
    %34 = vector.extract_strided_slice %17 {offsets = [2, 2, 0], sizes = [16, 16, 128], strides = [1, 1, 1]} : vector<18x18x128xbf16> to vector<16x16x128xbf16>
    %35 = vector.shape_cast %34 : vector<16x16x128xbf16> to vector<256x128xbf16>
    %36 = tpu.concatenate %19, %21, %23, %25, %27, %29, %31, %33, %35 in 1 : vector<256x128xbf16>, vector<256x128xbf16>, vector<256x128xbf16>, vector<256x128xbf16>, vector<256x128xbf16>, vector<256x128xbf16>, vector<256x128xbf16>, vector<256x128xbf16>, vector<256x128xbf16> -> vector<256x1152xbf16>
    %c0_17 = arith.constant 0 : index
    %c0_18 = arith.constant 0 : index
    %37 = vector.load %arg4[%c0_17, %c0_18] : memref<1152x128xbf16, #tpu.memory_space<vmem>>, vector<1152x128xbf16>
    %cst_19 = arith.constant dense<0.000000e+00> : vector<256x128xf32>
    %38 = tpu.matmul %36, %37, %cst_19 {dimension_numbers = #tpu.dot_dimension_numbers<[1], [0], [0], [1], [0, 0, 1, 1], [], []>} : vector<256x1152xbf16>, vector<1152x128xbf16>, vector<256x128xf32> -> vector<256x128xf32>
    %c0_20 = arith.constant 0 : index
    %c0_21 = arith.constant 0 : index
    %39 = vector.load %arg5[%c0_20, %c0_21] : memref<1x128xf32, #tpu.memory_space<vmem>>, vector<1x128xf32>
    %40 = vector.shape_cast %39 : vector<1x128xf32> to vector<128xf32>
    %41 = vector.shape_cast %40 : vector<128xf32> to vector<1x128xf32>
    %42 = vector.broadcast %41 : vector<1x128xf32> to vector<256x128xf32>
    %43 = arith.addf %38, %42 : vector<256x128xf32>
    %cst_22 = arith.constant 0.000000e+00 : f32
    %44 = vector.broadcast %cst_22 : f32 to vector<256x128xf32>
    %45 = arith.maximumf %43, %44 : vector<256x128xf32>
    %46 = arith.truncf %45 : vector<256x128xf32> to vector<256x128xbf16>
    %c0_23 = arith.constant 0 : index
    %c0_24 = arith.constant 0 : index
    %47 = vector.load %arg6[%c0_23, %c0_24] : memref<128x128xbf16, #tpu.memory_space<vmem>>, vector<128x128xbf16>
    %cst_25 = arith.constant dense<0.000000e+00> : vector<256x128xf32>
    %48 = tpu.matmul %46, %47, %cst_25 {dimension_numbers = #tpu.dot_dimension_numbers<[1], [0], [0], [1], [0, 0, 1, 1], [], []>} : vector<256x128xbf16>, vector<128x128xbf16>, vector<256x128xf32> -> vector<256x128xf32>
    %c0_26 = arith.constant 0 : index
    %c0_27 = arith.constant 0 : index
    %49 = vector.load %arg7[%c0_26, %c0_27] : memref<1x128xf32, #tpu.memory_space<vmem>>, vector<1x128xf32>
    %50 = vector.shape_cast %49 : vector<1x128xf32> to vector<128xf32>
    %51 = vector.shape_cast %50 : vector<128xf32> to vector<1x128xf32>
    %52 = vector.broadcast %51 : vector<1x128xf32> to vector<256x128xf32>
    %53 = arith.addf %48, %52 : vector<256x128xf32>
    %54 = vector.shape_cast %53 : vector<256x128xf32> to vector<16x16x128xf32>
    %55 = arith.truncf %54 : vector<16x16x128xf32> to vector<16x16x128xbf16>
    %c0_28 = arith.constant 0 : index
    %c0_29 = arith.constant 0 : index
    %c0_30 = arith.constant 0 : index
    %c0_31 = arith.constant 0 : index
    %56 = vector.load %arg10[%c0_28, %c0_29, %c0_30, %c0_31] : memref<1x16x16x128xbf16, #tpu.memory_space<vmem>>, vector<1x16x16x128xbf16>
    %57 = vector.shape_cast %56 : vector<1x16x16x128xbf16> to vector<16x16x128xbf16>
    %58 = vector.shape_cast %55 : vector<16x16x128xbf16> to vector<1x16x16x128xbf16>
    tpu.vector_store %arg10[%c0_28, %c0_29, %c0_30, %c0_31], %58 {strides = array<i32>} : memref<1x16x16x128xbf16, #tpu.memory_space<vmem>>, vector<1x16x16x128xbf16>,
    %59 = vector.shape_cast %1 : vector<16x16x128xbf16> to vector<256x128xbf16>
    %c0_32 = arith.constant 0 : index
    %c0_33 = arith.constant 0 : index
    %60 = vector.load %arg8[%c0_32, %c0_33] : memref<128x128xbf16, #tpu.memory_space<vmem>>, vector<128x128xbf16>
    %cst_34 = arith.constant dense<0.000000e+00> : vector<256x128xf32>
    %61 = tpu.matmul %59, %60, %cst_34 {dimension_numbers = #tpu.dot_dimension_numbers<[1], [0], [0], [1], [0, 0, 1, 1], [], []>} : vector<256x128xbf16>, vector<128x128xbf16>, vector<256x128xf32> -> vector<256x128xf32>
    %c0_35 = arith.constant 0 : index
    %c0_36 = arith.constant 0 : index
    %62 = vector.load %arg9[%c0_35, %c0_36] : memref<1x128xf32, #tpu.memory_space<vmem>>, vector<1x128xf32>
    %63 = vector.shape_cast %62 : vector<1x128xf32> to vector<128xf32>
    %64 = vector.shape_cast %63 : vector<128xf32> to vector<1x128xf32>
    %65 = vector.broadcast %64 : vector<1x128xf32> to vector<256x128xf32>
    %66 = arith.addf %61, %65 : vector<256x128xf32>
    %67 = vector.shape_cast %66 : vector<256x128xf32> to vector<16x16x128xf32>
    %68 = arith.truncf %67 : vector<16x16x128xf32> to vector<16x16x128xbf16>
    %c0_37 = arith.constant 0 : index
    %c0_38 = arith.constant 0 : index
    %c0_39 = arith.constant 0 : index
    %c0_40 = arith.constant 0 : index
    %69 = vector.load %arg11[%c0_37, %c0_38, %c0_39, %c0_40] : memref<1x16x16x128xbf16, #tpu.memory_space<vmem>>, vector<1x16x16x128xbf16>
    %70 = vector.shape_cast %69 : vector<1x16x16x128xbf16> to vector<16x16x128xbf16>
    %71 = vector.shape_cast %68 : vector<16x16x128xbf16> to vector<1x16x16x128xbf16>
    tpu.vector_store %arg11[%c0_37, %c0_38, %c0_39, %c0_40], %71 {strides = array<i32>} : memref<1x16x16x128xbf16, #tpu.memory_space<vmem>>, vector<1x16x16x128xbf16>,
    return
  }
  func.func @transform_0(%arg0: i32) -> (i32, i32, i32, i32) {
    %c0_i32 = arith.constant 0 : i32
    %c0_i32_0 = arith.constant 0 : i32
    %c0_i32_1 = arith.constant 0 : i32
    %c0_i32_2 = arith.constant 0 : i32
    return %arg0, %c0_i32, %c0_i32_0, %c0_i32_1 : i32, i32, i32, i32
  }
  func.func @transform_1(%arg0: i32) -> (i32, i32) {
    %c0_i32 = arith.constant 0 : i32
    %c0_i32_0 = arith.constant 0 : i32
    %c0_i32_1 = arith.constant 0 : i32
    return %c0_i32, %c0_i32_0 : i32, i32
  }
  func.func @transform_2(%arg0: i32) -> (i32, i32) {
    %c0_i32 = arith.constant 0 : i32
    %c0_i32_0 = arith.constant 0 : i32
    %c0_i32_1 = arith.constant 0 : i32
    return %c0_i32, %c0_i32_0 : i32, i32
  }
  func.func @transform_3(%arg0: i32) -> (i32, i32) {
    %c0_i32 = arith.constant 0 : i32
    %c0_i32_0 = arith.constant 0 : i32
    %c0_i32_1 = arith.constant 0 : i32
    return %c0_i32, %c0_i32_0 : i32, i32
  }
  func.func @transform_4(%arg0: i32) -> (i32, i32) {
    %c0_i32 = arith.constant 0 : i32
    %c0_i32_0 = arith.constant 0 : i32
    %c0_i32_1 = arith.constant 0 : i32
    return %c0_i32, %c0_i32_0 : i32, i32
  }
  func.func @transform_5(%arg0: i32) -> (i32, i32) {
    %c0_i32 = arith.constant 0 : i32
    %c0_i32_0 = arith.constant 0 : i32
    %c0_i32_1 = arith.constant 0 : i32
    return %c0_i32, %c0_i32_0 : i32, i32
  }
  func.func @transform_6(%arg0: i32) -> (i32, i32) {
    %c0_i32 = arith.constant 0 : i32
    %c0_i32_0 = arith.constant 0 : i32
    %c0_i32_1 = arith.constant 0 : i32
    return %c0_i32, %c0_i32_0 : i32, i32
  }
  func.func @transform_7(%arg0: i32) -> (i32, i32) {
    %c0_i32 = arith.constant 0 : i32
    %c0_i32_0 = arith.constant 0 : i32
    %c0_i32_1 = arith.constant 0 : i32
    return %c0_i32, %c0_i32_0 : i32, i32
  }
  func.func @transform_8(%arg0: i32) -> (i32, i32) {
    %c0_i32 = arith.constant 0 : i32
    %c0_i32_0 = arith.constant 0 : i32
    %c0_i32_1 = arith.constant 0 : i32
    return %c0_i32, %c0_i32_0 : i32, i32
  }
  func.func @transform_9(%arg0: i32) -> (i32, i32, i32, i32) {
    %c0_i32 = arith.constant 0 : i32
    %c0_i32_0 = arith.constant 0 : i32
    %c0_i32_1 = arith.constant 0 : i32
    %c0_i32_2 = arith.constant 0 : i32
    return %arg0, %c0_i32, %c0_i32_0, %c0_i32_1 : i32, i32, i32, i32
  }
  func.func @transform_10(%arg0: i32) -> (i32, i32, i32, i32) {
    %c0_i32 = arith.constant 0 : i32
    %c0_i32_0 = arith.constant 0 : i32
    %c0_i32_1 = arith.constant 0 : i32
    %c0_i32_2 = arith.constant 0 : i32
    return %arg0, %c0_i32, %c0_i32_0, %c0_i32_1 : i32, i32, i32, i32
  }
}

</mosaic_0001>

<bundles_post_ra>
// kernel: tpu_custom_call.1
= control target key start
LH: loop header
LB: loop body
LE: loop exit
PB: predicated region body
PF: predicated region fallthrough
CT: control target
= control target key end

     0   :  { %s8233_s0 = inlined_call_operand.hbm [shape: bf16[2,16,16,128], index: 0, kind: input, shape index: {}]   ;;  %s8234_s1 = inlined_call_operand.hbm [shape: bf16[128,128], index: 1, kind: input, shape index: {}]   ;;  %s8235_s2 = inlined_call_operand.vmem [shape: f32[1,128], index: 2, kind: input, shape index: {}]   ;;  %s8236_s3 = inlined_call_operand.hbm [shape: bf16[1152,128], index: 3, kind: input, shape index: {}]   ;;  %s8237_s4 = inlined_call_operand.vmem [shape: f32[1,128], index: 4, kind: input, shape index: {}]   ;;  %s8238_s5 = inlined_call_operand.hbm [shape: bf16[128,128], index: 5, kind: input, shape index: {}]   ;;  %s8239_s6 = inlined_call_operand.vmem [shape: f32[1,128], index: 6, kind: input, shape index: {}]   ;;  %s8240_s7 = inlined_call_operand.hbm [shape: bf16[128,128], index: 7, kind: input, shape index: {}]   ;;  %s8241_s8 = inlined_call_operand.vmem [shape: f32[1,128], index: 8, kind: input, shape index: {}]   ;;  %s8242_s9 = inlined_call_operand.hbm [shape: bf16[2,16,16,128], index: 9, kind: output, shape index: {0}]   ;;  %s8243_s10 = inlined_call_operand.hbm [shape: bf16[2,16,16,128], index: 10, kind: output, shape index: {1}]  }
   0x1   :  { %8267 = sst [smem:[#allocation32_spill]] %s8239_s6 }
   0x2   :  { %8268 = sst [smem:[#allocation33_spill]] %s8242_s9 }
   0x3   :  { %16 = vsyncpa [#allocation4], 0 }
   0x4   :  { %18 = vsyncpa [#allocation4 + $0x1], 0 }
   0x5   :  { %19 = vsyncpa [#allocation7], 0 }
   0x6   :  { %20 = vsyncpa [#allocation10], 0 }
   0x7   :  { %21 = vsyncpa [#allocation5], 0 }
   0x8   :  { %23 = vsyncpa [#allocation5 + $0x1], 0 }
   0x9   :  { %24 = vsyncpa [#allocation14], 0 }
   0xa   :  { %26 = vsyncpa [#allocation14 + $0x1], 0  ;;  %s6614_s13 = smov 0   ;;  %s6616_s14 = smov 0  }
   0xb   :  { %s6618_s15 = smov 0   ;;  %s6620_s16 = smov 0  }
   0xc LB: > { %8269 = sst [smem:[#allocation20_spill]] %s6533_s13  ;;  %s6635_s17 = sadd.s32 4294967295, %s6545_s16   ;;  %s6545_s16 = sphi %s6620_s16, %s8329_s16   ;;  %s6541_s15 = sphi %s6618_s15, %s8328_s15   ;;  %s6537_s14 = sphi %s6616_s14, %s8327_s14   ;;  %s6533_s13 = sphi %s6614_s13, %s8326_s13  }
   0xd   : > { %s4717_s18 = sadd.s32 4294967294, %s6545_s16   ;;  %p52_p0 = scmp.ne.s32.totalorder %s6537_s14, %s6533_s13 }
   0xe   : > { %p8244_p1 = scmp.eq.s32.totalorder %s6635_s17, 0  ;;  %p250_p3 = scmp.eq.s32.totalorder %s4717_s18, 1 }
   0xf   : > { %p4718_p5 = scmp.ge.s32.totalorder %s6545_s16, 1  ;;  %p283_p7 = scmp.lt.s32.totalorder %s6545_s16, 3 }
  0x10   : > { %p6644_p4 = por %p8244_p1, %p52_p0  ;;  %p6649_p6 = por %p250_p3, %p52_p0 }
  0x11   : > { %p6654_p8 = pnand %p4718_p5, %p283_p7  ;;  %s6547_s22 = smov [#allocation6]  }
  0x12   : > { %s8270_s19 = scalar_select %p6644_p4, 1, 0 }
  0x13   : > { %s8271_s20 = scalar_select %p6649_p6, 1, 0 }
  0x14   : > { %s8273_s21 = scalar_select %p6654_p8, 1, 0 }
  0x15   : > { %8272 = sst [smem:[#allocation21_spill]] %s8271_s20  ;;  %s295_s23 = sshll.u32 %s6547_s22, 4  ;;  %s6658_s23 = int_to_ptr.vmem [resolvable:$true] %s295_s23 }
  0x16   : > { %p6074_p9 = pneg %p6654_p8  ;;  %s6548_s25 = smov [#allocation9]  }
  0x17   : > { %s327_s26 = sshll.u32 %s6548_s25, 4  ;;  %s6549_s27 = smov [#allocation8]   ;;  %s6669_s26 = int_to_ptr.vmem [resolvable:$true] %s327_s26 }
  0x18   : > { %p6665_p11 = pnand %p6074_p9, %p8244_p1  ;;  %s6671_s28 = sshll.u32 %s6549_s27, 4  ;;  %s312_s28 = int_to_ptr.vmem [resolvable:$true] %s6671_s28 }
  0x19   : > { %s6297_s11 = scalar_lea.hbm %s8234_s1, 1024 }
  0x1a   : > { %p6298_p12 = scmp.ne.s32.totalorder %s8234_s1, %s6297_s11  ;;  %p6681_p13 = pneg %p6665_p11 }
  0x1b   : > { %p6304_p5 = scmp.lt.u32.totalorder %s6297_s11, %s8234_s1 }
  0x1c   : > { %p6300_p0 = pnand %p6681_p13, %p6298_p12 }
  0x1e   : > { %p6301_p3 = pneg %p6300_p0 }
  0x20   : > { %p6306_p7 = pnand %p6304_p5, %p6301_p3 }
  0x22   : > { %6309 = shalt.err (!%p6306_p7)
}
  0x23   : > { %s6310_s29 = scalar_lea.vmem %s6658_s23, 1024  ;;  %p6318_p2 = scmp.lt.s32.totalorder %s6658_s23, %s6658_s23 }
  0x24   : > { %p6311_p9 = scmp.ne.s32.totalorder %s6658_s23, %s6310_s29  ;;  %p6319_p6 = scmp.lt.s32.totalorder %s6310_s29, %s6310_s29 }
  0x26   : > { %p6313_p10 = pnand %p6311_p9, %p6681_p13  ;;  %p6320_p12 = por %p6319_p6, %p6318_p2 }
  0x28   : > { %p6314_p1 = pneg %p6313_p10 }
  0x2a   : > { %p6321_p0 = pnand %p6320_p12, %p6314_p1 }
  0x2c   : > { %6324 = shalt.err (!%p6321_p0)
}
  0x2d   : > { %s6550_s30 = smov 64   ;;  %s6551_s11 = smov 4  }
  0x2e   : > { %6077 = dma.hbm_to_vmem [thread:$0]  (!%p6665_p11), %s8234_s1, 1024, %s6658_s23, [#allocation7], %s6550_s30, %s6550_s30, %s6551_s11  }
  0x2f   : > { %s6325_s29 = scalar_lea.hbm %s8238_s5, 1024 }
  0x30   : > { %p6326_p1 = scmp.ne.s32.totalorder %s8238_s5, %s6325_s29  ;;  %p6332_p10 = scmp.lt.u32.totalorder %s6325_s29, %s8238_s5 }
  0x32   : > { %p6328_p2 = pnand %p6326_p1, %p6681_p13 }
  0x34   : > { %p6329_p6 = pneg %p6328_p2 }
  0x36   : > { %p6334_p3 = pnand %p6332_p10, %p6329_p6 }
  0x38   : > { %6337 = shalt.err (!%p6334_p3)
}
  0x39   : > { %s6338_s23 = scalar_lea.vmem %s6669_s26, 1024  ;;  %p6346_p12 = scmp.lt.s32.totalorder %s6669_s26, %s6669_s26 }
  0x3a   : > { %p6339_p5 = scmp.ne.s32.totalorder %s6669_s26, %s6338_s23  ;;  %p6347_p0 = scmp.lt.s32.totalorder %s6338_s23, %s6338_s23 }
  0x3c   : > { %p6341_p7 = pnand %p6339_p5, %p6681_p13  ;;  %p6348_p1 = por %p6347_p0, %p6346_p12 }
  0x3e   : > { %p6342_p9 = pneg %p6341_p7 }
  0x40   : > { %p6349_p2 = pnand %p6348_p1, %p6342_p9 }
  0x42   : > { %6352 = shalt.err (!%p6349_p2)
}
  0x43   : > { %6083 = dma.hbm_to_vmem [thread:$0]  (!%p6665_p11), %s8238_s5, 1024, %s6669_s26, [#allocation10], %s6550_s30, %s6550_s30, %s6551_s11  }
  0x44   : > { %s6353_s12 = scalar_lea.hbm %s8236_s3, 9216 }
  0x45   : > { %p6354_p6 = scmp.ne.s32.totalorder %s8236_s3, %s6353_s12  ;;  %p6360_p5 = scmp.lt.u32.totalorder %s6353_s12, %s8236_s3 }
  0x47   : > { %p6356_p10 = pnand %p6354_p6, %p6681_p13 }
  0x49   : > { %p6357_p3 = pneg %p6356_p10 }
  0x4b   : > { %p6362_p7 = pnand %p6360_p5, %p6357_p3 }
  0x4d   : > { %6365 = shalt.err (!%p6362_p7)
}
  0x4e   : > { %s6366_s23 = scalar_lea.vmem %s312_s28, 9216  ;;  %p6374_p1 = scmp.lt.s32.totalorder %s312_s28, %s312_s28 }
  0x4f   : > { %p6367_p9 = scmp.ne.s32.totalorder %s312_s28, %s6366_s23  ;;  %p6375_p2 = scmp.lt.s32.totalorder %s6366_s23, %s6366_s23 }
  0x51   : > { %p6369_p12 = pnand %p6367_p9, %p6681_p13  ;;  %p6376_p4 = por %p6375_p2, %p6374_p1 }
  0x53   : > { %p6370_p0 = pneg %p6369_p12 }
  0x55   : > { %p6377_p8 = pnand %p6376_p4, %p6370_p0 }
  0x57   : > { %6380 = shalt.err (!%p6377_p8)
}
  0x58   : > { %6080 = dma.hbm_to_vmem [thread:$0]  (!%p6665_p11), %s8236_s3, 9216, %s312_s28, [#allocation7], %s6550_s30, %s6550_s30, %s6551_s11  }
  0x59   : > { %s6552_s9 = smov [#allocation11]   ;;  %s6381_s18 = scalar_lea.hbm %s8240_s7, 1024 }
  0x5a   : > { %s343_s13 = sshll.u32 %s6552_s9, 4  ;;  %p6382_p4 = scmp.ne.s32.totalorder %s8240_s7, %s6381_s18  ;;  %s344_s13 = int_to_ptr.vmem [resolvable:$true] %s343_s13 }
  0x5b   : > { %p6388_p10 = scmp.lt.u32.totalorder %s6381_s18, %s8240_s7 }
  0x5c   : > { %p6384_p8 = pnand %p6382_p4, %p6681_p13 }
  0x5e   : > { %p6385_p6 = pneg %p6384_p8 }
  0x60   : > { %p6390_p3 = pnand %p6388_p10, %p6385_p6 }
  0x62   : > { %6393 = shalt.err (!%p6390_p3)
}
  0x63   : > { %s6394_s28 = scalar_lea.vmem %s344_s13, 1024  ;;  %p6402_p12 = scmp.lt.s32.totalorder %s344_s13, %s344_s13 }
  0x64   : > { %p6395_p5 = scmp.ne.s32.totalorder %s344_s13, %s6394_s28  ;;  %p6403_p0 = scmp.lt.s32.totalorder %s6394_s28, %s6394_s28 }
  0x66   : > { %p6397_p7 = pnand %p6395_p5, %p6681_p13  ;;  %p6404_p1 = por %p6403_p0, %p6402_p12 }
  0x68   : > { %p6398_p9 = pneg %p6397_p7 }
  0x6a   : > { %p6405_p2 = pnand %p6404_p1, %p6398_p9 }
  0x6c   : > { %6408 = shalt.err (!%p6405_p2)
}
  0x6d   : > { %6086 = dma.hbm_to_vmem [thread:$0]  (!%p6665_p11), %s8240_s7, 1024, %s344_s13, [#allocation10], %s6550_s30, %s6550_s30, %s6551_s11  }
  0x6e   : > { %s6775_s22 = sadd.s32 1, %s6545_s16   ;;  %s39_s24 = sadd.s32 1, %s6541_s15 }
  0x6f   : > { %s36_s9 = ssub.s32 %s6545_s16, %s6775_s22  ;;  %p46_p13 = scmp.ne.s32.totalorder %s6541_s15, %s6537_s14 }
  0x70   : > { %p37_p4 = scmp.eq.s32.totalorder %s36_s9, 0  ;;  %p47_p8 = scmp.eq.s32.totalorder %s6545_s16, 0 }
  0x71   : > { %p8276_p6 = scmp.eq.s32.totalorder %s6635_s17, 1  ;;  %p6102_p3 = scmp.lt.s32.totalorder %s6545_s16, 2 }
  0x72   : > { %s6791_s12 = scalar_select %p37_p4, %s6541_s15, %s39_s24  }
  0x73   : > { %p6785_p10 = por %p8276_p6, %p46_p13  ;;  %p48_p5 = por %p47_p8, %p46_p13 }
  0x74   : > { %s360_s18 = sand.u32 1, %s6541_s15   ;;  %s5027_s13 = sshll.u32 %s6545_s16, 11 }
  0x75   : > { %s4724_s25 = sshll.u32 %s360_s18, 7  ;;  %s6798_s23 = scalar_lea.hbm %s8233_s0, %s5027_s13 }
  0x76   : > { %s364_s28 = scalar_lea.vmem [#allocation3], %s4724_s25  ;;  %p6802_p11 = pnand %p6102_p3, %p48_p5 }
  0x77   : > { %s371_s26 = sshll.u32 %s364_s28, 4  ;;  %s6806_s24 = scalar_lea.sflag [#allocation4], %s360_s18  ;;  %s6800_s26 = int_to_ptr.vmem [resolvable:$true] %s371_s26 }
  0x78   : > { %s6409_s9 = scalar_lea.hbm %s6798_s23, 2048  ;;  %p6411_p9 = pneg %p6802_p11 }
  0x79   : > { %p6410_p7 = scmp.ne.s32.totalorder %s6798_s23, %s6409_s9  ;;  %s6414_s27 = scalar_lea.hbm %s8233_s0, 4096 }
  0x7a   : > { %p6415_p1 = scmp.lt.u32.totalorder %s6798_s23, %s8233_s0  ;;  %p6416_p2 = scmp.lt.u32.totalorder %s6414_s27, %s6409_s9 }
  0x7b   : > { %p6412_p12 = pnand %p6411_p9, %p6410_p7  ;;  %p6418_p4 = scmp.lt.u32.totalorder %s6409_s9, %s6798_s23 }
  0x7c   : > { %p6417_p13 = por %p6416_p2, %p6415_p1 }
  0x7d   : > { %p6413_p0 = pneg %p6412_p12 }
  0x7e   : > { %p6419_p8 = por %p6418_p4, %p6417_p13 }
  0x80   : > { %p6420_p6 = pnand %p6419_p8, %p6413_p0 }
  0x82   : > { %6423 = shalt.err (!%p6420_p6)
}
  0x83   : > { %s6424_s18 = scalar_lea.vmem %s6800_s26, 2048  ;;  %s6553_s25 = smov [#allocation3]  }
  0x84   : > { %p6425_p3 = scmp.ne.s32.totalorder %s6800_s26, %s6424_s18  ;;  %s6429_s13 = sshll.u32 %s6553_s25, 4  ;;  %s6430_s13 = int_to_ptr.vmem [resolvable:$false] %s6429_s13 }
  0x85   : > { %s6431_s29 = scalar_lea.vmem %s6430_s13, 4096  ;;  %p6432_p12 = scmp.lt.s32.totalorder %s6800_s26, %s6430_s13 }
  0x86   : > { %p6427_p5 = pnand %p6425_p3, %p6411_p9  ;;  %p6433_p1 = scmp.lt.s32.totalorder %s6431_s29, %s6424_s18 }
  0x88   : > { %p6428_p7 = pneg %p6427_p5  ;;  %p6434_p2 = por %p6433_p1, %p6432_p12 }
  0x8a   : > { %p6435_p13 = pnand %p6434_p2, %p6428_p7 }
  0x8c   : > { %6438 = shalt.err (!%p6435_p13)
}
  0x8d   : > { %6090 = dma.hbm_to_vmem [thread:$0]  (!%p6802_p11), %s6798_s23, 2048, %s6800_s26, %s6806_s24, %s6550_s30, %s6550_s30, %s6551_s11  }
  0x8e   : > { %p8279_p9 = scmp.ne.s32.totalorder %s8273_s21, 0 }
  0x90   : > { %383 = sbr.rel (%p8279_p9) target bundleno = 1245 (0x4dd), region = 56 }
  0x97   : > { %s6840_s9 = sand.u32 1, %s6537_s14   ;;  %p8280_p0 = scmp.ne.s32.totalorder %s8270_s19, 0 }
  0x98   : > { %s6843_s27 = sshll.u32 %s6840_s9, 7  ;;  %s386_s6 = scalar_lea.sflag [#allocation4], %s6840_s9 }
  0x99   : > { %s6847_s28 = scalar_lea.vmem [#allocation3], %s6843_s27 }
  0x9a   : > { %6512 = dma.done.wait (%p8280_p0), %s386_s6, 2048  }
  0x9b   : > { %6514 = vsyncadd (%p8280_p0), %s386_s6, 4294965248  ;;  %p8281_p11 = scmp.eq.s32.totalorder %s6635_s17, 0 }
  0x9d   : > { %6516 = dma.done.wait (%p8281_p11), [#allocation7], 10240   ;;  %p8282_p4 = pmov %p8281_p11 }
  0x9f   : > { %6518 = vsyncadd (%p8282_p4), [#allocation7], 4294957056  ;;  %p8283_p8 = pmov %p8282_p4 }
  0xa0   : > { %p8284_p6 = pmov %p8282_p4 }
  0xa1   : > { %6520 = dma.done.wait (%p8283_p8), [#allocation10], 2048  }
  0xa2   : > { %6522 = vsyncadd (%p8284_p6), [#allocation10], 4294965248  ;;  %v6149_v0 = vld [vmem:[#allocation6] sm:$0xff]   ;;  %v6150_v1 = vld [vmem:[#allocation6 + $0x8] sm:$0xff]   ;;  %v6554_v36 = vmov 0   ;;  %vm1920_vm3 = vcmask 1042432  }
  0xa3   : > { %5860 = vmatprep.subr.bf16.mxu0 %v6149_v0  ;;  %v6151_v2 = vld [vmem:[#allocation6 + $0x10] sm:$0xff]   ;;  %v6152_v3 = vld [vmem:[#allocation6 + $0x18] sm:$0xff]   ;;  %v6157_v4 = vld [vmem:[%s6847_s28] sm:$0xff]   ;;  %862 = vst [vmem:[#allocation2 + $0x18] sm:$0xf] %v6554_v36  ;;  %vm1921_vm4 = vcmask 1046532  }
  0xa4   : > { %5861 = vmatpush3.bf16.msra.mxu0 %v6149_v0  ;;  %5876 = vmatprep.mubr.bf16.mxu0 %v6157_v4  ;;  %v6153_v5 = vld [vmem:[#allocation6 + $0x20] sm:$0xff]   ;;  %v6154_v6 = vld [vmem:[#allocation6 + $0x28] sm:$0xff]   ;;  %v6155_v7 = vld [vmem:[#allocation6 + $0x30] sm:$0xff]   ;;  %856 = vst [vmem:[#allocation2] sm:$0xf] %v6554_v36  ;;  %vm1314_vm6 = vcmask 1043456  }
  0xa5   : > { %5862 = vmatprep.subr.bf16.mxu0 %v6150_v1  ;;  %v6156_v8 = vld [vmem:[#allocation6 + $0x38] sm:$0xff]   ;;  %v6173_v9 = vld [vmem:[#allocation8 + $0x40] sm:$0xff]   ;;  %v6158_v12 = vld [vmem:[%s6847_s28 + $0x8] sm:$0xff]   ;;  %857 = vst [vmem:[#allocation2 + $0x4] sm:$0xf] %v6554_v36  ;;  %vm1321_vm10 = vcmask 1040384  }
  0xa6   : > { %v6174_v10 = vld [vmem:[#allocation8] sm:$0xff]   ;;  %5340 = vmatprep.subr.bf16.mxu1 %v6173_v9  ;;  %v6177_v13 = vld [vmem:[#allocation8 + $0x48] sm:$0xff]   ;;  %v6159_v14 = vld [vmem:[%s6847_s28 + $0x10] sm:$0xff]   ;;  %858 = vst [vmem:[#allocation2 + $0x8] sm:$0x1] %v6554_v36  ;;  %s8038_s25 = scalar_lea.vmem [#allocation13], %s6843_s27 }
  0xa7   : > { %5341 = vmatpush3.bf16.msra.mxu1 %v6174_v10  ;;  %v6175_v11 = vld [vmem:[#allocation8 + $0xc0] sm:$0xff]   ;;  %v6178_v16 = vld [vmem:[#allocation8 + $0x8] sm:$0xff]   ;;  %v6160_v17 = vld [vmem:[%s6847_s28 + $0x18] sm:$0xff]   ;;  %859 = vst [vmem:[#allocation2 + $0xc] sm:$0xf] %v6554_v36  ;;  %s5124_s13 = sshll.u32 %s6635_s17, 11 }
  0xa8   : > { %5863 = vmatpush3.bf16.msra.mxu0 %v6150_v1  ;;  %v6176_v15 = vld [vmem:[#allocation8 + $0x80] sm:$0xff]   ;;  %5342 = vmatprep.subr.bf16.mxu1 %v6177_v13  ;;  %v6162_v19 = vld [vmem:[%s6847_s28 + $0x28] sm:$0xff]   ;;  %v6163_v20 = vld [vmem:[%s6847_s28 + $0x30] sm:$0xff]   ;;  %860 = vst [vmem:[#allocation2 + $0x10] sm:$0xf] %v6554_v36  ;;  %s4574_s19 = sshll.u32 %s8038_s25, 4  ;;  %s8093_s19 = int_to_ptr.vmem [resolvable:$true] %s4574_s19 }
  0xa9   : > { %5864 = vmatprep.subr.bf16.mxu0 %v6151_v2  ;;  %v6161_v18 = vld [vmem:[%s6847_s28 + $0x20] sm:$0xff]   ;;  %v6164_v21 = vld [vmem:[%s6847_s28 + $0x38] sm:$0xff]   ;;  %v6166_v23 = vld [vmem:[%s6847_s28 + $0x48] sm:$0xff]   ;;  %861 = vst [vmem:[#allocation2 + $0x14] sm:$0x1] %v6554_v36  ;;  %s4545_s21 = scalar_lea.sflag [#allocation14], %s6840_s9 }
  0xaa   : > { %v6165_v22 = vld [vmem:[%s6847_s28 + $0x40] sm:$0xff]   ;;  %v6167_v24 = vld [vmem:[%s6847_s28 + $0x50] sm:$0xff]   ;;  %v6168_v25 = vld [vmem:[%s6847_s28 + $0x58] sm:$0xff]   ;;  %863 = vst [vmem:[#allocation2 + $0x1c] sm:$0xf] %v6554_v36  ;;  %s6439_s30 = scalar_lea.vmem %s8093_s19, 2048 }
  0xab   : > { %5343 = vmatpush3.bf16.msra.mxu1 %v6178_v16  ;;  %v6169_v26 = vld [vmem:[%s6847_s28 + $0x60] sm:$0xff]   ;;  %v6170_v27 = vld [vmem:[%s6847_s28 + $0x68] sm:$0xff]   ;;  %v6171_v28 = vld [vmem:[%s6847_s28 + $0x70] sm:$0xff]   ;;  %864 = vst [vmem:[#allocation2 + $0x20] sm:$0x1] %v6554_v36  ;;  %p6440_p3 = scmp.ne.s32.totalorder %s8093_s19, %s6439_s30  ;;  %s6555_s11 = smov [#allocation13]  }
  0xac   : > { %5865 = vmatpush3.bf16.msra.mxu0 %v6151_v2  ;;  %v6172_v29 = vld [vmem:[%s6847_s28 + $0x78] sm:$0xff]   ;;  %v6179_v30 = vld [vmem:[#allocation8 + $0xc8] sm:$0xff]   ;;  %v6181_v32 = vld [vmem:[#allocation8 + $0x50] sm:$0xff]   ;;  %865 = vst [vmem:[#allocation2 + $0x24] sm:$0xf] %v6554_v36  ;;  %s6443_s23 = sshll.u32 %s6555_s11, 4  ;;  %s6444_s23 = int_to_ptr.vmem [resolvable:$false] %s6443_s23 }
  0xad   : > { %5866 = vmatprep.subr.bf16.mxu0 %v6152_v3  ;;  %v6180_v31 = vld [vmem:[#allocation8 + $0x88] sm:$0xff]   ;;  %v6182_v33 = vld [vmem:[#allocation8 + $0x10] sm:$0xff]   ;;  %5344 = vmatprep.subr.bf16.mxu1 %v6181_v32  ;;  %866 = vst [vmem:[#allocation2 + $0x28] sm:$0xf] %v6554_v36  ;;  %867 = vst [vmem:[#allocation2 + $0x2c] sm:$0x1] %v6554_v36  ;;  %p6441_p5 = pnand %p6440_p3, %p6785_p10  ;;  %p6446_p12 = scmp.lt.s32.totalorder %s8093_s19, %s6444_s23 }
  0xae   : > { %v6183_v34 = vld [vmem:[#allocation8 + $0xd0] sm:$0xff]   ;;  %868 = vst [vmem:[#allocation2 + $0x30] sm:$0xf] %v6554_v36  ;;  %869 = vst [vmem:[#allocation2 + $0x34] sm:$0xf] %v6554_v36  ;;  %v6185_v37 = vld [vmem:[#allocation8 + $0x58] sm:$0xff]  }
  0xaf   : > { %5345 = vmatpush3.bf16.msra.mxu1 %v6182_v33  ;;  %v6184_v35 = vld [vmem:[#allocation8 + $0x90] sm:$0xff]   ;;  %870 = vst [vmem:[#allocation2 + $0x38] sm:$0x1] %v6554_v36  ;;  %871 = vst [vmem:[#allocation2 + $0x3c] sm:$0xf] %v6554_v36  ;;  %v6186_v38 = vld [vmem:[#allocation8 + $0x18] sm:$0xff]   ;;  %p6442_p7 = pneg %p6441_p5 }
  0xb0   : > { %5867 = vmatpush3.bf16.msra.mxu0 %v6152_v3  ;;  %872 = vst [vmem:[#allocation2 + $0x40] sm:$0xf] %v6554_v36  ;;  %873 = vst [vmem:[#allocation2 + $0x44] sm:$0x1] %v6554_v36  ;;  %5346 = vmatprep.subr.bf16.mxu1 %v6185_v37  ;;  %v6187_v39 = vld [vmem:[#allocation8 + $0xd8] sm:$0xff]   ;;  %v6189_v41 = vld [vmem:[#allocation8 + $0x60] sm:$0xff]  }
  0xb1   : > { %5868 = vmatprep.subr.bf16.mxu0 %v6153_v5  ;;  %874 = vst [vmem:[#allocation2 + $0x48] sm:$0xf] %v6554_v36  ;;  %875 = vst [vmem:[#allocation2 + $0x4c] sm:$0xf] %v6554_v36  ;;  %v6188_v40 = vld [vmem:[#allocation8 + $0x98] sm:$0xff]   ;;  %v6190_v42 = vld [vmem:[#allocation8 + $0x20] sm:$0xff]  }
  0xb2   : > { %876 = vst [vmem:[#allocation2 + $0x50] sm:$0x1] %v6554_v36  ;;  %877 = vst [vmem:[#allocation2 + $0x54] sm:$0xf] %v6554_v36  ;;  %v6191_v43 = vld [vmem:[#allocation8 + $0xe0] sm:$0xff]   ;;  %v6193_v45 = vld [vmem:[#allocation8 + $0x68] sm:$0xff]  }
  0xb3   : > { %878 = vst [vmem:[#allocation2 + $0x58] sm:$0xf] %v6554_v36  ;;  %879 = vst [vmem:[#allocation2 + $0x5c] sm:$0x1] %v6554_v36  ;;  %5347 = vmatpush3.bf16.msra.mxu1 %v6186_v38  ;;  %v6192_v44 = vld [vmem:[#allocation8 + $0xa0] sm:$0xff]   ;;  %v6194_v46 = vld [vmem:[#allocation8 + $0x28] sm:$0xff]  }
  0xb4   : > { %5869 = vmatpush3.bf16.msra.mxu0 %v6153_v5  ;;  %880 = vst [vmem:[#allocation2 + $0x60] sm:$0xf] %v6554_v36  ;;  %881 = vst [vmem:[#allocation2 + $0x64] sm:$0xf] %v6554_v36  ;;  %5348 = vmatprep.subr.bf16.mxu1 %v6189_v41  ;;  %v1431_v47 = vld [vmem:[#allocation2] sm:$0xf] }
  0xb5   : > { %5870 = vmatprep.subr.bf16.mxu0 %v6154_v6  ;;  %882 = vst [vmem:[#allocation2 + $0x68] sm:$0x1] %v6554_v36  ;;  %883 = vst [vmem:[#allocation2 + $0x6c] sm:$0xf] %v6554_v36  ;;  %v6195_v48 = vld [vmem:[#allocation8 + $0xe8] sm:$0xff]   ;;  %v1489_v50 = vshrl.u32 %v1431_v47, 16 }
  0xb6   : > { %884 = vst [vmem:[#allocation2 + $0x70] sm:$0xf] %v6554_v36  ;;  %885 = vst [vmem:[#allocation2 + $0x74] sm:$0x1] %v6554_v36  ;;  %v1432_v49 = vld [vmem:[#allocation2 + $0x4] sm:$0xf] }
  0xb7   : > { %886 = vst [vmem:[#allocation2 + $0x78] sm:$0xf] %v6554_v36  ;;  %887 = vst [vmem:[#allocation2 + $0x7c] sm:$0xf] %v6554_v36  ;;  %5349 = vmatpush3.bf16.msra.mxu1 %v6190_v42  ;;  %v1492_v51 = vshll.u32 %v1431_v47, 16  ;;  %v6196_v52 = vld [vmem:[#allocation8 + $0xa8] sm:$0xff]   ;;  %v4810_v16 = vcombine.low %v1431_v47, %v1432_v49 }
  0xb8   : > { %5871 = vmatpush3.bf16.msra.mxu0 %v6154_v6  ;;  %888 = vst [vmem:[#allocation2 + $0x80] sm:$0x1] %v6554_v36  ;;  %889 = vst [vmem:[#allocation2 + $0x84] sm:$0xf] %v6554_v36  ;;  %5350 = vmatprep.subr.bf16.mxu1 %v6193_v45  ;;  %v1498_v53 = vshll.u32 %v1432_v49, 16  ;;  %v1502_v54 = vshrl.u32 %v1432_v49, 16 }
  0xb9   : > { %5872 = vmatprep.subr.bf16.mxu0 %v6155_v7  ;;  %890 = vst [vmem:[#allocation2 + $0x88] sm:$0xf] %v6554_v36  ;;  %891 = vst [vmem:[#allocation2 + $0x8c] sm:$0x1] %v6554_v36  ;;  %v6197_v55 = vld [vmem:[#allocation8 + $0x70] sm:$0xff]   ;;  %v1491_v56 = vrot.slane %v1489_v50, 4 }
  0xba   : > { %892 = vst [vmem:[#allocation2 + $0x90] sm:$0xf] %v6554_v36  ;;  %893 = vst [vmem:[#allocation2 + $0x94] sm:$0xf] %v6554_v36  ;;  %v1494_v57 = vrot.slane %v1492_v51, 5  ;;  %v6198_v58 = vld [vmem:[#allocation8 + $0x30] sm:$0xff]  }
  0xbb   : > { %894 = vst [vmem:[#allocation2 + $0x98] sm:$0x1] %v6554_v36  ;;  %895 = vst [vmem:[#allocation2 + $0x9c] sm:$0xf] %v6554_v36  ;;  %5351 = vmatpush3.bf16.msra.mxu1 %v6194_v46  ;;  %v1433_v59 = vld [vmem:[#allocation2 + $0x8] sm:$0x1] }
  0xbc   : > { %5873 = vmatpush3.bf16.msra.mxu0 %v6155_v7  ;;  %896 = vst [vmem:[#allocation2 + $0xa0] sm:$0xf] %v6554_v36  ;;  %897 = vst [vmem:[#allocation2 + $0xa4] sm:$0x1] %v6554_v36  ;;  %v1500_v60 = vrot.slane %v1498_v53, 5  ;;  %v1504_v61 = vrot.slane %v1502_v54, 4  ;;  %5352 = vmatprep.subr.bf16.mxu1 %v6197_v55  ;;  %v1495_v63 = vor.u32 %v1494_v57, %v1491_v56 }
  0xbd   : > { %5874 = vmatprep.subr.bf16.mxu0 %v6156_v8  ;;  %898 = vst [vmem:[#allocation2 + $0xa8] sm:$0xf] %v6554_v36  ;;  %899 = vst [vmem:[#allocation2 + $0xac] sm:$0xf] %v6554_v36  ;;  %v6199_v62 = vld [vmem:[#allocation8 + $0xf0] sm:$0xff]   ;;  %v1508_v0 = vshll.u32 %v1433_v59, 16 }
  0xbe   : > { %900 = vst [vmem:[#allocation2 + $0xb0] sm:$0x1] %v6554_v36  ;;  %901 = vst [vmem:[#allocation2 + $0xb4] sm:$0xf] %v6554_v36  ;;  %v6200_v1 = vld [vmem:[#allocation8 + $0xb0] sm:$0xff]   ;;  %v1505_v2 = vor.u32 %v1504_v61, %v1500_v60  ;;  %v6201_v3 = vld [vmem:[#allocation8 + $0x78] sm:$0xff]  }
  0xbf   : > { %902 = vst [vmem:[#allocation2 + $0xb8] sm:$0xf] %v6554_v36  ;;  %903 = vst [vmem:[#allocation2 + $0xbc] sm:$0x1] %v6554_v36  ;;  %5353 = vmatpush3.bf16.msra.mxu1 %v6198_v58  ;;  %vm1485_vm0 = vsmask.f32 3328 }
  0xc0   : > { %5875 = vmatpush3.bf16.msra.mxu0 %v6156_v8  ;;  %904 = vst [vmem:[#allocation2 + $0xc0] sm:$0xf] %v6554_v36  ;;  %905 = vst [vmem:[#allocation2 + $0xc4] sm:$0xf] %v6554_v36  ;;  %vm1486_vm1 = vsmask.f32 7440  ;;  %5354 = vmatprep.subr.bf16.mxu1 %v6201_v3 }
  0xc1   : > { %5452 = vmatprep.subr.bf16.mxu0 %v6175_v11  ;;  %906 = vst [vmem:[#allocation2 + $0xc8] sm:$0x1] %v6554_v36  ;;  %907 = vst [vmem:[#allocation2 + $0xcc] sm:$0xf] %v6554_v36  ;;  %v1496_v4 = vrot.slane %v1495_v63, 4  ;;  %v6202_v5 = vld [vmem:[#allocation8 + $0x38] sm:$0xff]  }
  0xc2   : > { %908 = vst [vmem:[#allocation2 + $0xd0] sm:$0xf] %v6554_v36  ;;  %909 = vst [vmem:[#allocation2 + $0xd4] sm:$0x1] %v6554_v36  ;;  %v1506_v7 = vrot.slane %v1505_v2, 4  ;;  %v1510_v8 = vrot.slane %v1508_v0, 5 }
  0xc3   : > { %5877 = vmatmul.mubr.bf16.vlgmr.msra.gmra.mrb[0].mxu0 %v6158_v12  ;;  %vm6877_vm2 = vmor %vm1485_vm0, %vm1486_vm1  ;;  %v1925_v9 = vrot.slane %v1432_v49, 5  ;;  %v6203_v10 = vld [vmem:[#allocation8 + $0xf8] sm:$0xff]   ;;  %5355 = vmatpush3.bf16.msra.mxu1 %v6202_v5  ;;  %v4792_v13 = vrot.slane %v1431_v47, 9  ;;  %v6225_v32 = vld [vmem:[#allocation8 + $0x160] sm:$0xff]   ;;  %vm1315_vm7 = vsmask.f32 7938 }
  0xc4   : > { %5880 = vmatprep.mubr.bf16.mxu0 %v6159_v14  ;;  %5453 = vmatpush3.bf16.msra.mxu0 %v6176_v15  ;;  %v1501_v11 = vsel %vm6877_vm2, %v1496_v4, %v1500_v60  ;;  %v1511_v12 = vsel %vm6877_vm2, %v1506_v7, %v1510_v8  ;;  %v6204_v14 = vld [vmem:[#allocation8 + $0xb8] sm:$0xff]   ;;  %vm6885_vm5 = vmor %vm1920_vm3, %vm1921_vm4  ;;  %v6902_v33 = vld [vmem:[%s8235_s2] ss:$0 sm:$0xff]  ;;  %vm990_vm8 = vsmask.f32 256  ;;  %s6445_s26 = scalar_lea.vmem %s6444_s23, 4096 }
  0xc5   : > { %5454 = vmatprep.subr.bf16.mxu0 %v6179_v30  ;;  %v4826_v15 = vcombine.low %v1501_v11, %v1511_v12  ;;  %v6221_v30 = vld [vmem:[#allocation8 + $0x118] sm:$0xff]   ;;  %vm991_vm9 = vsmask.f32 4368  ;;  %vm6911_vm11 = vmand %vm1314_vm6, %vm1315_vm7  ;;  %v1317_v7 = vld [vmem:[#allocation2 + $0xc] sm:$0xf]  ;;  %p6447_p1 = scmp.lt.s32.totalorder %s6445_s26, %s6439_s30 }
  0xc6   : > { %vm6918_vm12 = vmor %vm990_vm8, %vm991_vm9 }
  0xc7   : > { %2934 = vmatprep.mubr.bf16.mxu1 %v4826_v15  ;;  %vm6924_vm13 = vmand %vm1321_vm10, %vm990_vm8  ;;  %v1330_v15 = vld [vmem:[#allocation2 + $0x20] sm:$0x1]  ;;  %p6448_p2 = por %p6447_p1, %p6446_p12 }
  0xc8   : > { %5455 = vmatpush3.bf16.msra.mxu0 %v6180_v31  ;;  %2935 = vmatmul.mubr.bf16.vlgmr.msra.gmra.mrb[0].mxu1 %v4810_v16  ;;  %v6223_v31 = vld [vmem:[#allocation8 + $0x1c0] sm:$0xff]  }
  0xc9   : > { %5456 = vmatprep.subr.bf16.mxu0 %v6183_v34  ;;  %v6227_v34 = vld [vmem:[#allocation8 + $0x120] sm:$0xff]   ;;  %p6449_p13 = pnand %p6448_p2, %p6442_p7 }
  0xcb   : > { %5881 = vmatmul.mubr.bf16.gmra.mrb[4].mxu0 %v6160_v17 }
  0xcc   : > { %5884 = vmatprep.mubr.bf16.mxu0 %v6161_v18  ;;  %5457 = vmatpush3.bf16.msra.mxu0 %v6184_v35  ;;  %v1927_v18 = vrot.slane %v1925_v9, 4 }
  0xcd   : > { %5458 = vmatprep.subr.bf16.mxu0 %v6187_v39 }
  0xd0   : > { %5459 = vmatpush3.bf16.msra.mxu0 %v6188_v40 }
  0xd1   : > { %5460 = vmatprep.subr.bf16.mxu0 %v6191_v43 }
  0xd3   : > { %5885 = vmatmul.mubr.bf16.gmra.mrb[8].mxu0 %v6162_v19  ;;  %v1928_v19 = vrot.slane %v1433_v59, 5 }
  0xd4   : > { %5888 = vmatprep.mubr.bf16.mxu0 %v6163_v20  ;;  %5461 = vmatpush3.bf16.msra.mxu0 %v6192_v44  ;;  %v6891_v20 = vsel %vm6885_vm5, %v4792_v13, %v1925_v9 }
  0xd5   : > { %5462 = vmatprep.subr.bf16.mxu0 %v6195_v48 }
  0xd8   : > { %5463 = vmatpush3.bf16.msra.mxu0 %v6196_v52 }
  0xd9   : > { %5464 = vmatprep.subr.bf16.mxu0 %v6199_v62  ;;  %v1326_v62 = vld [vmem:[#allocation2 + $0x18] sm:$0xf] }
  0xdb   : > { %5889 = vmatmul.mubr.bf16.gmra.mrb[12].mxu0 %v6164_v21  ;;  %v6895_v21 = vsel %vm6885_vm5, %v1927_v18, %v1928_v19 }
  0xdc   : > { %5892 = vmatprep.mubr.bf16.mxu0 %v6165_v22  ;;  %5465 = vmatpush3.bf16.msra.mxu0 %v6200_v1  ;;  %v4842_v22 = vcombine.low %v6891_v20, %v6895_v21  ;;  %v6230_v20 = vld [vmem:[#allocation8 + $0x188] sm:$0xff]  }
  0xdd   : > { %5466 = vmatprep.subr.bf16.mxu0 %v6203_v10 }
  0xe0   : > { %5467 = vmatpush3.bf16.msra.mxu0 %v6204_v14 }
  0xe1   : > { %5676 = vmatprep.subr.bf16.mxu0 %v6223_v31 }
  0xe3   : > { %5893 = vmatmul.mubr.bf16.gmra.mrb[16].mxu0 %v6166_v23  ;;  %v6207_v23 = vld [vmem:[#allocation8 + $0x140] sm:$0xff]  }
  0xe4   : > { %5896 = vmatprep.mubr.bf16.mxu0 %v6167_v24  ;;  %v6209_v24 = vld [vmem:[#allocation8 + $0x100] sm:$0xff]   ;;  %5564 = vmatprep.subr.bf16.mxu1 %v6207_v23 }
  0xe5   : > { %5565 = vmatpush3.bf16.msra.mxu1 %v6209_v24 }
  0xeb   : > { %5897 = vmatmul.mubr.bf16.gmra.mrb[20].mxu0 %v6168_v25  ;;  %v6211_v25 = vld [vmem:[#allocation8 + $0x148] sm:$0xff]  }
  0xec   : > { %5900 = vmatprep.mubr.bf16.mxu0 %v6169_v26  ;;  %v6213_v26 = vld [vmem:[#allocation8 + $0x108] sm:$0xff]   ;;  %5566 = vmatprep.subr.bf16.mxu1 %v6211_v25  ;;  %v1323_v25 = vld [vmem:[#allocation2 + $0x14] sm:$0x1] }
  0xed   : > { %5567 = vmatpush3.bf16.msra.mxu1 %v6213_v26 }
  0xf3   : > { %5901 = vmatmul.mubr.bf16.gmra.mrb[24].mxu0 %v6170_v27  ;;  %v6215_v27 = vld [vmem:[#allocation8 + $0x150] sm:$0xff]  }
  0xf4   : > { %5904 = vmatprep.mubr.bf16.mxu0 %v6171_v28  ;;  %v6217_v28 = vld [vmem:[#allocation8 + $0x110] sm:$0xff]   ;;  %5568 = vmatprep.subr.bf16.mxu1 %v6215_v27 }
  0xf5   : > { %5569 = vmatpush3.bf16.msra.mxu1 %v6217_v28 }
  0xfb   : > { %5905 = vmatmul.mubr.bf16.gmra.mrb[28].mxu0 %v6172_v29  ;;  %v6219_v29 = vld [vmem:[#allocation8 + $0x158] sm:$0xff]  }
  0xfc   : > { %5570 = vmatprep.subr.bf16.mxu1 %v6219_v29 }
  0xfd   : > { %5571 = vmatpush3.bf16.msra.mxu1 %v6221_v30 }
  0xfe   : > { %5572 = vmatprep.subr.bf16.mxu1 %v6225_v32 }
 0x101   : > { %5573 = vmatpush3.bf16.msra.mxu1 %v6227_v34 }
 0x196   : > { %v5878_v35 = vpop.f32.mrb[0].mxu0 }
 0x197   : > { %v690_v36 = vadd.f32 %v5878_v35, %v6902_v33  ;;  %v681_v37 = vpop.f32.mrb[1].mxu0 }
 0x198   : > { %v682_v38 = vadd.f32 %v6902_v33, %v681_v37  ;;  %v5879_v39 = vpop.f32.mrb[2].mxu0 }
 0x199   : > { %v810_v40 = vmax.f32 %v690_v36, 0.0  ;;  %v693_v41 = vadd.f32 %v5879_v39, %v6902_v33  ;;  %v684_v42 = vpop.f32.mrb[3].mxu0 }
 0x19a   : > { %v808_v43 = vmax.f32 %v682_v38, 0.0  ;;  %v685_v44 = vadd.f32 %v6902_v33, %v684_v42 }
 0x19b   : > { %v5030_v45 = vpack.c.bf16 %v810_v40, %v810_v40  ;;  %v811_v46 = vmax.f32 %v693_v41, 0.0 }
 0x19c   : > { %v5028_v47 = vpack.c.bf16 %v808_v43, %v808_v43  ;;  %v809_v48 = vmax.f32 %v685_v44, 0.0 }
 0x19d   : > { %v1011_v49 = vshrl.u32 %v5030_v45, 16  ;;  %v5031_v50 = vpack.c.bf16 %v811_v46, %v811_v46  ;;  %v1014_v51 = vshll.u32 %v5030_v45, 16  ;;  %v1340_v46 = vld [vmem:[#allocation2 + $0x30] sm:$0xf] }
 0x19e   : > { %v994_v52 = vshrl.u32 %v5028_v47, 16  ;;  %v997_v53 = vshll.u32 %v5028_v47, 16  ;;  %v5029_v54 = vpack.c.bf16 %v809_v48, %v809_v48  ;;  %v5882_v55 = vpop.f32.mrb[4].mxu0 }
 0x19f   : > { %v1013_v56 = vrot.slane %v1011_v49, 7  ;;  %v1019_v57 = vshrl.u32 %v5031_v50, 16  ;;  %v1022_v58 = vshll.u32 %v5031_v50, 16  ;;  %v706_v59 = vadd.f32 %v5882_v55, %v6902_v33  ;;  %v697_v60 = vpop.f32.mrb[5].mxu0 }
 0x1a0   : > { %v996_v63 = vrot.slane %v994_v52, 7  ;;  %v1002_v0 = vshrl.u32 %v5029_v54, 16  ;;  %v1005_v1 = vshll.u32 %v5029_v54, 16  ;;  %v698_v2 = vadd.f32 %v6902_v33, %v697_v60  ;;  %v5883_v3 = vpop.f32.mrb[6].mxu0  ;;  %v1333_v52 = vld [vmem:[#allocation2 + $0x24] sm:$0xf] }
 0x1a1   : > { %v1016_v4 = vor.u32 %v1014_v51, %v1013_v56  ;;  %v1017_v5 = vrot.slane %v1013_v56, 4  ;;  %v1021_v9 = vrot.slane %v1019_v57, 7  ;;  %v814_v10 = vmax.f32 %v706_v59, 0.0  ;;  %v700_v11 = vpop.f32.mrb[7].mxu0  ;;  %v6231_v60 = vld [vmem:[#allocation8 + $0x168] sm:$0xff]  }
 0x1a2   : > { %v999_v12 = vor.u32 %v997_v53, %v996_v63  ;;  %v1000_v13 = vrot.slane %v996_v63, 4  ;;  %v1004_v16 = vrot.slane %v1002_v0, 7  ;;  %v812_v18 = vmax.f32 %v698_v2, 0.0  ;;  %5574 = vmatprep.subr.bf16.mxu1 %v6231_v60 }
 0x1a3   : > { %v1327_v19 = vsel %vm6911_vm11, %v1016_v4, %v1326_v62  ;;  %v1024_v23 = vor.u32 %v1022_v58, %v1021_v9  ;;  %v1026_v24 = vrot.slane %v1021_v9, 4  ;;  %v5034_v26 = vpack.c.bf16 %v814_v10, %v814_v10  ;;  %v6233_v62 = vld [vmem:[#allocation8 + $0x128] sm:$0xff]  }
 0x1a4   : > { %1328 = vst [vmem:[#allocation2 + $0x18] sm:$0xf] %v1327_v19  ;;  %v1318_v27 = vsel %vm6911_vm11, %v999_v12, %v1317_v7  ;;  %v1007_v28 = vor.u32 %v1005_v1, %v1004_v16  ;;  %v1009_v29 = vrot.slane %v1004_v16, 4  ;;  %v5032_v30 = vpack.c.bf16 %v812_v18, %v812_v18  ;;  %5575 = vmatpush3.bf16.msra.mxu1 %v6233_v62  ;;  %v1337_v16 = vld [vmem:[#allocation2 + $0x2c] sm:$0x1] }
 0x1a5   : > { %1319 = vst [vmem:[#allocation2 + $0xc] sm:$0xf] %v1318_v27  ;;  %v1025_v31 = vsel %vm6918_vm12, %v1017_v5, %v1024_v23  ;;  %v1331_v32 = vsel %vm6924_vm13, %v1026_v24, %v1330_v15  ;;  %v1045_v34 = vshrl.u32 %v5034_v26, 16  ;;  %v1048_v35 = vshll.u32 %v5034_v26, 16  ;;  %v1344_v15 = vld [vmem:[#allocation2 + $0x38] sm:$0x1] }
 0x1a6   : > { %1329 = vst [vmem:[#allocation2 + $0x1c] sm:$0xf] %v1025_v31  ;;  %1332 = vst [vmem:[#allocation2 + $0x20] sm:$0x1] %v1331_v32  ;;  %v1008_v36 = vsel %vm6918_vm12, %v1000_v13, %v1007_v28  ;;  %v1324_v37 = vsel %vm6924_vm13, %v1009_v29, %v1323_v25  ;;  %v1028_v38 = vshrl.u32 %v5032_v30, 16  ;;  %v1031_v39 = vshll.u32 %v5032_v30, 16 }
 0x1a7   : > { %v5886_v40 = vpop.f32.mrb[8].mxu0  ;;  %1320 = vst [vmem:[#allocation2 + $0x10] sm:$0xf] %v1008_v36  ;;  %1325 = vst [vmem:[#allocation2 + $0x14] sm:$0x1] %v1324_v37  ;;  %v6940_v41 = vrot.slane %v1045_v34, 7  ;;  %v709_v42 = vadd.f32 %v5883_v3, %v6902_v33  ;;  %v701_v43 = vadd.f32 %v6902_v33, %v700_v11 }
 0x1a8   : > { %v722_v44 = vadd.f32 %v5886_v40, %v6902_v33  ;;  %v713_v45 = vpop.f32.mrb[9].mxu0  ;;  %v6945_v47 = vrot.slane %v1028_v38, 7  ;;  %v1354_v27 = vld [vmem:[#allocation2 + $0x48] sm:$0xf]  ;;  %v1347_v32 = vld [vmem:[#allocation2 + $0x3c] sm:$0xf] }
 0x1a9   : > { %v714_v48 = vadd.f32 %v6902_v33, %v713_v45  ;;  %v5887_v49 = vpop.f32.mrb[10].mxu0  ;;  %v1050_v50 = vor.u32 %v1048_v35, %v6940_v41  ;;  %v1051_v51 = vrot.slane %v6940_v41, 4  ;;  %v815_v53 = vmax.f32 %v709_v42, 0.0 }
 0x1aa   : > { %v813_v54 = vmax.f32 %v701_v43, 0.0  ;;  %v716_v55 = vpop.f32.mrb[11].mxu0  ;;  %v1033_v56 = vor.u32 %v1031_v39, %v6945_v47  ;;  %v1034_v57 = vrot.slane %v6945_v47, 4  ;;  %v818_v58 = vmax.f32 %v722_v44, 0.0 }
 0x1ab   : > { %v816_v59 = vmax.f32 %v714_v48, 0.0  ;;  %v1341_v63 = vsel %vm6911_vm11, %v1050_v50, %v1340_v46  ;;  %v5035_v0 = vpack.c.bf16 %v815_v53, %v815_v53  ;;  %v725_v2 = vadd.f32 %v5887_v49, %v6902_v33  ;;  %v6966_v40 = vld [vmem:[#allocation2 + $0x18] sm:$0xf] }
 0x1ac   : > { %v5033_v1 = vpack.c.bf16 %v813_v54, %v813_v54  ;;  %1342 = vst [vmem:[#allocation2 + $0x30] sm:$0xf] %v1341_v63  ;;  %v1334_v3 = vsel %vm6911_vm11, %v1033_v56, %v1333_v52  ;;  %v5038_v4 = vpack.c.bf16 %v818_v58, %v818_v58  ;;  %v717_v7 = vadd.f32 %v6902_v33, %v716_v55  ;;  %v6958_v13 = vld [vmem:[#allocation2 + $0xc] sm:$0xf] }
 0x1ad   : > { %v5036_v5 = vpack.c.bf16 %v816_v59, %v816_v59  ;;  %1335 = vst [vmem:[#allocation2 + $0x24] sm:$0xf] %v1334_v3  ;;  %v1053_v9 = vshrl.u32 %v5035_v0, 16  ;;  %v1056_v10 = vshll.u32 %v5035_v0, 16  ;;  %v819_v28 = vmax.f32 %v725_v2, 0.0 }
 0x1ae   : > { %v1036_v11 = vshrl.u32 %v5033_v1, 16  ;;  %v1039_v12 = vshll.u32 %v5033_v1, 16  ;;  %v1079_v18 = vshrl.u32 %v5038_v4, 16  ;;  %v1082_v19 = vshll.u32 %v5038_v4, 16  ;;  %v6968_v41 = vpop.f32.mrb[12].mxu0  ;;  %v6224_v1 = vld [vmem:[#allocation8 + $0x180] sm:$0xff]  }
 0x1af   : > { %v1062_v23 = vshrl.u32 %v5036_v5, 16  ;;  %v1065_v24 = vshll.u32 %v5036_v5, 16  ;;  %v1055_v25 = vrot.slane %v1053_v9, 7  ;;  %v817_v29 = vmax.f32 %v717_v7, 0.0  ;;  %v6974_v46 = vld [vmem:[#allocation2 + $0x10] sm:$0xf] }
 0x1b0   : > { %v1038_v26 = vrot.slane %v1036_v11, 7  ;;  %v6960_v30 = vrot.slane %v1079_v18, 7  ;;  %v1513_v34 = vshrl.u32 %v6958_v13, 16  ;;  %v1516_v35 = vshll.u32 %v6958_v13, 16  ;;  %v6976_v47 = vpop.f32.mrb[13].mxu0  ;;  %v6229_v9 = vld [vmem:[#allocation8 + $0x1c8] sm:$0xff]  }
 0x1b1   : > { %v6962_v31 = vrot.slane %v1062_v23, 7  ;;  %v1058_v36 = vor.u32 %v1056_v10, %v1055_v25  ;;  %v1060_v37 = vrot.slane %v1055_v25, 4  ;;  %v6986_v53 = vpop.f32.mrb[14].mxu0  ;;  %v5039_v55 = vpack.c.bf16 %v819_v28, %v819_v28  ;;  %v6992_v58 = vld [vmem:[#allocation2 + $0x1c] sm:$0xf]  ;;  %v6237_v28 = vld [vmem:[#allocation8 + $0x170] sm:$0xff]  }
 0x1b2   : > { %v1041_v38 = vor.u32 %v1039_v12, %v1038_v26  ;;  %v1043_v39 = vrot.slane %v1038_v26, 4  ;;  %v1084_v42 = vor.u32 %v1082_v19, %v6960_v30  ;;  %v1085_v43 = vrot.slane %v6960_v30, 4  ;;  %v7003_v0 = vld [vmem:[#allocation2 + $0x14] sm:$0x1]  ;;  %v1358_v10 = vld [vmem:[#allocation2 + $0x50] sm:$0x1]  ;;  %5576 = vmatprep.subr.bf16.mxu1 %v6237_v28 }
 0x1b3   : > { %v1067_v44 = vor.u32 %v1065_v24, %v6962_v31  ;;  %v1068_v45 = vrot.slane %v6962_v31, 4  ;;  %v1059_v48 = vsel %vm6918_vm12, %v1051_v51, %v1058_v36  ;;  %v1345_v49 = vsel %vm6924_vm13, %v1060_v37, %v1344_v15  ;;  %v1351_v11 = vld [vmem:[#allocation2 + $0x44] sm:$0x1] }
 0x1b4   : > { %v1042_v50 = vsel %vm6918_vm12, %v1034_v57, %v1041_v38  ;;  %v1338_v52 = vsel %vm6924_vm13, %v1043_v39, %v1337_v16  ;;  %1343 = vst [vmem:[#allocation2 + $0x34] sm:$0xf] %v1059_v48  ;;  %1346 = vst [vmem:[#allocation2 + $0x38] sm:$0x1] %v1345_v49  ;;  %v1355_v54 = vsel %vm6911_vm11, %v1084_v42, %v1354_v27  ;;  %v6994_v57 = vpop.f32.mrb[15].mxu0  ;;  %v1526_v59 = vshrl.u32 %v6974_v46, 16 }
 0x1b5   : > { %1336 = vst [vmem:[#allocation2 + $0x28] sm:$0xf] %v1042_v50  ;;  %1339 = vst [vmem:[#allocation2 + $0x2c] sm:$0x1] %v1338_v52  ;;  %v1348_v51 = vsel %vm6911_vm11, %v1067_v44, %v1347_v32  ;;  %v5037_v56 = vpack.c.bf16 %v817_v29, %v817_v29  ;;  %v6999_v60 = vcombine.low %v6958_v13, %v6974_v46  ;;  %v1537_v62 = vshrl.u32 %v6966_v40, 16  ;;  %v6235_v39 = vld [vmem:[#allocation8 + $0x1d0] sm:$0xff]  }
 0x1b6   : > { %1356 = vst [vmem:[#allocation2 + $0x48] sm:$0xf] %v1355_v54  ;;  %1349 = vst [vmem:[#allocation2 + $0x3c] sm:$0xf] %v1348_v51  ;;  %v1540_v63 = vshll.u32 %v6966_v40, 16  ;;  %v1087_v2 = vshrl.u32 %v5039_v55, 16  ;;  %v7011_v15 = vcombine.low %v6966_v40, %v6992_v58 }
 0x1b7   : > { %v1090_v3 = vshll.u32 %v5039_v55, 16  ;;  %v1070_v4 = vshrl.u32 %v5037_v56, 16  ;;  %v1073_v5 = vshll.u32 %v5037_v56, 16  ;;  %v7005_v7 = vpop.f32.mrb[16].mxu0  ;;  %3095 = vmatprep.mubr.bf16.mxu0 %v6999_v60  ;;  %v1550_v12 = vshrl.u32 %v6992_v58, 16 }
 0x1b8   : > { %v1515_v16 = vrot.slane %v1513_v34, 4  ;;  %v1518_v18 = vrot.slane %v1516_v35, 5  ;;  %v7013_v19 = vpop.f32.mrb[17].mxu0  ;;  %v1089_v23 = vrot.slane %v1087_v2, 7  ;;  %3096 = vmatmul.mubr.bf16.vlgmr.msra.gmra.mrb[32].mxu0 %v4842_v22  ;;  %v1522_v25 = vshll.u32 %v6974_v46, 16 }
 0x1b9   : > { %v1072_v24 = vrot.slane %v1070_v4, 7  ;;  %v1528_v26 = vrot.slane %v1526_v59, 4  ;;  %v7019_v27 = vpop.f32.mrb[18].mxu0  ;;  %3103 = vmatprep.mubr.bf16.mxu0 %v7011_v15  ;;  %v1532_v32 = vshll.u32 %v7003_v0, 16  ;;  %v4793_v34 = vrot.slane %v6958_v13, 9  ;;  %5677 = vmatpush3.bf16.msra.mxu0 %v6224_v1 }
 0x1ba   : > { %v1519_v29 = vor.u32 %v1518_v18, %v1515_v16  ;;  %v1932_v35 = vrot.slane %v6974_v46, 5  ;;  %v7025_v36 = vpop.f32.mrb[19].mxu0  ;;  %v1092_v21 = vor.u32 %v1090_v3, %v1089_v23  ;;  %v1094_v22 = vrot.slane %v1089_v23, 4  ;;  %5678 = vmatprep.subr.bf16.mxu0 %v6229_v9  ;;  %v7041_v54 = vld [vmem:[#allocation2 + $0x20] sm:$0x1] }
 0x1bb   : > { %v1075_v37 = vor.u32 %v1073_v5, %v1072_v24  ;;  %v1077_v38 = vrot.slane %v1072_v24, 4  ;;  %v1524_v44 = vrot.slane %v1522_v25, 5  ;;  %v1534_v48 = vrot.slane %v1532_v32, 5  ;;  %v7043_v51 = vld [vmem:[#allocation2 + $0x24] sm:$0xf]  ;;  %v6239_v5 = vld [vmem:[#allocation8 + $0x130] sm:$0xff]  }
 0x1bc   : > { %v1520_v42 = vrot.slane %v1519_v29, 4  ;;  %v1933_v49 = vsel %vm6885_vm5, %v4793_v34, %v1932_v35  ;;  %v1093_v13 = vsel %vm6918_vm12, %v1085_v43, %v1092_v21  ;;  %v1359_v46 = vsel %vm6924_vm13, %v1094_v22, %v1358_v10  ;;  %v7048_v56 = vld [vmem:[#allocation2 + $0x28] sm:$0xf]  ;;  %5577 = vmatpush3.bf16.msra.mxu1 %v6239_v5 }
 0x1bd   : > { %v1076_v50 = vsel %vm6918_vm12, %v1068_v45, %v1075_v37  ;;  %v1352_v52 = vsel %vm6924_vm13, %v1077_v38, %v1351_v11  ;;  %1357 = vst [vmem:[#allocation2 + $0x4c] sm:$0xf] %v1093_v13  ;;  %1360 = vst [vmem:[#allocation2 + $0x50] sm:$0x1] %v1359_v46  ;;  %v1529_v43 = vor.u32 %v1528_v26, %v1524_v44  ;;  %v1934_v55 = vrot.slane %v1932_v35, 4  ;;  %v6236_v45 = vld [vmem:[#allocation8 + $0x190] sm:$0xff]  }
 0x1be   : > { %1350 = vst [vmem:[#allocation2 + $0x40] sm:$0xf] %v1076_v50  ;;  %1353 = vst [vmem:[#allocation2 + $0x44] sm:$0x1] %v1352_v52  ;;  %v1525_v30 = vsel %vm6877_vm2, %v1520_v42, %v1524_v44  ;;  %v1935_v31 = vrot.slane %v7003_v0, 5  ;;  %5679 = vmatpush3.bf16.msra.mxu0 %v6230_v20  ;;  %v1539_v59 = vrot.slane %v1537_v62, 4  ;;  %v7069_v28 = vcombine.low %v7043_v51, %v7048_v56 }
 0x1bf   : > { %v1542_v1 = vrot.slane %v1540_v63, 5  ;;  %v1546_v2 = vshll.u32 %v6992_v58, 16  ;;  %v1552_v3 = vrot.slane %v1550_v12, 4  ;;  %v7051_v4 = vpop.f32.mrb[20].mxu0  ;;  %5680 = vmatprep.subr.bf16.mxu0 %v6235_v39  ;;  %v1530_v9 = vrot.slane %v1529_v43, 4 }
 0x1c0   : > { %v1936_v10 = vsel %vm6885_vm5, %v1934_v55, %v1935_v31  ;;  %v1556_v11 = vshll.u32 %v7041_v54, 16  ;;  %v1561_v0 = vshrl.u32 %v7043_v51, 16  ;;  %v7057_v16 = vpop.f32.mrb[21].mxu0  ;;  %v1564_v12 = vshll.u32 %v7043_v51, 16  ;;  %v7092_v13 = vld [vmem:[#allocation2 + $0x30] sm:$0xf] }
 0x1c1   : > { %v7059_v18 = vcombine.low %v1933_v49, %v1936_v10  ;;  %v1543_v62 = vor.u32 %v1542_v1, %v1539_v59  ;;  %v1548_v63 = vrot.slane %v1546_v2, 5  ;;  %v7062_v23 = vpop.f32.mrb[22].mxu0  ;;  %v1535_v24 = vsel %vm6877_vm2, %v1530_v9, %v1534_v48  ;;  %v7102_v55 = vld [vmem:[#allocation2 + $0x34] sm:$0xf]  ;;  %v6244_v10 = vld [vmem:[#allocation8 + $0x1e0] sm:$0xff]  }
 0x1c2   : > { %v1558_v25 = vrot.slane %v1556_v11, 5  ;;  %v1574_v26 = vshrl.u32 %v7048_v56, 16  ;;  %v7071_v29 = vpop.f32.mrb[23].mxu0  ;;  %5681 = vmatpush3.bf16.msra.mxu0 %v6236_v45  ;;  %v7073_v32 = vcombine.low %v1525_v30, %v1535_v24  ;;  %v738_v20 = vadd.f32 %v6968_v41, %v6902_v33  ;;  %v6241_v31 = vld [vmem:[#allocation8 + $0x1d8] sm:$0xff]  }
 0x1c3   : > { %3104 = vmatmul.mubr.bf16.gmra.mrb[36].mxu0 %v7059_v18  ;;  %v1544_v34 = vrot.slane %v1543_v62, 4  ;;  %v1553_v35 = vor.u32 %v1552_v3, %v1548_v63  ;;  %v730_v21 = vadd.f32 %v6902_v33, %v6976_v47  ;;  %v741_v22 = vadd.f32 %v6986_v53, %v6902_v33  ;;  %v6242_v45 = vld [vmem:[#allocation8 + $0x198] sm:$0xff]   ;;  %5682 = vmatprep.subr.bf16.mxu0 %v6241_v31  ;;  %v6248_v31 = vld [vmem:[#allocation8 + $0x1e8] sm:$0xff]  }
 0x1c4   : > { %3111 = vmatprep.mubr.bf16.mxu0 %v7069_v28  ;;  %v733_v37 = vadd.f32 %v6902_v33, %v6994_v57  ;;  %v4794_v38 = vrot.slane %v6966_v40, 9  ;;  %2942 = vmatprep.mubr.bf16.mxu1 %v7073_v32  ;;  %v822_v41 = vmax.f32 %v738_v20, 0.0  ;;  %v1939_v44 = vrot.slane %v6992_v58, 5  ;;  %v6243_v9 = vld [vmem:[#allocation8 + $0x178] sm:$0xff]  }
 0x1c5   : > { %v1549_v39 = vsel %vm6877_vm2, %v1544_v34, %v1548_v63  ;;  %v1554_v42 = vrot.slane %v1553_v35, 4  ;;  %2943 = vmatmul.mubr.bf16.gmra.mrb[4].mxu1 %v6999_v60  ;;  %v820_v47 = vmax.f32 %v730_v21, 0.0  ;;  %v823_v48 = vmax.f32 %v741_v22, 0.0  ;;  %v1368_v35 = vld [vmem:[#allocation2 + $0x60] sm:$0xf]  ;;  %5578 = vmatprep.subr.bf16.mxu1 %v6243_v9 }
 0x1c6   : > { %v821_v49 = vmax.f32 %v733_v37, 0.0  ;;  %v1942_v53 = vrot.slane %v7041_v54, 5  ;;  %v5042_v57 = vpack.c.bf16 %v822_v41, %v822_v41  ;;  %v1940_v46 = vsel %vm6885_vm5, %v4794_v38, %v1939_v44  ;;  %v7098_v52 = vpop.f32.mrb[24].mxu0  ;;  %5683 = vmatpush3.bf16.msra.mxu0 %v6242_v45  ;;  %v1361_v38 = vld [vmem:[#allocation2 + $0x54] sm:$0xf] }
 0x1c7   : > { %v1559_v40 = vsel %vm6877_vm2, %v1554_v42, %v1558_v25  ;;  %v1941_v50 = vrot.slane %v1939_v44, 4  ;;  %v5040_v60 = vpack.c.bf16 %v820_v47, %v820_v47  ;;  %v5043_v30 = vpack.c.bf16 %v823_v48, %v823_v48  ;;  %v7104_v54 = vpop.f32.mrb[25].mxu0  ;;  %5684 = vmatprep.subr.bf16.mxu0 %v6244_v10  ;;  %v1372_v48 = vld [vmem:[#allocation2 + $0x68] sm:$0x1] }
 0x1c8   : > { %v7100_v58 = vcombine.low %v1549_v39, %v1559_v40  ;;  %v5041_v43 = vpack.c.bf16 %v821_v49, %v821_v49  ;;  %v1113_v59 = vshrl.u32 %v5042_v57, 16  ;;  %v1116_v1 = vshll.u32 %v5042_v57, 16  ;;  %v7109_v5 = vpop.f32.mrb[26].mxu0  ;;  %v6246_v40 = vld [vmem:[#allocation8 + $0x138] sm:$0xff]   ;;  %v6247_v57 = vld [vmem:[#allocation8 + $0x1a0] sm:$0xff]  }
 0x1c9   : > { %v1943_v2 = vsel %vm6885_vm5, %v1941_v50, %v1942_v53  ;;  %v1585_v3 = vshrl.u32 %v7092_v13, 16  ;;  %v1096_v11 = vshrl.u32 %v5040_v60, 16  ;;  %v1099_v62 = vshll.u32 %v5040_v60, 16  ;;  %v7112_v25 = vpop.f32.mrb[27].mxu0  ;;  %5579 = vmatpush3.bf16.msra.mxu1 %v6246_v40 }
 0x1ca   : > { %2950 = vmatprep.mubr.bf16.mxu1 %v7100_v58  ;;  %v1121_v63 = vshrl.u32 %v5043_v30, 16  ;;  %v1124_v24 = vshll.u32 %v5043_v30, 16  ;;  %v1115_v34 = vrot.slane %v1113_v59, 7  ;;  %v1104_v20 = vshrl.u32 %v5041_v43, 16  ;;  %5685 = vmatpush3.bf16.msra.mxu0 %v6247_v57 }
 0x1cb   : > { %v1107_v21 = vshll.u32 %v5041_v43, 16  ;;  %v7114_v22 = vcombine.low %v1940_v46, %v1943_v2  ;;  %v1098_v37 = vrot.slane %v1096_v11, 7  ;;  %v1588_v42 = vshll.u32 %v7092_v13, 16  ;;  %v1365_v43 = vld [vmem:[#allocation2 + $0x5c] sm:$0x1]  ;;  %5686 = vmatprep.subr.bf16.mxu0 %v6248_v31 }
 0x1cc   : > { %v1123_v39 = vrot.slane %v1121_v63, 7  ;;  %v1598_v41 = vshrl.u32 %v7102_v55, 16  ;;  %v1118_v44 = vor.u32 %v1116_v1, %v1115_v34  ;;  %v1119_v47 = vrot.slane %v1115_v34, 4  ;;  %v1442_v2 = vld [vmem:[#allocation2 + $0x2c] sm:$0x1] }
 0x1cd   : > { %v1106_v49 = vrot.slane %v1104_v20, 7  ;;  %3112 = vmatmul.mubr.bf16.gmra.mrb[40].mxu0 %v7114_v22  ;;  %v7121_v53 = vcombine.low %v7092_v13, %v7102_v55  ;;  %v1101_v46 = vor.u32 %v1099_v62, %v1098_v37  ;;  %v1102_v50 = vrot.slane %v1098_v37, 4  ;;  %2951 = vmatmul.mubr.bf16.gmra.mrb[8].mxu1 %v7011_v15 }
 0x1ce   : > { %v1126_v60 = vor.u32 %v1124_v24, %v1123_v39  ;;  %v1128_v30 = vrot.slane %v1123_v39, 4  ;;  %v1369_v45 = vsel %vm6911_vm11, %v1118_v44, %v1368_v35  ;;  %v1563_v9 = vrot.slane %v1561_v0, 4  ;;  %v7129_v10 = vpop.f32.mrb[28].mxu0  ;;  %v6249_v0 = vld [vmem:[#allocation8 + $0x1a8] sm:$0xff]  }
 0x1cf   : > { %v1109_v59 = vor.u32 %v1107_v21, %v1106_v49  ;;  %v1111_v1 = vrot.slane %v1106_v49, 4  ;;  %3119 = vmatprep.mubr.bf16.mxu0 %v7121_v53  ;;  %1370 = vst [vmem:[#allocation2 + $0x60] sm:$0xf] %v1369_v45  ;;  %v1362_v11 = vsel %vm6911_vm11, %v1101_v46, %v1361_v38  ;;  %v1566_v24 = vrot.slane %v1564_v12, 5  ;;  %v7139_v34 = vpop.f32.mrb[29].mxu0  ;;  %v6250_v12 = vld [vmem:[#allocation8 + $0x1f0] sm:$0xff]   ;;  %5687 = vmatpush3.bf16.msra.mxu0 %v6249_v0 }
 0x1d0   : > { %v1127_v62 = vsel %vm6918_vm12, %v1119_v47, %v1126_v60  ;;  %v1373_v63 = vsel %vm6924_vm13, %v1128_v30, %v1372_v48  ;;  %1363 = vst [vmem:[#allocation2 + $0x54] sm:$0xf] %v1362_v11  ;;  %v1570_v21 = vshll.u32 %v7048_v56, 16  ;;  %v1576_v37 = vrot.slane %v1574_v26, 4  ;;  %v7148_v38 = vpop.f32.mrb[30].mxu0  ;;  %5688 = vmatprep.subr.bf16.mxu0 %v6250_v12 }
 0x1d1   : > { %1371 = vst [vmem:[#allocation2 + $0x64] sm:$0xf] %v1127_v62  ;;  %1374 = vst [vmem:[#allocation2 + $0x68] sm:$0x1] %v1373_v63  ;;  %v1110_v35 = vsel %vm6918_vm12, %v1102_v50, %v1109_v59  ;;  %v1366_v20 = vsel %vm6924_vm13, %v1111_v1, %v1365_v43  ;;  %v1567_v39 = vor.u32 %v1566_v24, %v1563_v9  ;;  %v1580_v44 = vshll.u32 %v1442_v2, 16  ;;  %v7154_v40 = vpop.f32.mrb[31].mxu0 }
 0x1d2   : > { %1364 = vst [vmem:[#allocation2 + $0x58] sm:$0xf] %v1110_v35  ;;  %1367 = vst [vmem:[#allocation2 + $0x5c] sm:$0x1] %v1366_v20  ;;  %v4795_v47 = vrot.slane %v7043_v51, 9  ;;  %v1946_v48 = vrot.slane %v7048_v56, 5 }
 0x1d3   : > { %v7152_v49 = vld [vmem:[#allocation2 + $0x38] sm:$0x1]  ;;  %v1572_v57 = vrot.slane %v1570_v21, 5  ;;  %v1949_v46 = vrot.slane %v1442_v2, 5  ;;  %v1587_v26 = vrot.slane %v1585_v3, 4  ;;  %v1590_v50 = vrot.slane %v1588_v42, 5 }
 0x1d4   : > { %v7158_v60 = vld [vmem:[#allocation2 + $0x3c] sm:$0xf]  ;;  %v1568_v30 = vrot.slane %v1567_v39, 4  ;;  %v1582_v43 = vrot.slane %v1580_v44, 5  ;;  %v1947_v31 = vsel %vm6885_vm5, %v4795_v47, %v1946_v48  ;;  %v1948_v51 = vrot.slane %v1946_v48, 4  ;;  %v6251_v3 = vld [vmem:[#allocation8 + $0x1b0] sm:$0xff]  }
 0x1d5   : > { %v1577_v56 = vor.u32 %v1576_v37, %v1572_v57  ;;  %v1591_v45 = vor.u32 %v1590_v50, %v1587_v26  ;;  %v1594_v59 = vshll.u32 %v7102_v55, 16  ;;  %v1600_v1 = vrot.slane %v1598_v41, 4  ;;  %v7165_v2 = vld [vmem:[#allocation2 + $0x40] sm:$0xf]  ;;  %v6252_v41 = vld [vmem:[#allocation8 + $0x1f8] sm:$0xff]   ;;  %5689 = vmatpush3.bf16.msra.mxu0 %v6251_v3 }
 0x1d6   : > { %v1573_v42 = vsel %vm6877_vm2, %v1568_v30, %v1572_v57  ;;  %v1950_v9 = vsel %vm6885_vm5, %v1948_v51, %v1949_v46  ;;  %v1604_v11 = vshll.u32 %v7152_v49, 16  ;;  %v1609_v62 = vshrl.u32 %v7158_v60, 16  ;;  %v6253_v39 = vld [vmem:[#allocation8 + $0x1b8] sm:$0xff]   ;;  %5690 = vmatprep.subr.bf16.mxu0 %v6252_v41  ;;  %v7201_v3 = vld [vmem:[#allocation2 + $0x48] sm:$0xf] }
 0x1d7   : > { %v1578_v63 = vrot.slane %v1577_v56, 4  ;;  %v7173_v24 = vcombine.low %v1947_v31, %v1950_v9  ;;  %v1592_v0 = vrot.slane %v1591_v45, 4  ;;  %v1596_v35 = vrot.slane %v1594_v59, 5 }
 0x1d8   : > { %v1606_v20 = vrot.slane %v1604_v11, 5  ;;  %v1612_v21 = vshll.u32 %v7158_v60, 16  ;;  %v1622_v37 = vshrl.u32 %v7165_v2, 16  ;;  %v7179_v12 = vcombine.low %v7158_v60, %v7165_v2 }
 0x1d9   : > { %v1583_v44 = vsel %vm6877_vm2, %v1578_v63, %v1582_v43  ;;  %3120 = vmatmul.mubr.bf16.gmra.mrb[44].mxu0 %v7173_v24  ;;  %v1597_v47 = vsel %vm6877_vm2, %v1592_v0, %v1596_v35  ;;  %v1601_v48 = vor.u32 %v1600_v1, %v1596_v35  ;;  %v754_v57 = vadd.f32 %v7005_v7, %v6902_v33  ;;  %v6254_v43 = vld [vmem:[#allocation8 + $0x200] sm:$0xff]   ;;  %v7212_v35 = vld [vmem:[#allocation2 + $0x4c] sm:$0xf] }
 0x1da   : > { %v7188_v46 = vcombine.low %v1573_v42, %v1583_v44  ;;  %3127 = vmatprep.mubr.bf16.mxu0 %v7179_v12  ;;  %v746_v26 = vadd.f32 %v6902_v33, %v7013_v19  ;;  %v757_v50 = vadd.f32 %v7019_v27, %v6902_v33  ;;  %v749_v30 = vadd.f32 %v6902_v33, %v7025_v36 }
 0x1db   : > { %v1602_v31 = vrot.slane %v1601_v48, 4  ;;  %v826_v51 = vmax.f32 %v754_v57, 0.0  ;;  %v4796_v56 = vrot.slane %v7092_v13, 9  ;;  %v1953_v7 = vrot.slane %v7102_v55, 5  ;;  %5691 = vmatpush3.bf16.msra.mxu0 %v6253_v39  ;;  %5908 = vmatprep.subr.bf16.mxu1 %v6254_v43 }
 0x1dc   : > { %2958 = vmatprep.mubr.bf16.mxu1 %v7188_v46  ;;  %v824_v45 = vmax.f32 %v746_v26, 0.0  ;;  %v827_v59 = vmax.f32 %v757_v50, 0.0  ;;  %v825_v1 = vmax.f32 %v749_v30, 0.0  ;;  %v1956_v19 = vrot.slane %v7152_v49, 5  ;;  %v1382_v30 = vld [vmem:[#allocation2 + $0x78] sm:$0xf] }
 0x1dd   : > { %2959 = vmatmul.mubr.bf16.gmra.mrb[12].mxu1 %v7069_v28  ;;  %v1607_v33 = vsel %vm6877_vm2, %v1602_v31, %v1606_v20  ;;  %v5046_v27 = vpack.c.bf16 %v826_v51, %v826_v51  ;;  %v1954_v36 = vsel %vm6885_vm5, %v4796_v56, %v1953_v7  ;;  %v1955_v13 = vrot.slane %v1953_v7, 4 }
 0x1de   : > { %v7208_v55 = vcombine.low %v1597_v47, %v1607_v33  ;;  %v5044_v42 = vpack.c.bf16 %v824_v45, %v824_v45  ;;  %v5047_v9 = vpack.c.bf16 %v827_v59, %v827_v59  ;;  %v5045_v11 = vpack.c.bf16 %v825_v1, %v825_v1  ;;  %v1375_v59 = vld [vmem:[#allocation2 + $0x6c] sm:$0xf]  ;;  %v1386_v1 = vld [vmem:[#allocation2 + $0x80] sm:$0x1] }
 0x1df   : > { %v1147_v49 = vshrl.u32 %v5046_v27, 16  ;;  %v1150_v63 = vshll.u32 %v5046_v27, 16  ;;  %v1957_v0 = vsel %vm6885_vm5, %v1955_v13, %v1956_v19  ;;  %v1633_v41 = vshrl.u32 %v7201_v3, 16 }
 0x1e0   : > { %2966 = vmatprep.mubr.bf16.mxu1 %v7208_v55  ;;  %v1130_v20 = vshrl.u32 %v5044_v42, 16  ;;  %v1133_v39 = vshll.u32 %v5044_v42, 16  ;;  %v1155_v44 = vshrl.u32 %v5047_v9, 16  ;;  %v1158_v48 = vshll.u32 %v5047_v9, 16  ;;  %v1379_v9 = vld [vmem:[#allocation2 + $0x74] sm:$0x1] }
 0x1e1   : > { %v1149_v47 = vrot.slane %v1147_v49, 7  ;;  %v1138_v57 = vshrl.u32 %v5045_v11, 16  ;;  %v1141_v26 = vshll.u32 %v5045_v11, 16  ;;  %v7216_v50 = vcombine.low %v1954_v36, %v1957_v0  ;;  %v1448_v0 = vld [vmem:[#allocation2 + $0x44] sm:$0x1] }
 0x1e2   : > { %v1132_v43 = vrot.slane %v1130_v20, 7  ;;  %v1157_v31 = vrot.slane %v1155_v44, 7  ;;  %v1636_v51 = vshll.u32 %v7201_v3, 16  ;;  %v1646_v56 = vshrl.u32 %v7212_v35, 16 }
 0x1e3   : > { %v1152_v7 = vor.u32 %v1150_v63, %v1149_v47  ;;  %v1153_v45 = vrot.slane %v1149_v47, 4  ;;  %v1140_v19 = vrot.slane %v1138_v57, 7  ;;  %3128 = vmatmul.mubr.bf16.gmra.mrb[48].mxu0 %v7216_v50  ;;  %v7223_v33 = vcombine.low %v7201_v3, %v7212_v35 }
 0x1e4   : > { %v1135_v27 = vor.u32 %v1133_v39, %v1132_v43  ;;  %v1136_v36 = vrot.slane %v1132_v43, 4  ;;  %v1160_v13 = vor.u32 %v1158_v48, %v1157_v31  ;;  %v1162_v42 = vrot.slane %v1157_v31, 4 }
 0x1e5   : > { %v1383_v11 = vsel %vm6911_vm11, %v1152_v7, %v1382_v30  ;;  %v1143_v49 = vor.u32 %v1141_v26, %v1140_v19  ;;  %v1145_v63 = vrot.slane %v1140_v19, 4  ;;  %2967 = vmatmul.mubr.bf16.gmra.mrb[16].mxu1 %v7121_v53  ;;  %3135 = vmatprep.mubr.bf16.mxu0 %v7223_v33  ;;  %v1611_v20 = vrot.slane %v1609_v62, 4 }
 0x1e6   : > { %1384 = vst [vmem:[#allocation2 + $0x78] sm:$0xf] %v1383_v11  ;;  %v1376_v39 = vsel %vm6911_vm11, %v1135_v27, %v1375_v59  ;;  %v1161_v44 = vsel %vm6918_vm12, %v1153_v45, %v1160_v13  ;;  %v1387_v48 = vsel %vm6924_vm13, %v1162_v42, %v1386_v1  ;;  %v1614_v47 = vrot.slane %v1612_v21, 5  ;;  %v1451_v45 = vld [vmem:[#allocation2 + $0x50] sm:$0x1] }
 0x1e7   : > { %1377 = vst [vmem:[#allocation2 + $0x6c] sm:$0xf] %v1376_v39  ;;  %1385 = vst [vmem:[#allocation2 + $0x7c] sm:$0xf] %v1161_v44  ;;  %v1144_v57 = vsel %vm6918_vm12, %v1136_v36, %v1143_v49  ;;  %v1380_v62 = vsel %vm6924_vm13, %v1145_v63, %v1379_v9  ;;  %v1618_v26 = vshll.u32 %v7165_v2, 16  ;;  %v1624_v30 = vrot.slane %v1622_v37, 4 }
 0x1e8   : > { %1388 = vst [vmem:[#allocation2 + $0x80] sm:$0x1] %v1387_v48  ;;  %1378 = vst [vmem:[#allocation2 + $0x70] sm:$0xf] %v1144_v57  ;;  %v1615_v43 = vor.u32 %v1614_v47, %v1611_v20  ;;  %v1628_v31 = vshll.u32 %v1448_v0, 16  ;;  %v4797_v21 = vrot.slane %v7158_v60, 9 }
 0x1e9   : > { %1381 = vst [vmem:[#allocation2 + $0x74] sm:$0x1] %v1380_v62  ;;  %v1960_v7 = vrot.slane %v7165_v2, 5  ;;  %v1620_v59 = vrot.slane %v1618_v26, 5  ;;  %v1963_v1 = vrot.slane %v1448_v0, 5  ;;  %v1635_v19 = vrot.slane %v1633_v41, 4 }
 0x1ea   : > { %v1638_v27 = vrot.slane %v1636_v51, 5  ;;  %v7248_v36 = vld [vmem:[#allocation2 + $0x54] sm:$0xf]  ;;  %v1616_v13 = vrot.slane %v1615_v43, 4  ;;  %v1630_v42 = vrot.slane %v1628_v31, 5  ;;  %v1642_v63 = vshll.u32 %v7212_v35, 16 }
 0x1eb   : > { %v1961_v37 = vsel %vm6885_vm5, %v4797_v21, %v1960_v7  ;;  %v1962_v9 = vrot.slane %v1960_v7, 4  ;;  %v1625_v11 = vor.u32 %v1624_v30, %v1620_v59  ;;  %v1648_v60 = vrot.slane %v1646_v56, 4  ;;  %v7253_v20 = vld [vmem:[#allocation2 + $0x58] sm:$0xf]  ;;  %v7276_v21 = vld [vmem:[%s8235_s2] ss:$0 sm:$0xff] }
 0x1ec   : > { %v1639_v49 = vor.u32 %v1638_v27, %v1635_v19  ;;  %v1621_v2 = vsel %vm6877_vm2, %v1616_v13, %v1620_v59  ;;  %v1652_v51 = vshll.u32 %v1451_v45, 16  ;;  %v1657_v0 = vshrl.u32 %v7248_v36, 16 }
 0x1ed   : > { %v1964_v41 = vsel %vm6885_vm5, %v1962_v9, %v1963_v1  ;;  %v1626_v39 = vrot.slane %v1625_v11, 4  ;;  %v1644_v47 = vrot.slane %v1642_v63, 5  ;;  %v1660_v62 = vshll.u32 %v7248_v36, 16 }
 0x1ee   : > { %v7260_v44 = vcombine.low %v1961_v37, %v1964_v41  ;;  %v1640_v48 = vrot.slane %v1639_v49, 4  ;;  %v1654_v57 = vrot.slane %v1652_v51, 5  ;;  %v1670_v56 = vshrl.u32 %v7253_v20, 16 }
 0x1ef   : > { %v7266_v26 = vcombine.low %v7248_v36, %v7253_v20  ;;  %v1631_v30 = vsel %vm6877_vm2, %v1626_v39, %v1630_v42  ;;  %v1649_v31 = vor.u32 %v1648_v60, %v1644_v47  ;;  %v770_v7 = vadd.f32 %v7276_v21, %v7051_v4  ;;  %v7292_v60 = vld [vmem:[#allocation2 + $0x60] sm:$0xf] }
 0x1f0   : > { %3136 = vmatmul.mubr.bf16.gmra.mrb[52].mxu0 %v7260_v44  ;;  %v1645_v43 = vsel %vm6877_vm2, %v1640_v48, %v1644_v47  ;;  %v7280_v59 = vcombine.low %v1621_v2, %v1631_v30  ;;  %v762_v1 = vadd.f32 %v7276_v21, %v7057_v16  ;;  %v773_v19 = vadd.f32 %v7276_v21, %v7062_v23  ;;  %v7303_v47 = vld [vmem:[#allocation2 + $0x64] sm:$0xf] }
 0x1f1   : > { %3143 = vmatprep.mubr.bf16.mxu0 %v7266_v26  ;;  %v765_v27 = vadd.f32 %v7276_v21, %v7071_v29  ;;  %v1650_v13 = vrot.slane %v1649_v31, 4  ;;  %v830_v42 = vmax.f32 %v770_v7, 0.0  ;;  %v4798_v37 = vrot.slane %v7201_v3, 9 }
 0x1f2   : > { %v1967_v9 = vrot.slane %v7212_v35, 5  ;;  %2974 = vmatprep.mubr.bf16.mxu1 %v7280_v59  ;;  %v828_v4 = vmax.f32 %v762_v1, 0.0  ;;  %v831_v11 = vmax.f32 %v773_v19, 0.0  ;;  %v1970_v63 = vrot.slane %v1451_v45, 5 }
 0x1f3   : > { %v829_v49 = vmax.f32 %v765_v27, 0.0  ;;  %2975 = vmatmul.mubr.bf16.gmra.mrb[20].mxu1 %v7179_v12  ;;  %v1655_v16 = vsel %vm6877_vm2, %v1650_v13, %v1654_v57  ;;  %v5050_v23 = vpack.c.bf16 %v830_v42, %v830_v42  ;;  %v1681_v30 = vshrl.u32 %v7292_v60, 16  ;;  %v1396_v42 = vld [vmem:[#allocation2 + $0x90] sm:$0xf] }
 0x1f4   : > { %v1968_v29 = vsel %vm6885_vm5, %v4798_v37, %v1967_v9  ;;  %v1969_v3 = vrot.slane %v1967_v9, 4  ;;  %v7299_v2 = vcombine.low %v1645_v43, %v1655_v16  ;;  %v5048_v35 = vpack.c.bf16 %v828_v4, %v828_v4  ;;  %v1389_v16 = vld [vmem:[#allocation2 + $0x84] sm:$0xf] }
 0x1f5   : > { %v5051_v41 = vpack.c.bf16 %v831_v11, %v831_v11  ;;  %v5049_v51 = vpack.c.bf16 %v829_v49, %v829_v49  ;;  %v1181_v39 = vshrl.u32 %v5050_v23, 16  ;;  %v1184_v48 = vshll.u32 %v5050_v23, 16  ;;  %v1400_v23 = vld [vmem:[#allocation2 + $0x98] sm:$0x1] }
 0x1f6   : > { %v1971_v45 = vsel %vm6885_vm5, %v1969_v3, %v1970_v63  ;;  %2982 = vmatprep.mubr.bf16.mxu1 %v7299_v2  ;;  %v1164_v57 = vshrl.u32 %v5048_v35, 16  ;;  %v1167_v31 = vshll.u32 %v5048_v35, 16  ;;  %v1684_v4 = vshll.u32 %v7292_v60, 16 }
 0x1f7   : > { %v1189_v7 = vshrl.u32 %v5051_v41, 16  ;;  %v1192_v1 = vshll.u32 %v5051_v41, 16  ;;  %v1183_v43 = vrot.slane %v1181_v39, 7  ;;  %v1172_v19 = vshrl.u32 %v5049_v51, 16 }
 0x1f8   : > { %v1175_v27 = vshll.u32 %v5049_v51, 16  ;;  %v7307_v13 = vcombine.low %v1968_v29, %v1971_v45  ;;  %v1166_v37 = vrot.slane %v1164_v57, 7  ;;  %v1694_v11 = vshrl.u32 %v7303_v47, 16  ;;  %v1393_v45 = vld [vmem:[#allocation2 + $0x8c] sm:$0x1] }
 0x1f9   : > { %v1191_v9 = vrot.slane %v1189_v7, 7  ;;  %v1186_v49 = vor.u32 %v1184_v48, %v1183_v43  ;;  %v1187_v63 = vrot.slane %v1183_v43, 4  ;;  %v1174_v3 = vrot.slane %v1172_v19, 7  ;;  %v1454_v43 = vld [vmem:[#allocation2 + $0x5c] sm:$0x1] }
 0x1fa   : > { %3144 = vmatmul.mubr.bf16.gmra.mrb[56].mxu0 %v7307_v13  ;;  %v7314_v35 = vcombine.low %v7292_v60, %v7303_v47  ;;  %v1169_v29 = vor.u32 %v1167_v31, %v1166_v37  ;;  %v1170_v41 = vrot.slane %v1166_v37, 4  ;;  %v1659_v19 = vrot.slane %v1657_v0, 4 }
 0x1fb   : > { %v1194_v51 = vor.u32 %v1192_v1, %v1191_v9  ;;  %v1196_v39 = vrot.slane %v1191_v9, 4  ;;  %v1397_v57 = vsel %vm6911_vm11, %v1186_v49, %v1396_v42  ;;  %v1177_v7 = vor.u32 %v1175_v27, %v1174_v3  ;;  %2983 = vmatmul.mubr.bf16.gmra.mrb[24].mxu1 %v7223_v33 }
 0x1fc   : > { %v1179_v48 = vrot.slane %v1174_v3, 4  ;;  %3151 = vmatprep.mubr.bf16.mxu0 %v7314_v35  ;;  %1398 = vst [vmem:[#allocation2 + $0x90] sm:$0xf] %v1397_v57  ;;  %v1390_v31 = vsel %vm6911_vm11, %v1169_v29, %v1389_v16  ;;  %v1662_v27 = vrot.slane %v1660_v62, 5  ;;  %v1666_v9 = vshll.u32 %v7253_v20, 16 }
 0x1fd   : > { %v1195_v1 = vsel %vm6918_vm12, %v1187_v63, %v1194_v51  ;;  %v1401_v42 = vsel %vm6924_vm13, %v1196_v39, %v1400_v23  ;;  %1391 = vst [vmem:[#allocation2 + $0x84] sm:$0xf] %v1390_v31  ;;  %v1178_v37 = vsel %vm6918_vm12, %v1170_v41, %v1177_v7  ;;  %v1672_v49 = vrot.slane %v1670_v56, 4  ;;  %v1457_v3 = vld [vmem:[#allocation2 + $0x68] sm:$0x1] }
 0x1fe   : > { %1399 = vst [vmem:[#allocation2 + $0x94] sm:$0xf] %v1195_v1  ;;  %1402 = vst [vmem:[#allocation2 + $0x98] sm:$0x1] %v1401_v42  ;;  %v1394_v0 = vsel %vm6924_vm13, %v1179_v48, %v1393_v45  ;;  %v1663_v63 = vor.u32 %v1662_v27, %v1659_v19  ;;  %v1676_v16 = vshll.u32 %v1454_v43, 16  ;;  %v4799_v62 = vrot.slane %v7248_v36, 9 }
 0x1ff   : > { %1392 = vst [vmem:[#allocation2 + $0x88] sm:$0xf] %v1178_v37  ;;  %1395 = vst [vmem:[#allocation2 + $0x8c] sm:$0x1] %v1394_v0  ;;  %v1974_v23 = vrot.slane %v7253_v20, 5  ;;  %v1668_v29 = vrot.slane %v1666_v9, 5 }
 0x200   : > { %v1977_v51 = vrot.slane %v1454_v43, 5  ;;  %v1683_v41 = vrot.slane %v1681_v30, 4  ;;  %v1686_v39 = vrot.slane %v1684_v4, 5  ;;  %v7339_v57 = vld [vmem:[#allocation2 + $0x6c] sm:$0xf]  ;;  %v1664_v45 = vrot.slane %v1663_v63, 4 }
 0x201   : > { %v1678_v7 = vrot.slane %v1676_v16, 5  ;;  %v1975_v56 = vsel %vm6885_vm5, %v4799_v62, %v1974_v23  ;;  %v1976_v48 = vrot.slane %v1974_v23, 4  ;;  %v1673_v31 = vor.u32 %v1672_v49, %v1668_v29  ;;  %v7344_v42 = vld [vmem:[#allocation2 + $0x70] sm:$0xf] }
 0x202   : > { %v1687_v19 = vor.u32 %v1686_v39, %v1683_v41  ;;  %v1690_v1 = vshll.u32 %v7303_v47, 16  ;;  %v1696_v36 = vrot.slane %v1694_v11, 4  ;;  %v1669_v20 = vsel %vm6877_vm2, %v1664_v45, %v1668_v29  ;;  %v1414_v11 = vld [vmem:[#allocation2 + $0xb0] sm:$0x1] }
 0x203   : > { %v1978_v30 = vsel %vm6885_vm5, %v1976_v48, %v1977_v51  ;;  %v1700_v4 = vshll.u32 %v1457_v3, 16  ;;  %v1705_v43 = vshrl.u32 %v7339_v57, 16  ;;  %v1674_v27 = vrot.slane %v1673_v31, 4 }
 0x204   : > { %v7351_v37 = vcombine.low %v1975_v56, %v1978_v30  ;;  %v1688_v0 = vrot.slane %v1687_v19, 4  ;;  %v1692_v9 = vrot.slane %v1690_v1, 5  ;;  %v7357_v16 = vcombine.low %v7339_v57, %v7344_v42  ;;  %v7378_v30 = vld [vmem:[#allocation2 + $0x78] sm:$0xf] }
 0x205   : > { %v1702_v49 = vrot.slane %v1700_v4, 5  ;;  %v1679_v62 = vsel %vm6877_vm2, %v1674_v27, %v1678_v7  ;;  %v786_v51 = vadd.f32 %v7276_v21, %v7098_v52  ;;  %v778_v39 = vadd.f32 %v7276_v21, %v7104_v54 }
 0x206   : > { %3152 = vmatmul.mubr.bf16.gmra.mrb[60].mxu0 %v7351_v37  ;;  %v1693_v23 = vsel %vm6877_vm2, %v1688_v0, %v1692_v9  ;;  %v1697_v29 = vor.u32 %v1696_v36, %v1692_v9  ;;  %v7366_v41 = vcombine.low %v1669_v20, %v1679_v62  ;;  %v789_v45 = vadd.f32 %v7276_v21, %v7109_v5 }
 0x207   : > { %3159 = vmatprep.mubr.bf16.mxu0 %v7357_v16  ;;  %v781_v7 = vadd.f32 %v7276_v21, %v7112_v25  ;;  %v834_v48 = vmax.f32 %v786_v51, 0.0  ;;  %v4800_v31 = vrot.slane %v7292_v60, 9  ;;  %v1981_v19 = vrot.slane %v7303_v47, 5 }
 0x208   : > { %v1698_v56 = vrot.slane %v1697_v29, 4  ;;  %2990 = vmatprep.mubr.bf16.mxu1 %v7366_v41  ;;  %v832_v52 = vmax.f32 %v778_v39, 0.0  ;;  %v835_v1 = vmax.f32 %v789_v45, 0.0  ;;  %v1984_v20 = vrot.slane %v1457_v3, 5  ;;  %v7389_v29 = vld [vmem:[#allocation2 + $0x7c] sm:$0xf] }
 0x209   : > { %v833_v36 = vmax.f32 %v781_v7, 0.0  ;;  %2991 = vmatmul.mubr.bf16.gmra.mrb[28].mxu1 %v7266_v26  ;;  %v5054_v5 = vpack.c.bf16 %v834_v48, %v834_v48  ;;  %v1982_v25 = vsel %vm6885_vm5, %v4800_v31, %v1981_v19  ;;  %v1983_v60 = vrot.slane %v1981_v19, 4  ;;  %v1410_v19 = vld [vmem:[#allocation2 + $0xa8] sm:$0xf] }
 0x20a   : > { %v1703_v54 = vsel %vm6877_vm2, %v1698_v56, %v1702_v49  ;;  %v5052_v47 = vpack.c.bf16 %v832_v52, %v832_v52  ;;  %v5055_v27 = vpack.c.bf16 %v835_v1, %v835_v1  ;;  %v1729_v51 = vshrl.u32 %v7378_v30, 16 }
 0x20b   : > { %v7385_v4 = vcombine.low %v1693_v23, %v1703_v54  ;;  %v5053_v0 = vpack.c.bf16 %v833_v36, %v833_v36  ;;  %v1215_v9 = vshrl.u32 %v5054_v5, 16  ;;  %v1218_v62 = vshll.u32 %v5054_v5, 16 }
 0x20c   : > { %v1985_v3 = vsel %vm6885_vm5, %v1983_v60, %v1984_v20  ;;  %v1198_v49 = vshrl.u32 %v5052_v47, 16  ;;  %v1201_v39 = vshll.u32 %v5052_v47, 16  ;;  %v1223_v45 = vshrl.u32 %v5055_v27, 16  ;;  %v1403_v60 = vld [vmem:[#allocation2 + $0x9c] sm:$0xf] }
 0x20d   : > { %2998 = vmatprep.mubr.bf16.mxu1 %v7385_v4  ;;  %v1226_v7 = vshll.u32 %v5055_v27, 16  ;;  %v1217_v23 = vrot.slane %v1215_v9, 7  ;;  %v1206_v56 = vshrl.u32 %v5053_v0, 16  ;;  %v1209_v48 = vshll.u32 %v5053_v0, 16 }
 0x20e   : > { %v7393_v31 = vcombine.low %v1982_v25, %v1985_v3  ;;  %v1200_v52 = vrot.slane %v1198_v49, 7  ;;  %v1225_v1 = vrot.slane %v1223_v45, 7  ;;  %v1732_v36 = vshll.u32 %v7378_v30, 16  ;;  %v1407_v3 = vld [vmem:[#allocation2 + $0xa4] sm:$0x1] }
 0x20f   : > { %v1742_v20 = vshrl.u32 %v7389_v29, 16  ;;  %v1220_v54 = vor.u32 %v1218_v62, %v1217_v23  ;;  %v1221_v5 = vrot.slane %v1217_v23, 4  ;;  %v1208_v63 = vrot.slane %v1206_v56, 7  ;;  %v1460_v23 = vld [vmem:[#allocation2 + $0x74] sm:$0x1] }
 0x210   : > { %3160 = vmatmul.mubr.bf16.gmra.mrb[64].mxu0 %v7393_v31  ;;  %v7400_v47 = vcombine.low %v7378_v30, %v7389_v29  ;;  %v1203_v25 = vor.u32 %v1201_v39, %v1200_v52  ;;  %v1204_v27 = vrot.slane %v1200_v52, 4  ;;  %v1228_v0 = vor.u32 %v1226_v7, %v1225_v1 }
 0x211   : > { %v1230_v9 = vrot.slane %v1225_v1, 4  ;;  %v1411_v49 = vsel %vm6911_vm11, %v1220_v54, %v1410_v19  ;;  %v1211_v45 = vor.u32 %v1209_v48, %v1208_v63  ;;  %v1213_v62 = vrot.slane %v1208_v63, 4  ;;  %2999 = vmatmul.mubr.bf16.gmra.mrb[32].mxu1 %v7314_v35 }
 0x212   : > { %8295 = vst [vmem:[#allocation22_spill] sm:$0xff] %v7400_v47  ;;  %3167 = vmatprep.mubr.bf16.mxu0 %v7400_v47  ;;  %v1707_v56 = vrot.slane %v1705_v43, 4  ;;  %1412 = vst [vmem:[#allocation2 + $0xa8] sm:$0xf] %v1411_v49  ;;  %v1404_v39 = vsel %vm6911_vm11, %v1203_v25, %v1403_v60  ;;  %v1229_v7 = vsel %vm6918_vm12, %v1221_v5, %v1228_v0  ;;  %v8296_v63 = vshll.u32 %v7339_v57, 16 }
 0x213   : > { %v1415_v19 = vsel %vm6924_vm13, %v1230_v9, %v1414_v11  ;;  %1405 = vst [vmem:[#allocation2 + $0x9c] sm:$0xf] %v1404_v39  ;;  %1413 = vst [vmem:[#allocation2 + $0xac] sm:$0xf] %v1229_v7  ;;  %v1212_v52 = vsel %vm6918_vm12, %v1204_v27, %v1211_v45  ;;  %v1408_v43 = vsel %vm6924_vm13, %v1213_v62, %v1407_v3  ;;  %v1714_v1 = vshll.u32 %v7344_v42, 16 }
 0x214   : > { %v1710_v48 = vrot.slane %v8296_v63, 5  ;;  %1416 = vst [vmem:[#allocation2 + $0xb0] sm:$0x1] %v1415_v19  ;;  %v8297_v54 = vshrl.u32 %v7344_v42, 16  ;;  %1406 = vst [vmem:[#allocation2 + $0xa0] sm:$0xf] %v1212_v52 }
 0x215   : > { %1409 = vst [vmem:[#allocation2 + $0xa4] sm:$0x1] %v1408_v43  ;;  %v1724_v60 = vshll.u32 %v1460_v23, 16  ;;  %v4801_v25 = vrot.slane %v7339_v57, 9  ;;  %v1988_v0 = vrot.slane %v7344_v42, 5  ;;  %v1716_v49 = vrot.slane %v1714_v1, 5 }
 0x216   : > { %v1720_v5 = vrot.slane %v8297_v54, 4  ;;  %v1711_v11 = vor.u32 %v1710_v48, %v1707_v56  ;;  %v1463_v9 = vld [vmem:[#allocation2 + $0x80] sm:$0x1]  ;;  %v1991_v39 = vrot.slane %v1460_v23, 5  ;;  %v1731_v27 = vrot.slane %v1729_v51, 4 }
 0x217   : > { %v1734_v45 = vrot.slane %v1732_v36, 5  ;;  %v7425_v7 = vld [vmem:[#allocation2 + $0x84] sm:$0xf]  ;;  %v1726_v62 = vrot.slane %v1724_v60, 5  ;;  %v1989_v19 = vsel %vm6885_vm5, %v4801_v25, %v1988_v0  ;;  %v1990_v63 = vrot.slane %v1988_v0, 4 }
 0x218   : > { %v1712_v3 = vrot.slane %v1711_v11, 4  ;;  %v1721_v52 = vor.u32 %v1720_v5, %v1716_v49  ;;  %v1738_v48 = vshll.u32 %v7389_v29, 16  ;;  %v1744_v57 = vrot.slane %v1742_v20, 4  ;;  %v7430_v43 = vld [vmem:[#allocation2 + $0x88] sm:$0xf] }
 0x219   : > { %v1735_v56 = vor.u32 %v1734_v45, %v1731_v27  ;;  %v1992_v51 = vsel %vm6885_vm5, %v1990_v63, %v1991_v39  ;;  %v1748_v36 = vshll.u32 %v1463_v9, 16  ;;  %v7443_v0 = vcombine.low %v7425_v7, %v7430_v43  ;;  %v1417_v20 = vld [vmem:[#allocation2 + $0xb4] sm:$0xf]  ;;  %v1428_v25 = vld [vmem:[#allocation2 + $0xc8] sm:$0x1] }
 0x21a   : > { %v1717_v42 = vsel %vm6877_vm2, %v1712_v3, %v1716_v49  ;;  %v1722_v1 = vrot.slane %v1721_v52, 4  ;;  %v7437_v54 = vcombine.low %v1989_v19, %v1992_v51  ;;  %v1740_v5 = vrot.slane %v1738_v48, 5 }
 0x21b   : > { %v1736_v11 = vrot.slane %v1735_v56, 4  ;;  %v1750_v60 = vrot.slane %v1748_v36, 5  ;;  %8299 = vst [vmem:[#allocation24_spill] sm:$0xff] %v7443_v0  ;;  %v802_v45 = vadd.f32 %v7276_v21, %v7129_v10  ;;  %v794_v19 = vadd.f32 %v7276_v21, %v7139_v34 }
 0x21c   : > { %8298 = vst [vmem:[#allocation23_spill] sm:$0xff] %v7437_v54  ;;  %v1727_v49 = vsel %vm6877_vm2, %v1722_v1, %v1726_v62  ;;  %3168 = vmatmul.mubr.bf16.gmra.mrb[68].mxu0 %v7437_v54  ;;  %v1745_v27 = vor.u32 %v1744_v57, %v1740_v5  ;;  %v805_v63 = vadd.f32 %v7276_v21, %v7148_v38  ;;  %v4802_v48 = vrot.slane %v7378_v30, 9  ;;  %v7464_v1 = vld [vmem:[#allocation2 + $0x90] sm:$0xf] }
 0x21d   : > { %v1741_v39 = vsel %vm6877_vm2, %v1736_v11, %v1740_v5  ;;  %v7452_v3 = vcombine.low %v1717_v42, %v1727_v49  ;;  %3175 = vmatprep.mubr.bf16.mxu0 %v7443_v0  ;;  %v797_v62 = vadd.f32 %v7276_v21, %v7154_v40  ;;  %v838_v56 = vmax.f32 %v802_v45, 0.0  ;;  %v7475_v45 = vld [vmem:[#allocation2 + $0x94] sm:$0xf] }
 0x21e   : > { %v1746_v52 = vrot.slane %v1745_v27, 4  ;;  %v1995_v57 = vrot.slane %v7389_v29, 5  ;;  %v836_v10 = vmax.f32 %v794_v19, 0.0  ;;  %v839_v42 = vmax.f32 %v805_v63, 0.0 }
 0x21f   : > { %3006 = vmatprep.mubr.bf16.mxu1 %v7452_v3  ;;  %v837_v51 = vmax.f32 %v797_v62, 0.0  ;;  %v1998_v36 = vrot.slane %v1463_v9, 5  ;;  %v5058_v38 = vpack.c.bf16 %v838_v56, %v838_v56  ;;  %v1777_v19 = vshrl.u32 %v7464_v1, 16 }
 0x220   : > { %3007 = vmatmul.mubr.bf16.gmra.mrb[36].mxu1 %v7357_v16  ;;  %v1751_v34 = vsel %vm6877_vm2, %v1746_v52, %v1750_v60  ;;  %v1996_v40 = vsel %vm6885_vm5, %v4802_v48, %v1995_v57  ;;  %v1997_v21 = vrot.slane %v1995_v57, 4  ;;  %v5056_v29 = vpack.c.bf16 %v836_v10, %v836_v10  ;;  %v1424_v10 = vld [vmem:[#allocation2 + $0xc0] sm:$0xf] }
 0x221   : > { %v7471_v30 = vcombine.low %v1741_v39, %v1751_v34  ;;  %v5059_v11 = vpack.c.bf16 %v839_v42, %v839_v42  ;;  %v5057_v5 = vpack.c.bf16 %v837_v51, %v837_v51  ;;  %v1249_v49 = vshrl.u32 %v5058_v38, 16 }
 0x222   : > { %v1252_v27 = vshll.u32 %v5058_v38, 16  ;;  %v1999_v9 = vsel %vm6885_vm5, %v1997_v21, %v1998_v36  ;;  %v1232_v60 = vshrl.u32 %v5056_v29, 16  ;;  %v1235_v63 = vshll.u32 %v5056_v29, 16 }
 0x223   : > { %3014 = vmatprep.mubr.bf16.mxu1 %v7471_v30  ;;  %v1257_v62 = vshrl.u32 %v5059_v11, 16  ;;  %v1260_v52 = vshll.u32 %v5059_v11, 16  ;;  %v1251_v39 = vrot.slane %v1249_v49, 7  ;;  %v1240_v56 = vshrl.u32 %v5057_v5, 16 }
 0x224   : > { %v1243_v48 = vshll.u32 %v5057_v5, 16  ;;  %v7479_v57 = vcombine.low %v1996_v40, %v1999_v9  ;;  %v1234_v42 = vrot.slane %v1232_v60, 7  ;;  %v1780_v36 = vshll.u32 %v7464_v1, 16  ;;  %v1421_v9 = vld [vmem:[#allocation2 + $0xbc] sm:$0x1] }
 0x225   : > { %v1259_v51 = vrot.slane %v1257_v62, 7  ;;  %v1790_v34 = vshrl.u32 %v7475_v45, 16  ;;  %v1254_v38 = vor.u32 %v1252_v27, %v1251_v39  ;;  %v1255_v21 = vrot.slane %v1251_v39, 4  ;;  %v1466_v39 = vld [vmem:[#allocation2 + $0x8c] sm:$0x1] }
 0x226   : > { %8300 = vst [vmem:[#allocation25_spill] sm:$0xff] %v7479_v57  ;;  %v1242_v23 = vrot.slane %v1240_v56, 7  ;;  %3176 = vmatmul.mubr.bf16.gmra.mrb[72].mxu0 %v7479_v57  ;;  %v7486_v29 = vcombine.low %v7464_v1, %v7475_v45  ;;  %v1237_v40 = vor.u32 %v1235_v63, %v1234_v42  ;;  %v1238_v11 = vrot.slane %v1234_v42, 4 }
 0x227   : > { %v1262_v5 = vor.u32 %v1260_v52, %v1259_v51  ;;  %v1264_v49 = vrot.slane %v1259_v51, 4  ;;  %v1425_v60 = vsel %vm6911_vm11, %v1254_v38, %v1424_v10  ;;  %v8302_v56 = vshrl.u32 %v7425_v7, 16 }
 0x228   : > { %8301 = vst [vmem:[#allocation26_spill] sm:$0xff] %v7486_v29  ;;  %v1245_v62 = vor.u32 %v1243_v48, %v1242_v23  ;;  %v1247_v27 = vrot.slane %v1242_v23, 4  ;;  %3015 = vmatmul.mubr.bf16.gmra.mrb[40].mxu1 %v7400_v47  ;;  %3183 = vmatprep.mubr.bf16.mxu0 %v7486_v29  ;;  %1426 = vst [vmem:[#allocation2 + $0xc0] sm:$0xf] %v1425_v60  ;;  %v1418_v63 = vsel %vm6911_vm11, %v1237_v40, %v1417_v20  ;;  %v1469_v60 = vld [vmem:[#allocation2 + $0x98] sm:$0x1] }
 0x229   : > { %v1755_v57 = vrot.slane %v8302_v56, 4  ;;  %v1263_v52 = vsel %vm6918_vm12, %v1255_v21, %v1262_v5  ;;  %v1429_v10 = vsel %vm6924_vm13, %v1264_v49, %v1428_v25  ;;  %v8303_v23 = vshll.u32 %v7425_v7, 16  ;;  %1419 = vst [vmem:[#allocation2 + $0xb4] sm:$0xf] %v1418_v63  ;;  %v7509_v21 = vpop.f32.mrb[0].mxu1 }
 0x22a   : > { %1427 = vst [vmem:[#allocation2 + $0xc4] sm:$0xf] %v1263_v52  ;;  %1430 = vst [vmem:[#allocation2 + $0xc8] sm:$0x1] %v1429_v10  ;;  %v1246_v42 = vsel %vm6918_vm12, %v1238_v11, %v1245_v62  ;;  %v1422_v51 = vsel %vm6924_vm13, %v1247_v27, %v1421_v9  ;;  %v1762_v61 = vshll.u32 %v7430_v43, 16  ;;  %v8304_v20 = vshrl.u32 %v7430_v43, 16 }
 0x22b   : > { %v1758_v48 = vrot.slane %v8303_v23, 5  ;;  %1420 = vst [vmem:[#allocation2 + $0xb8] sm:$0xf] %v1246_v42  ;;  %1423 = vst [vmem:[#allocation2 + $0xbc] sm:$0x1] %v1422_v51  ;;  %v1772_v40 = vshll.u32 %v1466_v39, 16 }
 0x22c   : > { %v1768_v38 = vrot.slane %v8304_v20, 4  ;;  %v4803_v5 = vrot.slane %v7425_v7, 9  ;;  %v2002_v49 = vrot.slane %v7430_v43, 5  ;;  %v1764_v8 = vrot.slane %v1762_v61, 5  ;;  %v7518_v7 = vpop.f32.mrb[1].mxu1 }
 0x22d   : > { %v1759_v25 = vor.u32 %v1758_v48, %v1755_v57  ;;  %v2005_v11 = vrot.slane %v1466_v39, 5  ;;  %v1779_v14 = vrot.slane %v1777_v19, 4  ;;  %v1782_v9 = vrot.slane %v1780_v36, 5  ;;  %v7516_v48 = vld [vmem:[#allocation2 + $0x9c] sm:$0xf]  ;;  %v7526_v42 = vpop.f32.mrb[2].mxu1 }
 0x22e   : > { %v1774_v27 = vrot.slane %v1772_v40, 5  ;;  %v2003_v56 = vsel %vm6885_vm5, %v4803_v5, %v2002_v49  ;;  %v2004_v63 = vrot.slane %v2002_v49, 4  ;;  %v1769_v52 = vor.u32 %v1768_v38, %v1764_v8  ;;  %v7524_v39 = vld [vmem:[#allocation2 + $0xa0] sm:$0xf]  ;;  %v7530_v38 = vld [vmem:[#allocation2 + $0xa8] sm:$0xf] }
 0x22f   : > { %v1760_v62 = vrot.slane %v1759_v25, 4  ;;  %v1783_v10 = vor.u32 %v1782_v9, %v1779_v14  ;;  %v1786_v57 = vshll.u32 %v7475_v45, 16  ;;  %v1792_v23 = vrot.slane %v1790_v34, 4  ;;  %v7532_v25 = vpop.f32.mrb[3].mxu1 }
 0x230   : > { %v2006_v19 = vsel %vm6885_vm5, %v2004_v63, %v2005_v11  ;;  %v1796_v36 = vshll.u32 %v1469_v60, 16  ;;  %v1770_v51 = vrot.slane %v1769_v52, 4  ;;  %v1801_v5 = vshrl.u32 %v7516_v48, 16  ;;  %v7540_v11 = vld [vmem:[#allocation2 + $0xac] sm:$0xf] }
 0x231   : > { %v1765_v43 = vsel %vm6877_vm2, %v1760_v62, %v1764_v8  ;;  %v7528_v61 = vcombine.low %v2003_v56, %v2006_v19  ;;  %v1784_v20 = vrot.slane %v1783_v10, 4  ;;  %v1788_v34 = vrot.slane %v1786_v57, 5  ;;  %v1472_v19 = vld [vmem:[#allocation2 + $0xa4] sm:$0x1] }
 0x232   : > { %v1798_v40 = vrot.slane %v1796_v36, 5  ;;  %v1804_v49 = vshll.u32 %v7516_v48, 16  ;;  %v7538_v8 = vcombine.low %v7516_v48, %v7524_v39  ;;  %v1775_v14 = vsel %vm6877_vm2, %v1770_v51, %v1774_v27 }
 0x233   : > { %8305 = vst [vmem:[#allocation27_spill] sm:$0xff] %v7528_v61  ;;  %3184 = vmatmul.mubr.bf16.gmra.mrb[76].mxu0 %v7528_v61  ;;  %v1793_v9 = vor.u32 %v1792_v23, %v1788_v34  ;;  %v1814_v62 = vshrl.u32 %v7524_v39, 16  ;;  %v4804_v56 = vrot.slane %v7464_v1, 9  ;;  %v7547_v63 = vcombine.low %v1765_v43, %v1775_v14 }
 0x234   : > { %v1789_v52 = vsel %vm6877_vm2, %v1784_v20, %v1788_v34  ;;  %3191 = vmatprep.mubr.bf16.mxu0 %v7538_v8  ;;  %v2009_v10 = vrot.slane %v7475_v45, 5  ;;  %v2012_v57 = vrot.slane %v1469_v60, 5  ;;  %v1825_v27 = vshrl.u32 %v7530_v38, 16 }
 0x235   : > { %8306 = vst [vmem:[#allocation28_spill] sm:$0xff] %v7547_v63  ;;  %v1794_v36 = vrot.slane %v1793_v9, 4  ;;  %v1828_v23 = vshll.u32 %v7530_v38, 16  ;;  %v1838_v51 = vshrl.u32 %v7540_v11, 16  ;;  %3022 = vmatprep.mubr.bf16.mxu1 %v7547_v63  ;;  %v1803_v20 = vrot.slane %v1801_v5, 4 }
 0x236   : > { %v2010_v1 = vsel %vm6885_vm5, %v4804_v56, %v2009_v10  ;;  %v2011_v43 = vrot.slane %v2009_v10, 4  ;;  %v1806_v34 = vrot.slane %v1804_v49, 5  ;;  %3023 = vmatmul.mubr.bf16.gmra.mrb[44].mxu1 %v7443_v0  ;;  %v1810_v60 = vshll.u32 %v7524_v39, 16 }
 0x237   : > { %v1799_v45 = vsel %vm6877_vm2, %v1794_v36, %v1798_v40  ;;  %v1816_v14 = vrot.slane %v1814_v62, 4  ;;  %v1820_v9 = vshll.u32 %v1472_v19, 16  ;;  %v7569_v56 = vcombine.low %v7530_v38, %v7540_v11  ;;  %v1475_v36 = vld [vmem:[#allocation2 + $0xb0] sm:$0x1] }
 0x238   : > { %v7563_v61 = vcombine.low %v1789_v52, %v1799_v45  ;;  %v2013_v63 = vsel %vm6885_vm5, %v2011_v43, %v2012_v57  ;;  %v1807_v5 = vor.u32 %v1806_v34, %v1803_v20  ;;  %v1812_v10 = vrot.slane %v1810_v60, 5  ;;  %v7581_v34 = vld [vmem:[#allocation2 + $0xb8] sm:$0xf] }
 0x239   : > { %v7571_v49 = vcombine.low %v2010_v1, %v2013_v63  ;;  %v4805_v0 = vrot.slane %v7516_v48, 9  ;;  %v2016_v40 = vrot.slane %v7524_v39, 5  ;;  %v2019_v52 = vrot.slane %v1472_v19, 5  ;;  %v7578_v1 = vld [vmem:[#allocation2 + $0xb4] sm:$0xf] }
 0x23a   : > { %3030 = vmatprep.mubr.bf16.mxu1 %v7563_v61  ;;  %v1808_v62 = vrot.slane %v1807_v5, 4  ;;  %v1827_v45 = vrot.slane %v1825_v27, 4  ;;  %v1830_v47 = vrot.slane %v1828_v23, 5  ;;  %v1817_v57 = vor.u32 %v1816_v14, %v1812_v10 }
 0x23b   : > { %8307 = vst [vmem:[#allocation29_spill] sm:$0xff] %v7571_v49  ;;  %3192 = vmatmul.mubr.bf16.gmra.mrb[80].mxu0 %v7571_v49  ;;  %v1822_v43 = vrot.slane %v1820_v9, 5  ;;  %v2018_v54 = vrot.slane %v2016_v40, 4  ;;  %v1834_v63 = vshll.u32 %v7540_v11, 16  ;;  %v1840_v39 = vrot.slane %v1838_v51, 4 }
 0x23c   : > { %3199 = vmatprep.mubr.bf16.mxu0 %v7569_v56  ;;  %v1831_v48 = vor.u32 %v1830_v47, %v1827_v45  ;;  %v1844_v20 = vshll.u32 %v1475_v36, 16  ;;  %v1813_v19 = vsel %vm6877_vm2, %v1808_v62, %v1812_v10  ;;  %v1818_v27 = vrot.slane %v1817_v57, 4  ;;  %v7595_v45 = vld [vmem:[#allocation2 + $0xc0] sm:$0xf] }
 0x23d   : > { %v2017_v23 = vsel %vm6885_vm5, %v4805_v0, %v2016_v40  ;;  %v1836_v60 = vrot.slane %v1834_v63, 5  ;;  %v2020_v14 = vsel %vm6885_vm5, %v2018_v54, %v2019_v52  ;;  %v1849_v49 = vshrl.u32 %v7578_v1, 16 }
 0x23e   : > { %v1832_v9 = vrot.slane %v1831_v48, 4  ;;  %v1846_v5 = vrot.slane %v1844_v20, 5  ;;  %3031 = vmatmul.mubr.bf16.gmra.mrb[48].mxu1 %v7486_v29  ;;  %v1823_v47 = vsel %vm6877_vm2, %v1818_v27, %v1822_v43  ;;  %v1852_v10 = vshll.u32 %v7578_v1, 16  ;;  %v1478_v48 = vld [vmem:[#allocation2 + $0xbc] sm:$0x1] }
 0x23f   : > { %v1841_v51 = vor.u32 %v1840_v39, %v1836_v60  ;;  %v1862_v62 = vshrl.u32 %v7581_v34, 16  ;;  %v7597_v0 = vcombine.low %v1813_v19, %v1823_v47  ;;  %v7601_v54 = vcombine.low %v7578_v1, %v7581_v34  ;;  %v1480_v19 = vld [vmem:[#allocation2 + $0xc4] sm:$0xf] }
 0x240   : > { %v4806_v40 = vrot.slane %v7530_v38, 9  ;;  %v2023_v52 = vrot.slane %v7540_v11, 5  ;;  %v7605_v57 = vcombine.low %v2017_v23, %v2020_v14  ;;  %v2026_v63 = vrot.slane %v1475_v36, 5 }
 0x241   : > { %8308 = vst [vmem:[#allocation30_spill] sm:$0xff] %v7597_v0  ;;  %v1842_v43 = vrot.slane %v1841_v51, 4  ;;  %3038 = vmatprep.mubr.bf16.mxu1 %v7597_v0  ;;  %v1837_v39 = vsel %vm6877_vm2, %v1832_v9, %v1836_v60  ;;  %v2036_v27 = vshrl.u32 %v7595_v45, 16  ;;  %v1851_v11 = vrot.slane %v1849_v49, 4 }
 0x242   : > { %8309 = vst [vmem:[#allocation31_spill] sm:$0xff] %v7605_v57  ;;  %v2025_v20 = vrot.slane %v2023_v52, 4  ;;  %v1854_v23 = vrot.slane %v1852_v10, 5  ;;  %v1858_v14 = vshll.u32 %v7581_v34, 16  ;;  %v2024_v36 = vsel %vm6885_vm5, %v4806_v40, %v2023_v52 }
 0x243   : > { %3200 = vmatmul.mubr.bf16.gmra.mrb[84].mxu0 %v7605_v57  ;;  %v1847_v38 = vsel %vm6877_vm2, %v1842_v43, %v1846_v5  ;;  %v2039_v60 = vshll.u32 %v7595_v45, 16  ;;  %v1864_v9 = vrot.slane %v1862_v62, 4  ;;  %v1868_v47 = vshll.u32 %v1478_v48, 16 }
 0x244   : > { %3207 = vmatprep.mubr.bf16.mxu0 %v7601_v54  ;;  %v2027_v51 = vsel %vm6885_vm5, %v2025_v20, %v2026_v63  ;;  %v2049_v57 = vshrl.u32 %v1480_v19, 16  ;;  %v1855_v0 = vor.u32 %v1854_v23, %v1851_v11  ;;  %v1860_v29 = vrot.slane %v1858_v14, 5  ;;  %v1481_v63 = vld [vmem:[#allocation2 + $0xc8] sm:$0x1] }
 0x245   : > { %v7621_v5 = vcombine.low %v1837_v39, %v1847_v38  ;;  %v1870_v49 = vrot.slane %v1868_v47, 5  ;;  %v2030_v10 = vrot.slane %v7581_v34, 5  ;;  %v7626_v43 = vadd.f32 %v7518_v7, %v7509_v21 }
 0x246   : > { %3039 = vmatmul.mubr.bf16.gmra.mrb[52].mxu1 %v7538_v8  ;;  %v1856_v40 = vrot.slane %v1855_v0, 4  ;;  %v1865_v62 = vor.u32 %v1864_v9, %v1860_v29  ;;  %v7631_v52 = vadd.f32 %v7532_v25, %v7526_v42  ;;  %v2038_v20 = vrot.slane %v2036_v27, 4 }
 0x247   : > { %3046 = vmatprep.mubr.bf16.mxu1 %v7621_v5  ;;  %v7634_v39 = vcombine.low %v2024_v36, %v2027_v51  ;;  %v4807_v34 = vrot.slane %v7578_v1, 9  ;;  %v2041_v38 = vrot.slane %v2039_v60, 5  ;;  %v2032_v21 = vrot.slane %v2030_v10, 4 }
 0x248   : > { %v1866_v11 = vrot.slane %v1865_v62, 4  ;;  %v2033_v7 = vrot.slane %v1478_v48, 5  ;;  %v2045_v23 = vshll.u32 %v1480_v19, 16  ;;  %v7638_v0 = vcombine.low %v7595_v45, %v1480_v19 }
 0x249   : > { %v2042_v14 = vor.u32 %v2041_v38, %v2038_v20  ;;  %v2051_v9 = vrot.slane %v2049_v57, 4  ;;  %v2055_v42 = vshll.u32 %v1481_v63, 16  ;;  %v1861_v25 = vsel %vm6877_vm2, %v1856_v40, %v1860_v29 }
 0x24a   : > { %v1871_v27 = vsel %vm6877_vm2, %v1866_v11, %v1870_v49  ;;  %v2047_v1 = vrot.slane %v2045_v23, 5  ;;  %v4808_v36 = vrot.slane %v7595_v45, 9  ;;  %v2031_v48 = vsel %vm6885_vm5, %v4807_v34, %v2030_v10  ;;  %v6256_v23 = vld [vmem:[#allocation8 + $0x210] sm:$0xff]  }
 0x24b   : > { %3208 = vmatmul.mubr.bf16.gmra.mrb[88].mxu0 %v7634_v39  ;;  %v2043_v60 = vrot.slane %v2042_v14, 4  ;;  %v2064_v47 = vrot.slane %v1480_v19, 5  ;;  %v2034_v57 = vsel %vm6885_vm5, %v2032_v21, %v2033_v7  ;;  %v2057_v62 = vrot.slane %v2055_v42, 5  ;;  %v6255_v21 = vld [vmem:[#allocation8 + $0x208] sm:$0xff]   ;;  %v6280_v7 = vld [vmem:[#allocation8 + $0x200] sm:$0xff]  }
 0x24c   : > { %3215 = vmatprep.mubr.bf16.mxu0 %v7638_v0  ;;  %v2052_v51 = vor.u32 %v2051_v9, %v2047_v1  ;;  %v2067_v20 = vrot.slane %v1481_v63, 5  ;;  %v7651_v29 = vcombine.low %v1861_v25, %v1871_v27  ;;  %v7661_v34 = vcombine.low %v2031_v48, %v2034_v57  ;;  %v7719_v9 = vld [vmem:[#allocation2 + $0xd0] sm:$0xf]  ;;  %v7721_v42 = vld [vmem:[#allocation2 + $0xd4] sm:$0x1]  ;;  %v8311_v57 = vld [vmem:[#allocation22_spill] sm:$0xff] }
 0x24d   : > { %v2048_v49 = vsel %vm6877_vm2, %v2043_v60, %v2047_v1  ;;  %v2065_v45 = vsel %vm6885_vm5, %v4808_v36, %v2064_v47  ;;  %v2066_v40 = vrot.slane %v2064_v47, 4  ;;  %v2098_v1 = vrot.slane %v7719_v9, 5 }
 0x24e   : > { %3047 = vmatmul.mubr.bf16.gmra.mrb[56].mxu1 %v7569_v56  ;;  %v2053_v10 = vrot.slane %v2052_v51, 4 }
 0x24f   : > { %3054 = vmatprep.mubr.bf16.mxu1 %v7651_v29  ;;  %v2068_v19 = vsel %vm6885_vm5, %v2066_v40, %v2067_v20  ;;  %v2100_v47 = vrot.slane %v2098_v1, 4  ;;  %v8312_v20 = vld [vmem:[#allocation28_spill] sm:$0xff] }
 0x250   : > { %v2058_v63 = vsel %vm6877_vm2, %v2053_v10, %v2057_v62  ;;  %v7665_v38 = vcombine.low %v2065_v45, %v2068_v19 }
 0x251   : > { %v7667_v11 = vcombine.low %v2048_v49, %v2058_v63 }
 0x253   : > { %3216 = vmatmul.mubr.bf16.gmra.mrb[92].mxu0 %v7661_v34 }
 0x254   : > { %3417 = vmatprep.mubr.bf16.mxu0 %v7100_v58 }
 0x256   : > { %3055 = vmatmul.mubr.bf16.gmra.mrb[60].mxu1 %v7601_v54 }
 0x257   : > { %3256 = vmatprep.mubr.bf16.mxu1 %v7059_v18  ;;  %v6257_v18 = vld [vmem:[#allocation8 + $0x218] sm:$0xff]  }
 0x25b   : > { %3418 = vmatmul.mubr.bf16.vlgmr.msra.gmra.mrb[96].mxu0 %v7011_v15  ;;  %v6258_v15 = vld [vmem:[#allocation8 + $0x220] sm:$0xff]  }
 0x25c   : > { %3425 = vmatprep.mubr.bf16.mxu0 %v7188_v46 }
 0x25e   : > { %3257 = vmatmul.mubr.bf16.vlgmr.msra.gmra.mrb[64].mxu1 %v7073_v32  ;;  %v6259_v32 = vld [vmem:[#allocation8 + $0x228] sm:$0xff]  }
 0x25f   : > { %5909 = vmatpush3.bf16.msra.mxu1 %v6280_v7  ;;  %3264 = vmatprep.mubr.bf16.mxu1 %v7114_v22 }
 0x260   : > { %5910 = vmatprep.subr.bf16.mxu1 %v6255_v21 }
 0x263   : > { %3426 = vmatmul.mubr.bf16.gmra.mrb[100].mxu0 %v7069_v28  ;;  %5911 = vmatpush3.bf16.msra.mxu1 %v6255_v21  ;;  %v6260_v28 = vld [vmem:[#allocation8 + $0x230] sm:$0xff]  }
 0x264   : > { %3433 = vmatprep.mubr.bf16.mxu0 %v7208_v55  ;;  %5912 = vmatprep.subr.bf16.mxu1 %v6256_v23 }
 0x266   : > { %3265 = vmatmul.mubr.bf16.gmra.mrb[68].mxu1 %v7100_v58  ;;  %v6261_v58 = vld [vmem:[#allocation8 + $0x238] sm:$0xff]  }
 0x267   : > { %3272 = vmatprep.mubr.bf16.mxu1 %v7173_v24  ;;  %5913 = vmatpush3.bf16.msra.mxu1 %v6256_v23 }
 0x268   : > { %5914 = vmatprep.subr.bf16.mxu1 %v6257_v18 }
 0x26b   : > { %3434 = vmatmul.mubr.bf16.gmra.mrb[104].mxu0 %v7121_v53  ;;  %5915 = vmatpush3.bf16.msra.mxu1 %v6257_v18  ;;  %v7701_v53 = vld [vmem:[%s8237_s4] ss:$0 sm:$0xff]  ;;  %v8313_v18 = vld [vmem:[#allocation25_spill] sm:$0xff] }
 0x26c   : > { %3441 = vmatprep.mubr.bf16.mxu0 %v7280_v59  ;;  %5916 = vmatprep.subr.bf16.mxu1 %v6258_v15 }
 0x26e   : > { %3273 = vmatmul.mubr.bf16.gmra.mrb[72].mxu1 %v7188_v46 }
 0x26f   : > { %3280 = vmatprep.mubr.bf16.mxu1 %v7216_v50  ;;  %5917 = vmatpush3.bf16.msra.mxu1 %v6258_v15 }
 0x270   : > { %5918 = vmatprep.subr.bf16.mxu1 %v6259_v32 }
 0x273   : > { %3442 = vmatmul.mubr.bf16.gmra.mrb[108].mxu0 %v7179_v12  ;;  %5919 = vmatpush3.bf16.msra.mxu1 %v6259_v32  ;;  %v2937_v12 = vadd.f32 %v7626_v43, %v7701_v53 }
 0x274   : > { %3449 = vmatprep.mubr.bf16.mxu0 %v7299_v2  ;;  %5920 = vmatprep.subr.bf16.mxu1 %v6260_v28 }
 0x276   : > { %3281 = vmatmul.mubr.bf16.gmra.mrb[76].mxu1 %v7208_v55 }
 0x277   : > { %3288 = vmatprep.mubr.bf16.mxu1 %v7260_v44  ;;  %5921 = vmatpush3.bf16.msra.mxu1 %v6260_v28  ;;  %v8314_v28 = vld [vmem:[#allocation24_spill] sm:$0xff] }
 0x278   : > { %5922 = vmatprep.subr.bf16.mxu1 %v6261_v58 }
 0x27b   : > { %3450 = vmatmul.mubr.bf16.gmra.mrb[112].mxu0 %v7223_v33  ;;  %5923 = vmatpush3.bf16.msra.mxu1 %v6261_v58  ;;  %v2940_v33 = vadd.f32 %v7631_v52, %v7701_v53  ;;  %v8310_v52 = vld [vmem:[#allocation23_spill] sm:$0xff] }
 0x27c   : > { %3457 = vmatprep.mubr.bf16.mxu0 %v7366_v41 }
 0x27e   : > { %3289 = vmatmul.mubr.bf16.gmra.mrb[80].mxu1 %v7280_v59 }
 0x27f   : > { %3296 = vmatprep.mubr.bf16.mxu1 %v7307_v13 }
 0x283   : > { %3458 = vmatmul.mubr.bf16.gmra.mrb[116].mxu0 %v7266_v26 }
 0x284   : > { %3465 = vmatprep.mubr.bf16.mxu0 %v7385_v4 }
 0x286   : > { %3297 = vmatmul.mubr.bf16.gmra.mrb[84].mxu1 %v7299_v2 }
 0x287   : > { %3304 = vmatprep.mubr.bf16.mxu1 %v7351_v37 }
 0x28b   : > { %3466 = vmatmul.mubr.bf16.gmra.mrb[120].mxu0 %v7314_v35  ;;  %v5468_v46 = vpop.f32.mrb[32].mxu0 }
 0x28c   : > { %3473 = vmatprep.mubr.bf16.mxu0 %v7452_v3  ;;  %v5469_v55 = vpop.f32.mrb[33].mxu0 }
 0x28d   : > { %v5470_v26 = vadd.f32 %v5469_v55, %v5468_v46  ;;  %v5471_v59 = vpop.f32.mrb[34].mxu0 }
 0x28e   : > { %3305 = vmatmul.mubr.bf16.gmra.mrb[88].mxu1 %v7366_v41  ;;  %v5472_v2 = vpop.f32.mrb[35].mxu0  ;;  %v7717_v41 = vld [vmem:[#allocation2 + $0xcc] sm:$0xf] }
 0x28f   : > { %3312 = vmatprep.mubr.bf16.mxu1 %v7393_v31  ;;  %v7710_v35 = vadd.f32 %v5470_v26, %v2937_v12  ;;  %v5473_v14 = vadd.f32 %v5472_v2, %v5471_v59  ;;  %v4809_v27 = vrot.slane %v7717_v41, 9 }
 0x291   : > { %v7714_v43 = vadd.f32 %v5473_v14, %v2940_v33 }
 0x293   : > { %3474 = vmatmul.mubr.bf16.gmra.mrb[124].mxu0 %v7357_v16  ;;  %v2101_v16 = vrot.slane %v7721_v42, 5 }
 0x294   : > { %3481 = vmatprep.mubr.bf16.mxu0 %v7471_v30 }
 0x295   : > { %v7735_v40 = vsel %vm6885_vm5, %v2100_v47, %v2101_v16  ;;  %v8315_v16 = vld [vmem:[#allocation27_spill] sm:$0xff] }
 0x296   : > { %3313 = vmatmul.mubr.bf16.gmra.mrb[92].mxu1 %v7385_v4  ;;  %v5474_v25 = vpop.f32.mrb[36].mxu0  ;;  %v7729_v4 = vsel %vm6885_vm5, %v4809_v27, %v2098_v1 }
 0x297   : > { %3320 = vmatprep.mubr.bf16.mxu1 %v8310_v52  ;;  %v5475_v36 = vpop.f32.mrb[37].mxu0  ;;  %v4863_v63 = vcombine.low %v7729_v4, %v7735_v40 }
 0x298   : > { %v5476_v48 = vadd.f32 %v5475_v36, %v5474_v25  ;;  %v5477_v60 = vpop.f32.mrb[38].mxu0  ;;  %v5362_v51 = vpop.f32.mrb[4].mxu1 }
 0x299   : > { %v5478_v62 = vpop.f32.mrb[39].mxu0  ;;  %v5363_v49 = vpop.f32.mrb[5].mxu1 }
 0x29a   : > { %v5479_v45 = vadd.f32 %v5478_v62, %v5477_v60  ;;  %v5364_v10 = vadd.f32 %v5363_v49, %v5362_v51  ;;  %v5365_v19 = vpop.f32.mrb[6].mxu1  ;;  %v8316_v60 = vld [vmem:[#allocation26_spill] sm:$0xff] }
 0x29b   : > { %3482 = vmatmul.mubr.bf16.gmra.mrb[128].mxu0 %v8311_v57  ;;  %v5366_v21 = vpop.f32.mrb[7].mxu1  ;;  %v8317_v57 = vld [vmem:[#allocation30_spill] sm:$0xff] }
 0x29c   : > { %3489 = vmatprep.mubr.bf16.mxu0 %v8312_v20  ;;  %v2945_v7 = vadd.f32 %v5364_v10, %v7701_v53  ;;  %v5367_v23 = vadd.f32 %v5366_v21, %v5365_v19 }
 0x29e   : > { %3321 = vmatmul.mubr.bf16.gmra.mrb[96].mxu1 %v7452_v3  ;;  %v2948_v15 = vadd.f32 %v5367_v23, %v7701_v53  ;;  %v7743_v32 = vadd.f32 %v5476_v48, %v2945_v7 }
 0x29f   : > { %3328 = vmatprep.mubr.bf16.mxu1 %v8313_v18 }
 0x2a0   : > { %v5480_v17 = vpop.f32.mrb[40].mxu0  ;;  %v5368_v58 = vpop.f32.mrb[8].mxu1  ;;  %v7746_v46 = vadd.f32 %v5479_v45, %v2948_v15 }
 0x2a1   : > { %v5481_v12 = vpop.f32.mrb[41].mxu0  ;;  %v5369_v3 = vpop.f32.mrb[9].mxu1 }
 0x2a2   : > { %v5482_v55 = vadd.f32 %v5481_v12, %v5480_v17  ;;  %v5483_v33 = vpop.f32.mrb[42].mxu0  ;;  %v5370_v26 = vadd.f32 %v5369_v3, %v5368_v58  ;;  %v5371_v59 = vpop.f32.mrb[10].mxu1  ;;  %v2079_v58 = vshll.u32 %v7719_v9, 16  ;;  %v2083_v12 = vshrl.u32 %v7719_v9, 16 }
 0x2a3   : > { %3490 = vmatmul.mubr.bf16.gmra.mrb[132].mxu0 %v8314_v28  ;;  %v5484_v2 = vpop.f32.mrb[43].mxu0  ;;  %v5372_v25 = vpop.f32.mrb[11].mxu1  ;;  %v2070_v28 = vshrl.u32 %v7717_v41, 16 }
 0x2a4   : > { %3497 = vmatprep.mubr.bf16.mxu0 %v7563_v61  ;;  %v5485_v14 = vadd.f32 %v5484_v2, %v5483_v33  ;;  %v2953_v27 = vadd.f32 %v5370_v26, %v7701_v53  ;;  %v5373_v1 = vadd.f32 %v5372_v25, %v5371_v59 }
 0x2a6   : > { %3329 = vmatmul.mubr.bf16.gmra.mrb[100].mxu1 %v7471_v30  ;;  %v2956_v36 = vadd.f32 %v5373_v1, %v7701_v53  ;;  %v7753_v48 = vadd.f32 %v5482_v55, %v2953_v27  ;;  %v8318_v30 = vld [vmem:[#allocation29_spill] sm:$0xff]  ;;  %v2081_v27 = vrot.slane %v2079_v58, 5  ;;  %v2085_v1 = vrot.slane %v2083_v12, 4  ;;  %v6263_v58 = vld [vmem:[#allocation9] sm:$0xff]  }
 0x2a7   : > { %3336 = vmatprep.mubr.bf16.mxu1 %v8315_v16  ;;  %5956 = vmatprep.subr.bf16.mxu0 %v6263_v58 }
 0x2a8   : > { %v7756_v47 = vadd.f32 %v5485_v14, %v2956_v36  ;;  %v2072_v14 = vrot.slane %v2070_v28, 4  ;;  %5957 = vmatpush3.bf16.msra.mxu0 %v6263_v58 }
 0x2ab   : > { %3498 = vmatmul.mubr.bf16.gmra.mrb[136].mxu0 %v8316_v60 }
 0x2ac   : > { %3505 = vmatprep.mubr.bf16.mxu0 %v8317_v57  ;;  %v5486_v51 = vpop.f32.mrb[44].mxu0 }
 0x2ad   : > { %v5487_v62 = vpop.f32.mrb[45].mxu0 }
 0x2ae   : > { %3337 = vmatmul.mubr.bf16.gmra.mrb[104].mxu1 %v8312_v20  ;;  %v5488_v49 = vadd.f32 %v5487_v62, %v5486_v51  ;;  %v5489_v45 = vpop.f32.mrb[46].mxu0  ;;  %v2073_v20 = vshll.u32 %v7717_v41, 16 }
 0x2af   : > { %3344 = vmatprep.mubr.bf16.mxu1 %v8318_v30  ;;  %v5490_v10 = vpop.f32.mrb[47].mxu0 }
 0x2b0   : > { %v5374_v19 = vpop.f32.mrb[12].mxu1  ;;  %v5491_v21 = vadd.f32 %v5490_v10, %v5489_v45  ;;  %v2075_v25 = vrot.slane %v2073_v20, 5 }
 0x2b1   : > { %v5375_v7 = vpop.f32.mrb[13].mxu1 }
 0x2b2   : > { %v5376_v23 = vadd.f32 %v5375_v7, %v5374_v19  ;;  %v5377_v15 = vpop.f32.mrb[14].mxu1 }
 0x2b3   : > { %3506 = vmatmul.mubr.bf16.gmra.mrb[140].mxu0 %v7538_v8  ;;  %v5378_v17 = vpop.f32.mrb[15].mxu1  ;;  %v8319_v8 = vld [vmem:[#allocation31_spill] sm:$0xff] }
 0x2b4   : > { %3513 = vmatprep.mubr.bf16.mxu0 %v7621_v5  ;;  %v2961_v55 = vadd.f32 %v5376_v23, %v7701_v53  ;;  %v5379_v3 = vadd.f32 %v5378_v17, %v5377_v15  ;;  %v2076_v23 = vor.u32 %v2075_v25, %v2072_v14  ;;  %v2086_v15 = vor.u32 %v2085_v1, %v2081_v27 }
 0x2b5   : > { %v2089_v17 = vshll.u32 %v7721_v42, 16 }
 0x2b6   : > { %3345 = vmatmul.mubr.bf16.gmra.mrb[108].mxu1 %v7563_v61  ;;  %v2964_v33 = vadd.f32 %v5379_v3, %v7701_v53  ;;  %v5492_v26 = vpop.f32.mrb[48].mxu0  ;;  %v7771_v59 = vadd.f32 %v5488_v49, %v2961_v55  ;;  %v2077_v12 = vrot.slane %v2076_v23, 4  ;;  %v2087_v55 = vrot.slane %v2086_v15, 4 }
 0x2b7   : > { %3352 = vmatprep.mubr.bf16.mxu1 %v8319_v8  ;;  %v5493_v2 = vpop.f32.mrb[49].mxu0  ;;  %v2091_v3 = vrot.slane %v2089_v17, 5  ;;  %v4861_v23 = vcombine.low %v7717_v41, %v7719_v9 }
 0x2b8   : > { %v5380_v36 = vpop.f32.mrb[16].mxu1  ;;  %v5494_v60 = vadd.f32 %v5493_v2, %v5492_v26  ;;  %v5495_v51 = vpop.f32.mrb[50].mxu0  ;;  %v7773_v62 = vadd.f32 %v5491_v21, %v2964_v33 }
 0x2b9   : > { %v5381_v61 = vpop.f32.mrb[17].mxu1  ;;  %v5496_v45 = vpop.f32.mrb[51].mxu0  ;;  %v2092_v26 = vsel %vm6877_vm2, %v2087_v55, %v2091_v3 }
 0x2ba   : > { %v5382_v10 = vadd.f32 %v5381_v61, %v5380_v36  ;;  %v5383_v19 = vpop.f32.mrb[18].mxu1  ;;  %v5497_v49 = vadd.f32 %v5496_v45, %v5495_v51 }
 0x2bb   : > { %3514 = vmatmul.mubr.bf16.gmra.mrb[144].mxu0 %v7569_v56  ;;  %v5384_v7 = vpop.f32.mrb[19].mxu1 }
 0x2bc   : > { %3521 = vmatprep.mubr.bf16.mxu0 %v7651_v29  ;;  %v2969_v28 = vadd.f32 %v5382_v10, %v7701_v53  ;;  %v5385_v20 = vadd.f32 %v5384_v7, %v5383_v19 }
 0x2be   : > { %3353 = vmatmul.mubr.bf16.gmra.mrb[112].mxu1 %v8317_v57  ;;  %v2972_v56 = vadd.f32 %v5385_v20, %v7701_v53  ;;  %v7782_v21 = vadd.f32 %v5494_v60, %v2969_v28  ;;  %v2082_v57 = vsel %vm6877_vm2, %v2077_v12, %v2081_v27 }
 0x2bf   : > { %3360 = vmatprep.mubr.bf16.mxu1 %v7634_v39  ;;  %v4862_v36 = vcombine.low %v2082_v57, %v2092_v26 }
 0x2c0   : > { %v7784_v33 = vadd.f32 %v5497_v49, %v2972_v56 }
 0x2c3   : > { %3522 = vmatmul.mubr.bf16.gmra.mrb[148].mxu0 %v7601_v54  ;;  %v5498_v42 = vpop.f32.mrb[52].mxu0 }
 0x2c4   : > { %3529 = vmatprep.mubr.bf16.mxu0 %v7667_v11  ;;  %v5499_v2 = vpop.f32.mrb[53].mxu0 }
 0x2c5   : > { %v5500_v14 = vadd.f32 %v5499_v2, %v5498_v42  ;;  %v5501_v25 = vpop.f32.mrb[54].mxu0 }
 0x2c6   : > { %3361 = vmatmul.mubr.bf16.gmra.mrb[116].mxu1 %v7621_v5  ;;  %v5502_v1 = vpop.f32.mrb[55].mxu0  ;;  %v5386_v60 = vpop.f32.mrb[20].mxu1  ;;  %v6264_v5 = vld [vmem:[#allocation9 + $0x8] sm:$0xff]  }
 0x2c7   : > { %3368 = vmatprep.mubr.bf16.mxu1 %v7661_v34  ;;  %v5503_v54 = vadd.f32 %v5502_v1, %v5501_v25  ;;  %v5387_v51 = vpop.f32.mrb[21].mxu1  ;;  %5958 = vmatprep.subr.bf16.mxu0 %v6264_v5 }
 0x2c8   : > { %v5388_v61 = vadd.f32 %v5387_v51, %v5386_v60  ;;  %v5389_v45 = vpop.f32.mrb[22].mxu1  ;;  %5959 = vmatpush3.bf16.msra.mxu0 %v6264_v5  ;;  %v6265_v51 = vld [vmem:[#allocation9 + $0x10] sm:$0xff]  }
 0x2c9   : > { %v5390_v27 = vpop.f32.mrb[23].mxu1  ;;  %5960 = vmatprep.subr.bf16.mxu0 %v6265_v51 }
 0x2ca   : > { %v2977_v6 = vadd.f32 %v5388_v61, %v7701_v53  ;;  %v5391_v10 = vadd.f32 %v5390_v27, %v5389_v45 }
 0x2cb   : > { %3530 = vmatmul.mubr.bf16.gmra.mrb[152].mxu0 %v7638_v0 }
 0x2cc   : > { %3537 = vmatprep.mubr.bf16.mxu0 %v4862_v36  ;;  %v2980_v19 = vadd.f32 %v5391_v10, %v7701_v53  ;;  %v7797_v7 = vadd.f32 %v5500_v14, %v2977_v6  ;;  %5961 = vmatpush3.bf16.msra.mxu0 %v6265_v51 }
 0x2cd   : > { %v5504_v49 = vpop.f32.mrb[56].mxu0 }
 0x2ce   : > { %3369 = vmatmul.mubr.bf16.gmra.mrb[120].mxu1 %v7651_v29  ;;  %v5505_v15 = vpop.f32.mrb[57].mxu0  ;;  %v5392_v0 = vpop.f32.mrb[24].mxu1  ;;  %v7803_v20 = vadd.f32 %v5503_v54, %v2980_v19 }
 0x2cf   : > { %3376 = vmatprep.mubr.bf16.mxu1 %v7665_v38  ;;  %v5506_v17 = vadd.f32 %v5505_v15, %v5504_v49  ;;  %v5507_v28 = vpop.f32.mrb[58].mxu0  ;;  %v5393_v58 = vpop.f32.mrb[25].mxu1 }
 0x2d0   : > { %v5508_v56 = vpop.f32.mrb[59].mxu0  ;;  %v5394_v12 = vadd.f32 %v5393_v58, %v5392_v0  ;;  %v5395_v55 = vpop.f32.mrb[26].mxu1 }
 0x2d1   : > { %v5509_v3 = vadd.f32 %v5508_v56, %v5507_v28  ;;  %v5396_v29 = vpop.f32.mrb[27].mxu1 }
 0x2d2   : > { %v2985_v42 = vadd.f32 %v5394_v12, %v7701_v53  ;;  %v5397_v41 = vadd.f32 %v5396_v29, %v5395_v55 }
 0x2d3   : > { %3538 = vmatmul.mubr.bf16.gmra.mrb[156].mxu0 %v4861_v23 }
 0x2d4   : > { %v2988_v9 = vadd.f32 %v5397_v41, %v7701_v53  ;;  %v7807_v57 = vadd.f32 %v5506_v17, %v2985_v42  ;;  %v6266_v41 = vld [vmem:[#allocation9 + $0x18] sm:$0xff]  }
 0x2d5   : > { %5962 = vmatprep.subr.bf16.mxu0 %v6266_v41 }
 0x2d6   : > { %3377 = vmatmul.mubr.bf16.gmra.mrb[124].mxu1 %v7667_v11  ;;  %v7811_v26 = vadd.f32 %v5509_v3, %v2988_v9  ;;  %5963 = vmatpush3.bf16.msra.mxu0 %v6266_v41  ;;  %v6269_v41 = vld [vmem:[#allocation11 + $0x8] sm:$0xff]  }
 0x2d7   : > { %5924 = vmatprep.mubr.bf16.mxu1 %v7114_v22 }
 0x2d9   : > { %v5510_v2 = vpop.f32.mrb[60].mxu0 }
 0x2da   : > { %v5511_v14 = vpop.f32.mrb[61].mxu0 }
 0x2db   : > { %v5512_v25 = vadd.f32 %v5511_v14, %v5510_v2  ;;  %v5513_v1 = vpop.f32.mrb[62].mxu0 }
 0x2dc   : > { %v5514_v36 = vpop.f32.mrb[63].mxu0  ;;  %v5398_v60 = vpop.f32.mrb[28].mxu1 }
 0x2dd   : > { %v5515_v54 = vadd.f32 %v5514_v36, %v5513_v1  ;;  %v5399_v61 = vpop.f32.mrb[29].mxu1 }
 0x2de   : > { %5925 = vmatmul.mubr.bf16.vlgmr.msra.gmra.mrb[128].mxu1 %v7173_v24  ;;  %v5400_v45 = vadd.f32 %v5399_v61, %v5398_v60  ;;  %v5401_v27 = vpop.f32.mrb[30].mxu1 }
 0x2df   : > { %5928 = vmatprep.mubr.bf16.mxu1 %v7216_v50  ;;  %v5402_v11 = vpop.f32.mrb[31].mxu1 }
 0x2e0   : > { %v2993_v22 = vadd.f32 %v5400_v45, %v7701_v53  ;;  %v5403_v6 = vadd.f32 %v5402_v11, %v5401_v27 }
 0x2e2   : > { %v2996_v10 = vadd.f32 %v5403_v6, %v7701_v53  ;;  %v7817_v49 = vadd.f32 %v5512_v25, %v2993_v22 }
 0x2e3   : > { %v5516_v19 = vpop.f32.mrb[64].mxu0 }
 0x2e4   : > { %v5517_v5 = vpop.f32.mrb[65].mxu0  ;;  %v5404_v23 = vpop.f32.mrb[32].mxu1  ;;  %v7819_v0 = vadd.f32 %v5515_v54, %v2996_v10 }
 0x2e5   : > { %v5518_v15 = vadd.f32 %v5517_v5, %v5516_v19  ;;  %v5519_v24 = vpop.f32.mrb[66].mxu0  ;;  %v5405_v50 = vpop.f32.mrb[33].mxu1 }
 0x2e6   : > { %5929 = vmatmul.mubr.bf16.gmra.mrb[132].mxu1 %v7260_v44  ;;  %v5520_v17 = vpop.f32.mrb[67].mxu0  ;;  %v5406_v28 = vadd.f32 %v5405_v50, %v5404_v23  ;;  %v5407_v58 = vpop.f32.mrb[34].mxu1 }
 0x2e7   : > { %5932 = vmatprep.mubr.bf16.mxu1 %v7307_v13  ;;  %v5521_v56 = vadd.f32 %v5520_v17, %v5519_v24  ;;  %v5408_v12 = vpop.f32.mrb[35].mxu1  ;;  %v6268_v17 = vld [vmem:[#allocation11] sm:$0xff]  }
 0x2e8   : > { %v3001_v55 = vadd.f32 %v5406_v28, %v7701_v53  ;;  %v5409_v3 = vadd.f32 %v5408_v12, %v5407_v58  ;;  %6004 = vmatprep.subr.bf16.mxu1 %v6268_v17 }
 0x2e9   : > { %6005 = vmatpush3.bf16.msra.mxu1 %v6268_v17  ;;  %v6272_v17 = vld [vmem:[#allocation11 + $0x18] sm:$0xff]  }
 0x2ea   : > { %v3004_v29 = vadd.f32 %v5409_v3, %v7701_v53  ;;  %v7825_v42 = vadd.f32 %v5518_v15, %v3001_v55  ;;  %6006 = vmatprep.subr.bf16.mxu1 %v6269_v41 }
 0x2ec   : > { %v7827_v9 = vadd.f32 %v5521_v56, %v3004_v29 }
 0x2ed   : > { %6007 = vmatpush3.bf16.msra.mxu1 %v6269_v41  ;;  %v6281_v41 = vld [vmem:[%s6847_s28] sm:$0xff]  }
 0x2ee   : > { %5933 = vmatmul.mubr.bf16.gmra.mrb[136].mxu1 %v7351_v37 }
 0x2ef   : > { %5936 = vmatprep.mubr.bf16.mxu1 %v7393_v31  ;;  %v5522_v44 = vpop.f32.mrb[68].mxu0 }
 0x2f0   : > { %v5523_v13 = vpop.f32.mrb[69].mxu0 }
 0x2f1   : > { %v5524_v2 = vadd.f32 %v5523_v13, %v5522_v44  ;;  %v5525_v14 = vpop.f32.mrb[70].mxu0 }
 0x2f2   : > { %v5526_v25 = vpop.f32.mrb[71].mxu0 }
 0x2f3   : > { %v5410_v1 = vpop.f32.mrb[36].mxu1  ;;  %v5527_v36 = vadd.f32 %v5526_v25, %v5525_v14 }
 0x2f4   : > { %v5411_v60 = vpop.f32.mrb[37].mxu1 }
 0x2f5   : > { %v5412_v54 = vadd.f32 %v5411_v60, %v5410_v1  ;;  %v5413_v51 = vpop.f32.mrb[38].mxu1 }
 0x2f6   : > { %5937 = vmatmul.mubr.bf16.gmra.mrb[140].mxu1 %v8310_v52  ;;  %v5414_v61 = vpop.f32.mrb[39].mxu1 }
 0x2f7   : > { %5940 = vmatprep.mubr.bf16.mxu1 %v8313_v18  ;;  %v3009_v37 = vadd.f32 %v5412_v54, %v7701_v53  ;;  %v5415_v31 = vadd.f32 %v5414_v61, %v5413_v51  ;;  %v6267_v18 = vld [vmem:[#allocation9 + $0x20] sm:$0xff]  }
 0x2f8   : > { %5964 = vmatprep.subr.bf16.mxu0 %v6267_v18 }
 0x2f9   : > { %v3012_v45 = vadd.f32 %v5415_v31, %v7701_v53  ;;  %v5528_v27 = vpop.f32.mrb[72].mxu0  ;;  %v7835_v11 = vadd.f32 %v5524_v2, %v3009_v37  ;;  %5965 = vmatpush3.bf16.msra.mxu0 %v6267_v18  ;;  %v6270_v37 = vld [vmem:[#allocation9 + $0x28] sm:$0xff]  }
 0x2fa   : > { %v5529_v22 = vpop.f32.mrb[73].mxu0  ;;  %5966 = vmatprep.subr.bf16.mxu0 %v6270_v37 }
 0x2fb   : > { %v5416_v6 = vpop.f32.mrb[40].mxu1  ;;  %v5530_v10 = vadd.f32 %v5529_v22, %v5528_v27  ;;  %v5531_v19 = vpop.f32.mrb[74].mxu0  ;;  %v7837_v5 = vadd.f32 %v5527_v36, %v3012_v45 }
 0x2fc   : > { %v5417_v23 = vpop.f32.mrb[41].mxu1  ;;  %v5532_v15 = vpop.f32.mrb[75].mxu0 }
 0x2fd   : > { %v5418_v52 = vadd.f32 %v5417_v23, %v5416_v6  ;;  %v5419_v24 = vpop.f32.mrb[42].mxu1  ;;  %v5533_v50 = vadd.f32 %v5532_v15, %v5531_v19  ;;  %5967 = vmatpush3.bf16.msra.mxu0 %v6270_v37 }
 0x2fe   : > { %5941 = vmatmul.mubr.bf16.gmra.mrb[144].mxu1 %v8315_v16  ;;  %v5420_v28 = vpop.f32.mrb[43].mxu1 }
 0x2ff   : > { %5944 = vmatprep.mubr.bf16.mxu1 %v8318_v30  ;;  %v3017_v58 = vadd.f32 %v5418_v52, %v7701_v53  ;;  %v5421_v56 = vadd.f32 %v5420_v28, %v5419_v24 }
 0x301   : > { %v3020_v12 = vadd.f32 %v5421_v56, %v7701_v53  ;;  %v7843_v55 = vadd.f32 %v5530_v10, %v3017_v58 }
 0x303   : > { %v7845_v3 = vadd.f32 %v5533_v50, %v3020_v12 }
 0x306   : > { %v5534_v29 = vpop.f32.mrb[76].mxu0  ;;  %5945 = vmatmul.mubr.bf16.gmra.mrb[148].mxu1 %v8319_v8  ;;  %v6271_v8 = vld [vmem:[#allocation11 + $0x10] sm:$0xff]  }
 0x307   : > { %v5535_v16 = vpop.f32.mrb[77].mxu0  ;;  %5948 = vmatprep.mubr.bf16.mxu1 %v7634_v39  ;;  %6008 = vmatprep.subr.bf16.mxu1 %v6271_v8 }
 0x308   : > { %v5536_v30 = vadd.f32 %v5535_v16, %v5534_v29  ;;  %v5537_v44 = vpop.f32.mrb[78].mxu0  ;;  %6009 = vmatpush3.bf16.msra.mxu1 %v6271_v8 }
 0x309   : > { %v5538_v13 = vpop.f32.mrb[79].mxu0  ;;  %v5422_v2 = vpop.f32.mrb[44].mxu1  ;;  %6010 = vmatprep.subr.bf16.mxu1 %v6272_v17 }
 0x30a   : > { %v5539_v14 = vadd.f32 %v5538_v13, %v5537_v44  ;;  %v5423_v25 = vpop.f32.mrb[45].mxu1 }
 0x30b   : > { %v5424_v1 = vadd.f32 %v5423_v25, %v5422_v2  ;;  %v5425_v36 = vpop.f32.mrb[46].mxu1 }
 0x30c   : > { %v5426_v60 = vpop.f32.mrb[47].mxu1  ;;  %6011 = vmatpush3.bf16.msra.mxu1 %v6272_v17 }
 0x30d   : > { %v3025_v54 = vadd.f32 %v5424_v1, %v7701_v53  ;;  %v5427_v51 = vadd.f32 %v5426_v60, %v5425_v36  ;;  %v6273_v36 = vld [vmem:[#allocation9 + $0x30] sm:$0xff]   ;;  %v6274_v60 = vld [vmem:[#allocation11 + $0x20] sm:$0xff]  }
 0x30e   : > { %v5540_v61 = vpop.f32.mrb[80].mxu0  ;;  %5949 = vmatmul.mubr.bf16.gmra.mrb[152].mxu1 %v7661_v34  ;;  %5968 = vmatprep.subr.bf16.mxu0 %v6273_v36 }
 0x30f   : > { %v5541_v39 = vpop.f32.mrb[81].mxu0  ;;  %v3028_v31 = vadd.f32 %v5427_v51, %v7701_v53  ;;  %5952 = vmatprep.mubr.bf16.mxu1 %v7665_v38  ;;  %v7853_v22 = vadd.f32 %v5536_v30, %v3025_v54  ;;  %6012 = vmatprep.subr.bf16.mxu1 %v6274_v60 }
 0x310   : > { %v5542_v45 = vadd.f32 %v5541_v39, %v5540_v61  ;;  %v5543_v27 = vpop.f32.mrb[82].mxu0  ;;  %5969 = vmatpush3.bf16.msra.mxu0 %v6273_v36  ;;  %6013 = vmatpush3.bf16.msra.mxu1 %v6274_v60 }
 0x311   : > { %v5544_v6 = vpop.f32.mrb[83].mxu0  ;;  %v5428_v10 = vpop.f32.mrb[48].mxu1  ;;  %v7855_v23 = vadd.f32 %v5539_v14, %v3028_v31 }
 0x312   : > { %v5545_v19 = vadd.f32 %v5544_v6, %v5543_v27  ;;  %v5429_v34 = vpop.f32.mrb[49].mxu1 }
 0x313   : > { %v5430_v15 = vadd.f32 %v5429_v34, %v5428_v10  ;;  %v5431_v52 = vpop.f32.mrb[50].mxu1 }
 0x314   : > { %v5432_v24 = vpop.f32.mrb[51].mxu1 }
 0x315   : > { %v3033_v38 = vadd.f32 %v5430_v15, %v7701_v53  ;;  %v5433_v50 = vadd.f32 %v5432_v24, %v5431_v52 }
 0x316   : > { %v5546_v18 = vpop.f32.mrb[84].mxu0  ;;  %5953 = vmatmul.mubr.bf16.gmra.mrb[156].mxu1 %v4863_v63 }
 0x317   : > { %v5547_v28 = vpop.f32.mrb[85].mxu0  ;;  %v3036_v58 = vadd.f32 %v5433_v50, %v7701_v53  ;;  %v7862_v29 = vadd.f32 %v5542_v45, %v3033_v38  ;;  %6020 = vmatprep.mubr.bf16.mxu1 %v6281_v41  ;;  %v6275_v38 = vld [vmem:[#allocation11 + $0x28] sm:$0xff]  }
 0x318   : > { %v5548_v56 = vadd.f32 %v5547_v28, %v5546_v18  ;;  %v5549_v12 = vpop.f32.mrb[86].mxu0  ;;  %6014 = vmatprep.subr.bf16.mxu1 %v6275_v38 }
 0x319   : > { %v5550_v16 = vpop.f32.mrb[87].mxu0  ;;  %v5434_v30 = vpop.f32.mrb[52].mxu1  ;;  %v7865_v13 = vadd.f32 %v5545_v19, %v3036_v58  ;;  %6015 = vmatpush3.bf16.msra.mxu1 %v6275_v38 }
 0x31a   : > { %v5551_v44 = vadd.f32 %v5550_v16, %v5549_v12  ;;  %v5435_v2 = vpop.f32.mrb[53].mxu1 }
 0x31b   : > { %v5436_v14 = vadd.f32 %v5435_v2, %v5434_v30  ;;  %v5437_v4 = vpop.f32.mrb[54].mxu1 }
 0x31c   : > { %v5438_v40 = vpop.f32.mrb[55].mxu1 }
 0x31d   : > { %v3041_v63 = vadd.f32 %v5436_v14, %v7701_v53  ;;  %v5439_v25 = vadd.f32 %v5438_v40, %v5437_v4 }
 0x31e   : > { %v5552_v1 = vpop.f32.mrb[88].mxu0 }
 0x31f   : > { %v5553_v54 = vpop.f32.mrb[89].mxu0  ;;  %v3044_v51 = vadd.f32 %v5439_v25, %v7701_v53  ;;  %v7869_v8 = vadd.f32 %v5548_v56, %v3041_v63  ;;  %v6276_v25 = vld [vmem:[#allocation9 + $0x38] sm:$0xff]  }
 0x320   : > { %v5554_v61 = vadd.f32 %v5553_v54, %v5552_v1  ;;  %v5555_v37 = vpop.f32.mrb[90].mxu0  ;;  %v6277_v1 = vld [vmem:[#allocation11 + $0x30] sm:$0xff]   ;;  %5970 = vmatprep.subr.bf16.mxu0 %v6276_v25 }
 0x321   : > { %v5556_v39 = vpop.f32.mrb[91].mxu0  ;;  %v5440_v31 = vpop.f32.mrb[56].mxu1  ;;  %v7871_v27 = vadd.f32 %v5551_v44, %v3044_v51  ;;  %6016 = vmatprep.subr.bf16.mxu1 %v6277_v1  ;;  %5971 = vmatpush3.bf16.msra.mxu0 %v6276_v25  ;;  %v6282_v25 = vld [vmem:[%s6847_s28 + $0x8] sm:$0xff]  }
 0x322   : > { %v5557_v45 = vadd.f32 %v5556_v39, %v5555_v37  ;;  %v5441_v6 = vpop.f32.mrb[57].mxu1  ;;  %6017 = vmatpush3.bf16.msra.mxu1 %v6277_v1 }
 0x323   : > { %v5442_v10 = vadd.f32 %v5441_v6, %v5440_v31  ;;  %v5443_v19 = vpop.f32.mrb[58].mxu1 }
 0x324   : > { %v5444_v34 = vpop.f32.mrb[59].mxu1 }
 0x325   : > { %v3049_v15 = vadd.f32 %v5442_v10, %v7701_v53  ;;  %v5445_v52 = vadd.f32 %v5444_v34, %v5443_v19 }
 0x326   : > { %v5558_v24 = vpop.f32.mrb[92].mxu0 }
 0x327   : > { %v5559_v50 = vpop.f32.mrb[93].mxu0  ;;  %v3052_v18 = vadd.f32 %v5445_v52, %v7701_v53  ;;  %v7875_v58 = vadd.f32 %v5554_v61, %v3049_v15 }
 0x328   : > { %v5560_v17 = vadd.f32 %v5559_v50, %v5558_v24  ;;  %v5561_v28 = vpop.f32.mrb[94].mxu0 }
 0x329   : > { %v5562_v56 = vpop.f32.mrb[95].mxu0  ;;  %v5446_v12 = vpop.f32.mrb[60].mxu1  ;;  %v7877_v16 = vadd.f32 %v5557_v45, %v3052_v18 }
 0x32a   : > { %v5563_v41 = vadd.f32 %v5562_v56, %v5561_v28  ;;  %v5447_v30 = vpop.f32.mrb[61].mxu1  ;;  %v6278_v56 = vld [vmem:[#allocation11 + $0x38] sm:$0xff]  }
 0x32b   : > { %v5448_v44 = vadd.f32 %v5447_v30, %v5446_v12  ;;  %v5449_v2 = vpop.f32.mrb[62].mxu1  ;;  %6018 = vmatprep.subr.bf16.mxu1 %v6278_v56 }
 0x32c   : > { %v5450_v14 = vpop.f32.mrb[63].mxu1  ;;  %6019 = vmatpush3.bf16.msra.mxu1 %v6278_v56  ;;  %v6285_v56 = vld [vmem:[%s6847_s28 + $0x20] sm:$0xff]  }
 0x32d   : > { %v3057_v4 = vadd.f32 %v5448_v44, %v7701_v53  ;;  %v5451_v40 = vadd.f32 %v5450_v14, %v5449_v2 }
 0x32e   : > { %v5692_v63 = vpop.f32.mrb[96].mxu0 }
 0x32f   : > { %v5693_v36 = vpop.f32.mrb[97].mxu0  ;;  %v3060_v60 = vadd.f32 %v5451_v40, %v7701_v53  ;;  %v7881_v61 = vadd.f32 %v5560_v17, %v3057_v4  ;;  %6021 = vmatmul.mubr.bf16.vlgmr.msra.gmra.mrb[160].mxu1 %v6282_v25  ;;  %v6286_v25 = vld [vmem:[%s6847_s28 + $0x28] sm:$0xff]  }
 0x330   : > { %v5694_v54 = vadd.f32 %v5693_v36, %v5692_v63  ;;  %v5695_v51 = vpop.f32.mrb[98].mxu0 }
 0x331   : > { %v5696_v37 = vpop.f32.mrb[99].mxu0  ;;  %v5580_v39 = vpop.f32.mrb[64].mxu1  ;;  %v7883_v45 = vadd.f32 %v5563_v41, %v3060_v60 }
 0x332   : > { %v5697_v31 = vadd.f32 %v5696_v37, %v5695_v51  ;;  %v5581_v6 = vpop.f32.mrb[65].mxu1  ;;  %v6283_v51 = vld [vmem:[%s6847_s28 + $0x10] sm:$0xff]  }
 0x333   : > { %v5582_v10 = vadd.f32 %v5581_v6, %v5580_v39  ;;  %v5583_v19 = vpop.f32.mrb[66].mxu1  ;;  %6024 = vmatprep.mubr.bf16.mxu1 %v6283_v51 }
 0x334   : > { %v5584_v34 = vpop.f32.mrb[67].mxu1 }
 0x335   : > { %v3259_v15 = vadd.f32 %v5582_v10, %v7710_v35  ;;  %v5585_v53 = vadd.f32 %v5584_v34, %v5583_v19 }
 0x336   : > { %v5698_v52 = vpop.f32.mrb[100].mxu0 }
 0x337   : > { %v5699_v24 = vpop.f32.mrb[101].mxu0  ;;  %v3262_v38 = vadd.f32 %v5585_v53, %v7714_v43  ;;  %v7887_v17 = vadd.f32 %v5694_v54, %v3259_v15 }
 0x338   : > { %v5700_v50 = vadd.f32 %v5699_v24, %v5698_v52  ;;  %v5701_v18 = vpop.f32.mrb[102].mxu0  ;;  %v6284_v24 = vld [vmem:[%s6847_s28 + $0x18] sm:$0xff]  }
 0x339   : > { %v5702_v28 = vpop.f32.mrb[103].mxu0  ;;  %v5586_v12 = vpop.f32.mrb[68].mxu1  ;;  %v7889_v30 = vadd.f32 %v5697_v31, %v3262_v38  ;;  %6025 = vmatmul.mubr.bf16.gmra.mrb[164].mxu1 %v6284_v24  ;;  %v6288_v24 = vld [vmem:[%s6847_s28 + $0x38] sm:$0xff]  }
 0x33a   : > { %v5703_v41 = vadd.f32 %v5702_v28, %v5701_v18  ;;  %v5587_v44 = vpop.f32.mrb[69].mxu1  ;;  %6028 = vmatprep.mubr.bf16.mxu1 %v6285_v56 }
 0x33b   : > { %v5588_v35 = vadd.f32 %v5587_v44, %v5586_v12  ;;  %v5589_v2 = vpop.f32.mrb[70].mxu1 }
 0x33c   : > { %v5590_v14 = vpop.f32.mrb[71].mxu1 }
 0x33d   : > { %v3267_v43 = vadd.f32 %v5588_v35, %v7743_v32  ;;  %v5591_v4 = vadd.f32 %v5590_v14, %v5589_v2 }
 0x33e   : > { %v5704_v40 = vpop.f32.mrb[104].mxu0 }
 0x33f   : > { %v5705_v63 = vpop.f32.mrb[105].mxu0  ;;  %v3270_v1 = vadd.f32 %v5591_v4, %v7746_v46  ;;  %v7894_v54 = vadd.f32 %v5700_v50, %v3267_v43 }
 0x340   : > { %v5706_v36 = vadd.f32 %v5705_v63, %v5704_v40  ;;  %v5707_v60 = vpop.f32.mrb[106].mxu0 }
 0x341   : > { %v5708_v37 = vpop.f32.mrb[107].mxu0  ;;  %v5592_v39 = vpop.f32.mrb[72].mxu1  ;;  %v7897_v6 = vadd.f32 %v5703_v41, %v3270_v1  ;;  %6029 = vmatmul.mubr.bf16.gmra.mrb[168].mxu1 %v6286_v25  ;;  %v6290_v25 = vld [vmem:[%s6847_s28 + $0x48] sm:$0xff]  }
 0x342   : > { %v5709_v31 = vadd.f32 %v5708_v37, %v5707_v60  ;;  %v5593_v32 = vpop.f32.mrb[73].mxu1  ;;  %v6287_v37 = vld [vmem:[%s6847_s28 + $0x30] sm:$0xff]  }
 0x343   : > { %v5594_v10 = vadd.f32 %v5593_v32, %v5592_v39  ;;  %v5595_v19 = vpop.f32.mrb[74].mxu1  ;;  %6032 = vmatprep.mubr.bf16.mxu1 %v6287_v37 }
 0x344   : > { %v5596_v34 = vpop.f32.mrb[75].mxu1 }
 0x345   : > { %v3275_v15 = vadd.f32 %v5594_v10, %v7753_v48  ;;  %v5597_v46 = vadd.f32 %v5596_v34, %v5595_v19 }
 0x346   : > { %v5710_v53 = vpop.f32.mrb[108].mxu0 }
 0x347   : > { %v5711_v52 = vpop.f32.mrb[109].mxu0  ;;  %v3278_v38 = vadd.f32 %v5597_v46, %v7756_v47  ;;  %v7902_v28 = vadd.f32 %v5706_v36, %v3275_v15 }
 0x348   : > { %v5712_v50 = vadd.f32 %v5711_v52, %v5710_v53  ;;  %v5713_v18 = vpop.f32.mrb[110].mxu0 }
 0x349   : > { %v5714_v12 = vpop.f32.mrb[111].mxu0  ;;  %v5598_v41 = vpop.f32.mrb[76].mxu1  ;;  %v7905_v35 = vadd.f32 %v5709_v31, %v3278_v38  ;;  %6033 = vmatmul.mubr.bf16.gmra.mrb[172].mxu1 %v6288_v24  ;;  %v6292_v24 = vld [vmem:[%s6847_s28 + $0x58] sm:$0xff]  }
 0x34a   : > { %v5715_v44 = vadd.f32 %v5714_v12, %v5713_v18  ;;  %v5599_v48 = vpop.f32.mrb[77].mxu1  ;;  %v6289_v12 = vld [vmem:[%s6847_s28 + $0x40] sm:$0xff]  }
 0x34b   : > { %v5600_v2 = vadd.f32 %v5599_v48, %v5598_v41  ;;  %v5601_v14 = vpop.f32.mrb[78].mxu1  ;;  %6036 = vmatprep.mubr.bf16.mxu1 %v6289_v12 }
 0x34c   : > { %v5602_v43 = vpop.f32.mrb[79].mxu1 }
 0x34d   : > { %v3283_v4 = vadd.f32 %v5600_v2, %v7771_v59  ;;  %v5603_v47 = vadd.f32 %v5602_v43, %v5601_v14 }
 0x34e   : > { %v5716_v40 = vpop.f32.mrb[112].mxu0 }
 0x34f   : > { %v5717_v63 = vpop.f32.mrb[113].mxu0  ;;  %v3286_v1 = vadd.f32 %v5603_v47, %v7773_v62  ;;  %v7910_v51 = vadd.f32 %v5712_v50, %v3283_v4 }
 0x350   : > { %v5718_v36 = vadd.f32 %v5717_v63, %v5716_v40  ;;  %v5719_v60 = vpop.f32.mrb[114].mxu0 }
 0x351   : > { %v5720_v39 = vpop.f32.mrb[115].mxu0  ;;  %v5604_v31 = vpop.f32.mrb[80].mxu1  ;;  %v7913_v10 = vadd.f32 %v5715_v44, %v3286_v1  ;;  %6037 = vmatmul.mubr.bf16.gmra.mrb[176].mxu1 %v6290_v25  ;;  %v6294_v25 = vld [vmem:[%s6847_s28 + $0x68] sm:$0xff]  }
 0x352   : > { %v5721_v32 = vadd.f32 %v5720_v39, %v5719_v60  ;;  %v5605_v59 = vpop.f32.mrb[81].mxu1  ;;  %v6291_v39 = vld [vmem:[%s6847_s28 + $0x50] sm:$0xff]  }
 0x353   : > { %v5606_v19 = vadd.f32 %v5605_v59, %v5604_v31  ;;  %v5607_v34 = vpop.f32.mrb[82].mxu1  ;;  %6040 = vmatprep.mubr.bf16.mxu1 %v6291_v39 }
 0x354   : > { %v5608_v15 = vpop.f32.mrb[83].mxu1 }
 0x355   : > { %v3291_v46 = vadd.f32 %v5606_v19, %v7782_v21  ;;  %v5609_v62 = vadd.f32 %v5608_v15, %v5607_v34 }
 0x356   : > { %v5722_v53 = vpop.f32.mrb[116].mxu0 }
 0x357   : > { %v5723_v52 = vpop.f32.mrb[117].mxu0  ;;  %v3294_v38 = vadd.f32 %v5609_v62, %v7784_v33  ;;  %v7918_v56 = vadd.f32 %v5718_v36, %v3291_v46 }
 0x358   : > { %v5724_v50 = vadd.f32 %v5723_v52, %v5722_v53  ;;  %v5725_v18 = vpop.f32.mrb[118].mxu0 }
 0x359   : > { %v5726_v41 = vpop.f32.mrb[119].mxu0  ;;  %v5610_v44 = vpop.f32.mrb[84].mxu1  ;;  %v7921_v2 = vadd.f32 %v5721_v32, %v3294_v38  ;;  %6041 = vmatmul.mubr.bf16.gmra.mrb[180].mxu1 %v6292_v24  ;;  %v6296_v24 = vld [vmem:[%s6847_s28 + $0x78] sm:$0xff]  }
 0x35a   : > { %v5727_v48 = vadd.f32 %v5726_v41, %v5725_v18  ;;  %v5611_v21 = vpop.f32.mrb[85].mxu1  ;;  %v6293_v41 = vld [vmem:[%s6847_s28 + $0x60] sm:$0xff]  }
 0x35b   : > { %v5612_v14 = vadd.f32 %v5611_v21, %v5610_v44  ;;  %v5613_v43 = vpop.f32.mrb[86].mxu1  ;;  %6044 = vmatprep.mubr.bf16.mxu1 %v6293_v41 }
 0x35c   : > { %v5614_v4 = vpop.f32.mrb[87].mxu1 }
 0x35d   : > { %v3299_v47 = vadd.f32 %v5612_v14, %v7797_v7  ;;  %v5615_v33 = vadd.f32 %v5614_v4, %v5613_v43 }
 0x35e   : > { %v5728_v40 = vpop.f32.mrb[120].mxu0 }
 0x35f   : > { %v5729_v63 = vpop.f32.mrb[121].mxu0  ;;  %v3302_v1 = vadd.f32 %v5615_v33, %v7803_v20  ;;  %v7926_v37 = vadd.f32 %v5724_v50, %v3299_v47 }
 0x360   : > { %v5730_v36 = vadd.f32 %v5729_v63, %v5728_v40  ;;  %v5731_v60 = vpop.f32.mrb[122].mxu0 }
 0x361   : > { %v5732_v31 = vpop.f32.mrb[123].mxu0  ;;  %v5616_v32 = vpop.f32.mrb[88].mxu1  ;;  %v7929_v19 = vadd.f32 %v5727_v48, %v3302_v1  ;;  %6045 = vmatmul.mubr.bf16.gmra.mrb[184].mxu1 %v6294_v25 }
 0x362   : > { %v5733_v59 = vadd.f32 %v5732_v31, %v5731_v60  ;;  %v5617_v7 = vpop.f32.mrb[89].mxu1  ;;  %v6295_v31 = vld [vmem:[%s6847_s28 + $0x70] sm:$0xff]   ;;  %s8090_s28 = scalar_lea.hbm %s8243_s10, %s5124_s13 }
 0x363   : > { %v5618_v34 = vadd.f32 %v5617_v7, %v5616_v32  ;;  %v5619_v15 = vpop.f32.mrb[90].mxu1  ;;  %6048 = vmatprep.mubr.bf16.mxu1 %v6295_v31 }
 0x364   : > { %v5620_v46 = vpop.f32.mrb[91].mxu1 }
 0x365   : > { %v3307_v62 = vadd.f32 %v5618_v34, %v7807_v57  ;;  %v5621_v20 = vadd.f32 %v5620_v46, %v5619_v15 }
 0x366   : > { %v5734_v53 = vpop.f32.mrb[124].mxu0 }
 0x367   : > { %v5735_v52 = vpop.f32.mrb[125].mxu0  ;;  %v3310_v38 = vadd.f32 %v5621_v20, %v7811_v26  ;;  %v7934_v12 = vadd.f32 %v5730_v36, %v3307_v62 }
 0x368   : > { %v5736_v50 = vadd.f32 %v5735_v52, %v5734_v53  ;;  %v5737_v18 = vpop.f32.mrb[126].mxu0 }
 0x369   : > { %v5738_v44 = vpop.f32.mrb[127].mxu0  ;;  %v5622_v48 = vpop.f32.mrb[92].mxu1  ;;  %v7937_v14 = vadd.f32 %v5733_v59, %v3310_v38  ;;  %6049 = vmatmul.mubr.bf16.gmra.mrb[188].mxu1 %v6296_v24 }
 0x36a   : > { %v5739_v21 = vadd.f32 %v5738_v44, %v5737_v18  ;;  %v5623_v57 = vpop.f32.mrb[93].mxu1 }
 0x36b   : > { %v5624_v43 = vadd.f32 %v5623_v57, %v5622_v48  ;;  %v5625_v4 = vpop.f32.mrb[94].mxu1 }
 0x36c   : > { %v5626_v47 = vpop.f32.mrb[95].mxu1 }
 0x36d   : > { %v3315_v33 = vadd.f32 %v5624_v43, %v7817_v49  ;;  %v5627_v26 = vadd.f32 %v5626_v47, %v5625_v4 }
 0x36e   : > { %v5740_v40 = vpop.f32.mrb[128].mxu0 }
 0x36f   : > { %v5741_v63 = vpop.f32.mrb[129].mxu0  ;;  %v3318_v1 = vadd.f32 %v5627_v26, %v7819_v0  ;;  %v7942_v39 = vadd.f32 %v5736_v50, %v3315_v33 }
 0x370   : > { %v5742_v36 = vadd.f32 %v5741_v63, %v5740_v40  ;;  %v5743_v60 = vpop.f32.mrb[130].mxu0 }
 0x371   : > { %v5744_v32 = vpop.f32.mrb[131].mxu0  ;;  %v5628_v59 = vpop.f32.mrb[96].mxu1  ;;  %v7945_v34 = vadd.f32 %v5739_v21, %v3318_v1 }
 0x372   : > { %v5745_v7 = vadd.f32 %v5744_v32, %v5743_v60  ;;  %v5629_v49 = vpop.f32.mrb[97].mxu1 }
 0x373   : > { %v5630_v15 = vadd.f32 %v5629_v49, %v5628_v59  ;;  %v5631_v46 = vpop.f32.mrb[98].mxu1 }
 0x374   : > { %v5632_v62 = vpop.f32.mrb[99].mxu1 }
 0x375   : > { %v3323_v20 = vadd.f32 %v5630_v15, %v7825_v42  ;;  %v5633_v53 = vadd.f32 %v5632_v62, %v5631_v46 }
 0x376   : > { %v5746_v0 = vpop.f32.mrb[132].mxu0 }
 0x377   : > { %v5747_v52 = vpop.f32.mrb[133].mxu0  ;;  %v3326_v38 = vadd.f32 %v5633_v53, %v7827_v9  ;;  %v7950_v41 = vadd.f32 %v5742_v36, %v3323_v20 }
 0x378   : > { %v5748_v50 = vadd.f32 %v5747_v52, %v5746_v0  ;;  %v5749_v18 = vpop.f32.mrb[134].mxu0 }
 0x379   : > { %v5750_v44 = vpop.f32.mrb[135].mxu0  ;;  %v5634_v48 = vpop.f32.mrb[100].mxu1  ;;  %v7952_v57 = vadd.f32 %v5745_v7, %v3326_v38 }
 0x37a   : > { %v5751_v21 = vadd.f32 %v5750_v44, %v5749_v18  ;;  %v5635_v43 = vpop.f32.mrb[101].mxu1 }
 0x37b   : > { %v5636_v4 = vadd.f32 %v5635_v43, %v5634_v48  ;;  %v5637_v47 = vpop.f32.mrb[102].mxu1 }
 0x37c   : > { %v5638_v42 = vpop.f32.mrb[103].mxu1 }
 0x37d   : > { %v3331_v33 = vadd.f32 %v5636_v4, %v7835_v11  ;;  %v5639_v26 = vadd.f32 %v5638_v42, %v5637_v47 }
 0x37e   : > { %v5752_v40 = vpop.f32.mrb[136].mxu0 }
 0x37f   : > { %v5753_v63 = vpop.f32.mrb[137].mxu0  ;;  %v3334_v9 = vadd.f32 %v5639_v26, %v7837_v5  ;;  %v7956_v36 = vadd.f32 %v5748_v50, %v3331_v33 }
 0x380   : > { %v5754_v25 = vadd.f32 %v5753_v63, %v5752_v40  ;;  %v5755_v1 = vpop.f32.mrb[138].mxu0 }
 0x381   : > { %v5756_v60 = vpop.f32.mrb[139].mxu0  ;;  %v5640_v31 = vpop.f32.mrb[104].mxu1  ;;  %v7958_v59 = vadd.f32 %v5751_v21, %v3334_v9 }
 0x382   : > { %v5757_v32 = vadd.f32 %v5756_v60, %v5755_v1  ;;  %v5641_v7 = vpop.f32.mrb[105].mxu1 }
 0x383   : > { %v5642_v49 = vadd.f32 %v5641_v7, %v5640_v31  ;;  %v5643_v15 = vpop.f32.mrb[106].mxu1 }
 0x384   : > { %v5644_v46 = vpop.f32.mrb[107].mxu1 }
 0x385   : > { %v3339_v11 = vadd.f32 %v5642_v49, %v7843_v55  ;;  %v5645_v62 = vadd.f32 %v5644_v46, %v5643_v15 }
 0x386   : > { %v5758_v20 = vpop.f32.mrb[140].mxu0 }
 0x387   : > { %v5759_v53 = vpop.f32.mrb[141].mxu0  ;;  %v3342_v5 = vadd.f32 %v5645_v62, %v7845_v3  ;;  %v7962_v24 = vadd.f32 %v5754_v25, %v3339_v11 }
 0x388   : > { %v5760_v0 = vadd.f32 %v5759_v53, %v5758_v20  ;;  %v5761_v52 = vpop.f32.mrb[142].mxu0 }
 0x389   : > { %v5762_v38 = vpop.f32.mrb[143].mxu0  ;;  %v5646_v50 = vpop.f32.mrb[108].mxu1  ;;  %v7964_v44 = vadd.f32 %v5757_v32, %v3342_v5 }
 0x38a   : > { %v5763_v18 = vadd.f32 %v5762_v38, %v5761_v52  ;;  %v5647_v48 = vpop.f32.mrb[109].mxu1 }
 0x38b   : > { %v5648_v21 = vadd.f32 %v5647_v48, %v5646_v50  ;;  %v5649_v43 = vpop.f32.mrb[110].mxu1 }
 0x38c   : > { %v5650_v4 = vpop.f32.mrb[111].mxu1 }
 0x38d   : > { %v3347_v55 = vadd.f32 %v5648_v21, %v7853_v22  ;;  %v5651_v47 = vadd.f32 %v5650_v4, %v5649_v43 }
 0x38e   : > { %v5764_v42 = vpop.f32.mrb[144].mxu0 }
 0x38f   : > { %v5765_v33 = vpop.f32.mrb[145].mxu0  ;;  %v3350_v3 = vadd.f32 %v5651_v47, %v7855_v23  ;;  %v7968_v63 = vadd.f32 %v5760_v0, %v3347_v55 }
 0x390   : > { %v5766_v26 = vadd.f32 %v5765_v33, %v5764_v42  ;;  %v5767_v40 = vpop.f32.mrb[146].mxu0 }
 0x391   : > { %v5768_v9 = vpop.f32.mrb[147].mxu0  ;;  %v5652_v25 = vpop.f32.mrb[112].mxu1  ;;  %v7970_v60 = vadd.f32 %v5763_v18, %v3350_v3 }
 0x392   : > { %v5769_v1 = vadd.f32 %v5768_v9, %v5767_v40  ;;  %v5653_v31 = vpop.f32.mrb[113].mxu1 }
 0x393   : > { %v5654_v32 = vadd.f32 %v5653_v31, %v5652_v25  ;;  %v5655_v7 = vpop.f32.mrb[114].mxu1 }
 0x394   : > { %v5656_v49 = vpop.f32.mrb[115].mxu1 }
 0x395   : > { %v3355_v22 = vadd.f32 %v5654_v32, %v7862_v29  ;;  %v5657_v15 = vadd.f32 %v5656_v49, %v5655_v7 }
 0x396   : > { %v5770_v46 = vpop.f32.mrb[148].mxu0 }
 0x397   : > { %v5771_v11 = vpop.f32.mrb[149].mxu0  ;;  %v3358_v23 = vadd.f32 %v5657_v15, %v7865_v13  ;;  %v7974_v53 = vadd.f32 %v5766_v26, %v3355_v22 }
 0x398   : > { %v5772_v62 = vadd.f32 %v5771_v11, %v5770_v46  ;;  %v5773_v20 = vpop.f32.mrb[150].mxu0 }
 0x399   : > { %v5774_v5 = vpop.f32.mrb[151].mxu0  ;;  %v5658_v0 = vpop.f32.mrb[116].mxu1  ;;  %v7976_v38 = vadd.f32 %v5769_v1, %v3358_v23 }
 0x39a   : > { %v5775_v52 = vadd.f32 %v5774_v5, %v5773_v20  ;;  %v5659_v50 = vpop.f32.mrb[117].mxu1 }
 0x39b   : > { %v5660_v18 = vadd.f32 %v5659_v50, %v5658_v0  ;;  %v5661_v48 = vpop.f32.mrb[118].mxu1 }
 0x39c   : > { %v5662_v21 = vpop.f32.mrb[119].mxu1 }
 0x39d   : > { %v3363_v29 = vadd.f32 %v5660_v18, %v7869_v8  ;;  %v5663_v43 = vadd.f32 %v5662_v21, %v5661_v48 }
 0x39e   : > { %v5776_v4 = vpop.f32.mrb[152].mxu0 }
 0x39f   : > { %v5777_v55 = vpop.f32.mrb[153].mxu0  ;;  %v3366_v13 = vadd.f32 %v5663_v43, %v7871_v27  ;;  %v7980_v33 = vadd.f32 %v5772_v62, %v3363_v29 }
 0x3a0   : > { %v5778_v47 = vadd.f32 %v5777_v55, %v5776_v4  ;;  %v5779_v42 = vpop.f32.mrb[154].mxu0 }
 0x3a1   : > { %v5780_v3 = vpop.f32.mrb[155].mxu0  ;;  %v5664_v26 = vpop.f32.mrb[120].mxu1  ;;  %v7982_v9 = vadd.f32 %v5775_v52, %v3366_v13 }
 0x3a2   : > { %v5781_v40 = vadd.f32 %v5780_v3, %v5779_v42  ;;  %v5665_v25 = vpop.f32.mrb[121].mxu1 }
 0x3a3   : > { %v5666_v1 = vadd.f32 %v5665_v25, %v5664_v26  ;;  %v5667_v31 = vpop.f32.mrb[122].mxu1 }
 0x3a4   : > { %v5668_v32 = vpop.f32.mrb[123].mxu1 }
 0x3a5   : > { %v3371_v8 = vadd.f32 %v5666_v1, %v7875_v58  ;;  %v5669_v7 = vadd.f32 %v5668_v32, %v5667_v31 }
 0x3a6   : > { %v5782_v49 = vpop.f32.mrb[156].mxu0 }
 0x3a7   : > { %v5783_v22 = vpop.f32.mrb[157].mxu0  ;;  %v3374_v27 = vadd.f32 %v5669_v7, %v7877_v16  ;;  %v7986_v11 = vadd.f32 %v5778_v47, %v3371_v8 }
 0x3a8   : > { %v5784_v15 = vadd.f32 %v5783_v22, %v5782_v49  ;;  %v5785_v46 = vpop.f32.mrb[158].mxu0 }
 0x3a9   : > { %v5786_v23 = vpop.f32.mrb[159].mxu0  ;;  %v5670_v62 = vpop.f32.mrb[124].mxu1  ;;  %v7988_v5 = vadd.f32 %v5781_v40, %v3374_v27 }
 0x3aa   : > { %v5787_v20 = vadd.f32 %v5786_v23, %v5785_v46  ;;  %v5671_v0 = vpop.f32.mrb[125].mxu1 }
 0x3ab   : > { %v5672_v52 = vadd.f32 %v5671_v0, %v5670_v62  ;;  %v5673_v50 = vpop.f32.mrb[126].mxu1 }
 0x3ac   : > { %v5674_v18 = vpop.f32.mrb[127].mxu1 }
 0x3ad   : > { %v3379_v58 = vadd.f32 %v5672_v52, %v7881_v61  ;;  %v5675_v48 = vadd.f32 %v5674_v18, %v5673_v50 }
 0x3af   : > { %v3382_v21 = vadd.f32 %v5675_v48, %v7883_v45  ;;  %v7992_v29 = vadd.f32 %v5784_v15, %v3379_v58 }
 0x3b1   : > { %v5926_v16 = vpop.f32.mrb[128].mxu1  ;;  %v7994_v43 = vadd.f32 %v5787_v20, %v3382_v21 }
 0x3b2   : > { %v3589_v4 = vadd.f32 %v5926_v16, %v7894_v54  ;;  %v3580_v55 = vpop.f32.mrb[129].mxu1 }
 0x3b3   : > { %v3581_v13 = vadd.f32 %v3580_v55, %v7887_v17  ;;  %v5927_v47 = vpop.f32.mrb[130].mxu1 }
 0x3b4   : > { %v3592_v42 = vadd.f32 %v5927_v47, %v7897_v6  ;;  %v3583_v3 = vpop.f32.mrb[131].mxu1  ;;  %v3709_v61 = vmax.f32 %v3589_v4, 0.0 }
 0x3b5   : > { %v3584_v26 = vadd.f32 %v3583_v3, %v7889_v30  ;;  %v3707_v25 = vmax.f32 %v3581_v13, 0.0 }
 0x3b6   : > { %v3710_v40 = vmax.f32 %v3592_v42, 0.0 }
 0x3b7   : > { %v3708_v45 = vmax.f32 %v3584_v26, 0.0 }
 0x3b8   : > { %v3740_v1 = vpack.c.bf16 %v3710_v40, %v3709_v61 }
 0x3b9   : > { %v3739_v31 = vpack.c.bf16 %v3708_v45, %v3707_v25  ;;  %v5930_v32 = vpop.f32.mrb[132].mxu1 }
 0x3ba   : > { %v3605_v8 = vadd.f32 %v5930_v32, %v7910_v51  ;;  %v3596_v7 = vpop.f32.mrb[133].mxu1 }
 0x3bb   : > { %v3597_v54 = vadd.f32 %v3596_v7, %v7902_v28  ;;  %v5931_v49 = vpop.f32.mrb[134].mxu1  ;;  %5972 = vmatprep.mubr.bf16.mxu0 %v3739_v31 }
 0x3bc   : > { %v3608_v17 = vadd.f32 %v5931_v49, %v7913_v10  ;;  %v3599_v6 = vpop.f32.mrb[135].mxu1  ;;  %5973 = vmatmul.mubr.bf16.vlgmr.msra.gmra.mrb[160].mxu0 %v3740_v1  ;;  %v3713_v22 = vmax.f32 %v3605_v8, 0.0 }
 0x3bd   : > { %v3600_v30 = vadd.f32 %v3599_v6, %v7905_v35  ;;  %v3711_v15 = vmax.f32 %v3597_v54, 0.0 }
 0x3be   : > { %v3714_v27 = vmax.f32 %v3608_v17, 0.0 }
 0x3bf   : > { %v3712_v46 = vmax.f32 %v3600_v30, 0.0 }
 0x3c0   : > { %v3742_v23 = vpack.c.bf16 %v3714_v27, %v3713_v22 }
 0x3c1   : > { %v3741_v62 = vpack.c.bf16 %v3712_v46, %v3711_v15  ;;  %v5934_v20 = vpop.f32.mrb[136].mxu1 }
 0x3c2   : > { %v3621_v51 = vadd.f32 %v5934_v20, %v7926_v37  ;;  %v3612_v0 = vpop.f32.mrb[137].mxu1 }
 0x3c3   : > { %v3613_v28 = vadd.f32 %v3612_v0, %v7918_v56  ;;  %v5935_v52 = vpop.f32.mrb[138].mxu1  ;;  %5976 = vmatprep.mubr.bf16.mxu0 %v3741_v62 }
 0x3c4   : > { %v3624_v10 = vadd.f32 %v5935_v52, %v7929_v19  ;;  %v3615_v50 = vpop.f32.mrb[139].mxu1  ;;  %5977 = vmatmul.mubr.bf16.gmra.mrb[164].mxu0 %v3742_v23  ;;  %v3717_v18 = vmax.f32 %v3621_v51, 0.0 }
 0x3c5   : > { %v3616_v35 = vadd.f32 %v3615_v50, %v7921_v2  ;;  %v3715_v48 = vmax.f32 %v3613_v28, 0.0 }
 0x3c6   : > { %v3718_v58 = vmax.f32 %v3624_v10, 0.0 }
 0x3c7   : > { %v3716_v21 = vmax.f32 %v3616_v35, 0.0 }
 0x3c8   : > { %v3744_v16 = vpack.c.bf16 %v3718_v58, %v3717_v18 }
 0x3c9   : > { %v3743_v4 = vpack.c.bf16 %v3716_v21, %v3715_v48  ;;  %v5938_v55 = vpop.f32.mrb[140].mxu1 }
 0x3ca   : > { %v3637_v37 = vadd.f32 %v5938_v55, %v7942_v39  ;;  %v3628_v13 = vpop.f32.mrb[141].mxu1 }
 0x3cb   : > { %v3629_v56 = vadd.f32 %v3628_v13, %v7934_v12  ;;  %v5939_v47 = vpop.f32.mrb[142].mxu1  ;;  %5980 = vmatprep.mubr.bf16.mxu0 %v3743_v4 }
 0x3cc   : > { %v3640_v19 = vadd.f32 %v5939_v47, %v7945_v34  ;;  %v3631_v42 = vpop.f32.mrb[143].mxu1  ;;  %5981 = vmatmul.mubr.bf16.gmra.mrb[168].mxu0 %v3744_v16  ;;  %v3721_v3 = vmax.f32 %v3637_v37, 0.0 }
 0x3cd   : > { %v3632_v2 = vadd.f32 %v3631_v42, %v7937_v14  ;;  %v3719_v61 = vmax.f32 %v3629_v56, 0.0 }
 0x3ce   : > { %v3722_v26 = vmax.f32 %v3640_v19, 0.0 }
 0x3cf   : > { %v3720_v40 = vmax.f32 %v3632_v2, 0.0 }
 0x3d0   : > { %v3746_v25 = vpack.c.bf16 %v3722_v26, %v3721_v3 }
 0x3d1   : > { %v3745_v45 = vpack.c.bf16 %v3720_v40, %v3719_v61  ;;  %v5942_v1 = vpop.f32.mrb[144].mxu1 }
 0x3d2   : > { %v3653_v39 = vadd.f32 %v5942_v1, %v7956_v36  ;;  %v3644_v31 = vpop.f32.mrb[145].mxu1 }
 0x3d3   : > { %v3645_v12 = vadd.f32 %v3644_v31, %v7950_v41  ;;  %v5943_v32 = vpop.f32.mrb[146].mxu1  ;;  %5984 = vmatprep.mubr.bf16.mxu0 %v3745_v45 }
 0x3d4   : > { %v3656_v34 = vadd.f32 %v5943_v32, %v7958_v59  ;;  %v3647_v8 = vpop.f32.mrb[147].mxu1  ;;  %5985 = vmatmul.mubr.bf16.gmra.mrb[172].mxu0 %v3746_v25  ;;  %v3725_v7 = vmax.f32 %v3653_v39, 0.0 }
 0x3d5   : > { %v3648_v14 = vadd.f32 %v3647_v8, %v7952_v57  ;;  %v3723_v49 = vmax.f32 %v3645_v12, 0.0 }
 0x3d6   : > { %v3726_v54 = vmax.f32 %v3656_v34, 0.0 }
 0x3d7   : > { %v3724_v17 = vmax.f32 %v3648_v14, 0.0 }
 0x3d8   : > { %v3748_v6 = vpack.c.bf16 %v3726_v54, %v3725_v7 }
 0x3d9   : > { %v3747_v30 = vpack.c.bf16 %v3724_v17, %v3723_v49  ;;  %v5946_v22 = vpop.f32.mrb[148].mxu1 }
 0x3da   : > { %v3669_v36 = vadd.f32 %v5946_v22, %v7968_v63  ;;  %v3660_v27 = vpop.f32.mrb[149].mxu1 }
 0x3db   : > { %v3661_v41 = vadd.f32 %v3660_v27, %v7962_v24  ;;  %v5947_v15 = vpop.f32.mrb[150].mxu1  ;;  %5988 = vmatprep.mubr.bf16.mxu0 %v3747_v30 }
 0x3dc   : > { %v3672_v59 = vadd.f32 %v5947_v15, %v7970_v60  ;;  %v3663_v46 = vpop.f32.mrb[151].mxu1  ;;  %5989 = vmatmul.mubr.bf16.gmra.mrb[176].mxu0 %v3748_v6  ;;  %v3729_v23 = vmax.f32 %v3669_v36, 0.0 }
 0x3dd   : > { %v3664_v57 = vadd.f32 %v3663_v46, %v7964_v44  ;;  %v3727_v20 = vmax.f32 %v3661_v41, 0.0 }
 0x3de   : > { %v3730_v62 = vmax.f32 %v3672_v59, 0.0 }
 0x3df   : > { %v3728_v51 = vmax.f32 %v3664_v57, 0.0 }
 0x3e0   : > { %v3750_v0 = vpack.c.bf16 %v3730_v62, %v3729_v23 }
 0x3e1   : > { %v3749_v28 = vpack.c.bf16 %v3728_v51, %v3727_v20  ;;  %v5950_v52 = vpop.f32.mrb[152].mxu1 }
 0x3e2   : > { %v3685_v63 = vadd.f32 %v5950_v52, %v7980_v33  ;;  %v3676_v10 = vpop.f32.mrb[153].mxu1 }
 0x3e3   : > { %v3677_v24 = vadd.f32 %v3676_v10, %v7974_v53  ;;  %v5951_v50 = vpop.f32.mrb[154].mxu1  ;;  %5992 = vmatprep.mubr.bf16.mxu0 %v3749_v28 }
 0x3e4   : > { %v3688_v60 = vadd.f32 %v5951_v50, %v7982_v9  ;;  %v3679_v35 = vpop.f32.mrb[155].mxu1  ;;  %5993 = vmatmul.mubr.bf16.gmra.mrb[180].mxu0 %v3750_v0  ;;  %v3733_v18 = vmax.f32 %v3685_v63, 0.0 }
 0x3e5   : > { %v3680_v44 = vadd.f32 %v3679_v35, %v7976_v38  ;;  %v3731_v48 = vmax.f32 %v3677_v24, 0.0 }
 0x3e6   : > { %v3734_v58 = vmax.f32 %v3688_v60, 0.0 }
 0x3e7   : > { %v3732_v21 = vmax.f32 %v3680_v44, 0.0 }
 0x3e8   : > { %v3752_v16 = vpack.c.bf16 %v3734_v58, %v3733_v18 }
 0x3e9   : > { %v3751_v4 = vpack.c.bf16 %v3732_v21, %v3731_v48  ;;  %v5954_v55 = vpop.f32.mrb[156].mxu1 }
 0x3ea   : > { %v3701_v33 = vadd.f32 %v5954_v55, %v7992_v29  ;;  %v3692_v37 = vpop.f32.mrb[157].mxu1 }
 0x3eb   : > { %v3693_v53 = vadd.f32 %v3692_v37, %v7986_v11  ;;  %v5955_v13 = vpop.f32.mrb[158].mxu1  ;;  %5996 = vmatprep.mubr.bf16.mxu0 %v3751_v4  ;;  %v8031_v11 = vld [vmem:[%s8241_s8] ss:$0 sm:$0xff] }
 0x3ec   : > { %v3704_v9 = vadd.f32 %v5955_v13, %v7994_v43  ;;  %v3695_v56 = vpop.f32.mrb[159].mxu1  ;;  %5997 = vmatmul.mubr.bf16.gmra.mrb[184].mxu0 %v3752_v16  ;;  %v3737_v47 = vmax.f32 %v3701_v33, 0.0 }
 0x3ed   : > { %v3696_v38 = vadd.f32 %v3695_v56, %v7988_v5  ;;  %v3735_v42 = vmax.f32 %v3693_v53, 0.0 }
 0x3ee   : > { %v3738_v19 = vmax.f32 %v3704_v9, 0.0 }
 0x3ef   : > { %v3736_v2 = vmax.f32 %v3696_v38, 0.0 }
 0x3f0   : > { %v3754_v3 = vpack.c.bf16 %v3738_v19, %v3737_v47 }
 0x3f1   : > { %v3753_v26 = vpack.c.bf16 %v3736_v2, %v3735_v42 }
 0x3f3   : > { %6000 = vmatprep.mubr.bf16.mxu0 %v3753_v26 }
 0x3f4   : > { %6001 = vmatmul.mubr.bf16.gmra.mrb[188].mxu0 %v3754_v3 }
 0x402   : > { %v6022_v29 = vpop.f32.mrb[160].mxu1 }
 0x403   : > { %v4261_v43 = vadd.f32 %v6022_v29, %v8031_v11  ;;  %v4252_v61 = vpop.f32.mrb[161].mxu1 }
 0x404   : > { %v4253_v5 = vadd.f32 %v8031_v11, %v4252_v61  ;;  %v6023_v40 = vpop.f32.mrb[162].mxu1 }
 0x405   : > { %v4264_v25 = vadd.f32 %v6023_v40, %v8031_v11  ;;  %v4255_v45 = vpop.f32.mrb[163].mxu1 }
 0x406   : > { %v4256_v1 = vadd.f32 %v8031_v11, %v4255_v45 }
 0x407   : > { %v5214_v39 = vpack.c.bf16 %v4264_v25, %v4261_v43 }
 0x408   : > { %v5209_v31 = vpack.c.bf16 %v4256_v1, %v4253_v5 }
 0x409   : > { %5301 = vst [vmem:[%s8038_s25 + $0x8] sm:$0xff] %v5214_v39  }
 0x40a   : > { %5210 = vst [vmem:[%s8038_s25] sm:$0xff] %v5209_v31  }
 0x40c   : > { %v6026_v12 = vpop.f32.mrb[164].mxu1 }
 0x40d   : > { %v4277_v32 = vadd.f32 %v6026_v12, %v8031_v11  ;;  %v4268_v34 = vpop.f32.mrb[165].mxu1 }
 0x40e   : > { %v4269_v8 = vadd.f32 %v8031_v11, %v4268_v34  ;;  %v6027_v14 = vpop.f32.mrb[166].mxu1 }
 0x40f   : > { %v4280_v7 = vadd.f32 %v6027_v14, %v8031_v11  ;;  %v4271_v54 = vpop.f32.mrb[167].mxu1 }
 0x410   : > { %v4272_v49 = vadd.f32 %v8031_v11, %v4271_v54 }
 0x411   : > { %v5224_v17 = vpack.c.bf16 %v4280_v7, %v4277_v32 }
 0x412   : > { %v5219_v6 = vpack.c.bf16 %v4272_v49, %v4269_v8 }
 0x413   : > { %5303 = vst [vmem:[%s8038_s25 + $0x18] sm:$0xff] %v5224_v17  }
 0x414   : > { %5302 = vst [vmem:[%s8038_s25 + $0x10] sm:$0xff] %v5219_v6   ;;  %v6030_v30 = vpop.f32.mrb[168].mxu1 }
 0x415   : > { %v4293_v22 = vadd.f32 %v6030_v30, %v8031_v11  ;;  %v4284_v36 = vpop.f32.mrb[169].mxu1 }
 0x416   : > { %v4285_v27 = vadd.f32 %v8031_v11, %v4284_v36  ;;  %v6031_v41 = vpop.f32.mrb[170].mxu1 }
 0x417   : > { %v4296_v15 = vadd.f32 %v6031_v41, %v8031_v11  ;;  %v4287_v59 = vpop.f32.mrb[171].mxu1 }
 0x418   : > { %v4288_v46 = vadd.f32 %v8031_v11, %v4287_v59 }
 0x419   : > { %v5234_v57 = vpack.c.bf16 %v4296_v15, %v4293_v22 }
 0x41a   : > { %v5229_v23 = vpack.c.bf16 %v4288_v46, %v4285_v27 }
 0x41b   : > { %5305 = vst [vmem:[%s8038_s25 + $0x28] sm:$0xff] %v5234_v57  }
 0x41c   : > { %5304 = vst [vmem:[%s8038_s25 + $0x20] sm:$0xff] %v5229_v23   ;;  %v6034_v62 = vpop.f32.mrb[172].mxu1 }
 0x41d   : > { %v4309_v20 = vadd.f32 %v6034_v62, %v8031_v11  ;;  %v4300_v51 = vpop.f32.mrb[173].mxu1 }
 0x41e   : > { %v4301_v0 = vadd.f32 %v8031_v11, %v4300_v51  ;;  %v6035_v28 = vpop.f32.mrb[174].mxu1 }
 0x41f   : > { %v4312_v52 = vadd.f32 %v6035_v28, %v8031_v11  ;;  %v4303_v63 = vpop.f32.mrb[175].mxu1 }
 0x420   : > { %v4304_v10 = vadd.f32 %v8031_v11, %v4303_v63 }
 0x421   : > { %v5244_v24 = vpack.c.bf16 %v4312_v52, %v4309_v20 }
 0x422   : > { %v5239_v50 = vpack.c.bf16 %v4304_v10, %v4301_v0 }
 0x423   : > { %5307 = vst [vmem:[%s8038_s25 + $0x38] sm:$0xff] %v5244_v24  }
 0x424   : > { %5306 = vst [vmem:[%s8038_s25 + $0x30] sm:$0xff] %v5239_v50   ;;  %v6038_v60 = vpop.f32.mrb[176].mxu1 }
 0x425   : > { %v4325_v35 = vadd.f32 %v6038_v60, %v8031_v11  ;;  %v4316_v44 = vpop.f32.mrb[177].mxu1 }
 0x426   : > { %v4317_v18 = vadd.f32 %v8031_v11, %v4316_v44  ;;  %v6039_v58 = vpop.f32.mrb[178].mxu1 }
 0x427   : > { %v4328_v48 = vadd.f32 %v6039_v58, %v8031_v11  ;;  %v4319_v21 = vpop.f32.mrb[179].mxu1 }
 0x428   : > { %v4320_v16 = vadd.f32 %v8031_v11, %v4319_v21 }
 0x429   : > { %v5254_v4 = vpack.c.bf16 %v4328_v48, %v4325_v35 }
 0x42a   : > { %v5249_v55 = vpack.c.bf16 %v4320_v16, %v4317_v18 }
 0x42b   : > { %5309 = vst [vmem:[%s8038_s25 + $0x48] sm:$0xff] %v5254_v4  }
 0x42c   : > { %5308 = vst [vmem:[%s8038_s25 + $0x40] sm:$0xff] %v5249_v55   ;;  %v6042_v33 = vpop.f32.mrb[180].mxu1 }
 0x42d   : > { %v4341_v37 = vadd.f32 %v6042_v33, %v8031_v11  ;;  %v4332_v53 = vpop.f32.mrb[181].mxu1 }
 0x42e   : > { %v4333_v13 = vadd.f32 %v8031_v11, %v4332_v53  ;;  %v6043_v9 = vpop.f32.mrb[182].mxu1 }
 0x42f   : > { %v4344_v56 = vadd.f32 %v6043_v9, %v8031_v11  ;;  %v4335_v38 = vpop.f32.mrb[183].mxu1 }
 0x430   : > { %v4336_v47 = vadd.f32 %v8031_v11, %v4335_v38 }
 0x431   : > { %v5264_v19 = vpack.c.bf16 %v4344_v56, %v4341_v37 }
 0x432   : > { %v5259_v42 = vpack.c.bf16 %v4336_v47, %v4333_v13 }
 0x433   : > { %5311 = vst [vmem:[%s8038_s25 + $0x58] sm:$0xff] %v5264_v19  }
 0x434   : > { %5310 = vst [vmem:[%s8038_s25 + $0x50] sm:$0xff] %v5259_v42   ;;  %v6046_v2 = vpop.f32.mrb[184].mxu1 }
 0x435   : > { %v4357_v3 = vadd.f32 %v6046_v2, %v8031_v11  ;;  %v4348_v26 = vpop.f32.mrb[185].mxu1 }
 0x436   : > { %v4349_v29 = vadd.f32 %v8031_v11, %v4348_v26  ;;  %v6047_v43 = vpop.f32.mrb[186].mxu1 }
 0x437   : > { %v4360_v61 = vadd.f32 %v6047_v43, %v8031_v11  ;;  %v4351_v5 = vpop.f32.mrb[187].mxu1 }
 0x438   : > { %v4352_v40 = vadd.f32 %v8031_v11, %v4351_v5 }
 0x439   : > { %v5274_v25 = vpack.c.bf16 %v4360_v61, %v4357_v3 }
 0x43a   : > { %v5269_v45 = vpack.c.bf16 %v4352_v40, %v4349_v29 }
 0x43b   : > { %5313 = vst [vmem:[%s8038_s25 + $0x68] sm:$0xff] %v5274_v25  }
 0x43c   : > { %5312 = vst [vmem:[%s8038_s25 + $0x60] sm:$0xff] %v5269_v45   ;;  %v6050_v1 = vpop.f32.mrb[188].mxu1 }
 0x43d   : > { %v4373_v39 = vadd.f32 %v6050_v1, %v8031_v11  ;;  %v4364_v31 = vpop.f32.mrb[189].mxu1 }
 0x43e   : > { %v4365_v12 = vadd.f32 %v8031_v11, %v4364_v31  ;;  %v6051_v32 = vpop.f32.mrb[190].mxu1 }
 0x43f   : > { %v4376_v34 = vadd.f32 %v6051_v32, %v8031_v11  ;;  %v4367_v8 = vpop.f32.mrb[191].mxu1 }
 0x440   : > { %v4368_v14 = vadd.f32 %v8031_v11, %v4367_v8 }
 0x441   : > { %v5284_v7 = vpack.c.bf16 %v4376_v34, %v4373_v39 }
 0x442   : > { %v5279_v54 = vpack.c.bf16 %v4368_v14, %v4365_v12 }
 0x443   : > { %5315 = vst [vmem:[%s8038_s25 + $0x78] sm:$0xff] %v5284_v7  }
 0x444   : > { %5314 = vst [vmem:[%s8038_s25 + $0x70] sm:$0xff] %v5279_v54  }
 0x445   : > { %6452 = shalt.err (!%p6449_p13)
}
 0x446   : > { %s6453_s24 = scalar_lea.hbm %s8090_s28, 2048  ;;  %s6457_s29 = scalar_lea.hbm %s8243_s10, 4096 }
 0x447   : > { %p6454_p9 = scmp.ne.s32.totalorder %s8090_s28, %s6453_s24  ;;  %p6458_p4 = scmp.lt.u32.totalorder %s8090_s28, %s8243_s10 }
 0x448   : > { %p6459_p8 = scmp.lt.u32.totalorder %s6457_s29, %s6453_s24  ;;  %p6461_p3 = scmp.lt.u32.totalorder %s6453_s24, %s8090_s28 }
 0x449   : > { %p6455_p0 = pnand %p6454_p9, %p6785_p10 }
 0x44a   : > { %p6460_p6 = por %p6459_p8, %p6458_p4 }
 0x44b   : > { %p6456_p11 = pneg %p6455_p0 }
 0x44c   : > { %p6462_p5 = por %p6461_p3, %p6460_p6 }
 0x44e   : > { %p6463_p7 = pnand %p6462_p5, %p6456_p11 }
 0x450   : > { %6466 = shalt.err (!%p6463_p7)
}
 0x451   : > { %s6556_s30 = smov 64   ;;  %s6557_s23 = smov 4  }
 0x452   : > { %6071 = dma.vmem_to_hbm [thread:$0]  (%p6785_p10), %s8093_s19, 2048, %s8090_s28, %s4545_s21, %s6556_s30, %s6556_s30, %s6557_s23  }
 0x453   : > { %s8320_s24 = sld [smem:[#allocation32_spill]]  ;;  %s8132_s28 = scalar_lea.vmem [#allocation12], %s6843_s27 }
 0x454   : > { %s4558_s27 = sshll.u32 %s8132_s28, 4  ;;  %s8321_s25 = sld [smem:[#allocation33_spill]]  ;;  %s8184_s27 = int_to_ptr.vmem [resolvable:$true] %s4558_s27 }
 0x455   : > { %s4540_s6 = scalar_lea.sflag [#allocation5], %s6840_s9  ;;  %s6467_s11 = scalar_lea.vmem %s8184_s27, 2048 }
 0x456   : > { %p6468_p12 = scmp.ne.s32.totalorder %s8184_s27, %s6467_s11  ;;  %s6558_s26 = smov [#allocation12]  }
 0x457   : > { %s6471_s17 = sshll.u32 %s6558_s26, 4  ;;  %s6472_s17 = int_to_ptr.vmem [resolvable:$false] %s6471_s17 }
 0x458   : > { %p6469_p1 = pnand %p6468_p12, %p6785_p10  ;;  %s6473_s18 = scalar_lea.vmem %s6472_s17, 4096 }
 0x459   : > { %v8125_v49 = vld [vmem:[%s8320_s24] ss:$0 sm:$0xff]  ;;  %p6474_p13 = scmp.lt.s32.totalorder %s8184_s27, %s6472_s17  ;;  %p6475_p9 = scmp.lt.s32.totalorder %s6473_s18, %s6467_s11 }
 0x45a   : > { %s8182_s29 = scalar_lea.hbm %s8321_s25, %s5124_s13  ;;  %p6470_p2 = pneg %p6469_p1 }
 0x45b   : > { %p6476_p0 = por %p6475_p9, %p6474_p13 }
 0x45d   : > { %p6477_p11 = pnand %p6476_p0, %p6470_p2 }
 0x48f   : > { %v5974_v11 = vpop.f32.mrb[160].mxu0 }
 0x490   : > { %v3860_v17 = vpop.f32.mrb[161].mxu0  ;;  %v3869_v30 = vadd.f32 %v5974_v11, %v8125_v49 }
 0x491   : > { %v5975_v6 = vpop.f32.mrb[162].mxu0  ;;  %v3861_v27 = vadd.f32 %v8125_v49, %v3860_v17 }
 0x492   : > { %v3872_v22 = vadd.f32 %v5975_v6, %v8125_v49  ;;  %v3863_v36 = vpop.f32.mrb[163].mxu0 }
 0x493   : > { %v3864_v41 = vadd.f32 %v8125_v49, %v3863_v36 }
 0x494   : > { %v5134_v15 = vpack.c.bf16 %v3872_v22, %v3869_v30 }
 0x495   : > { %v5129_v59 = vpack.c.bf16 %v3864_v41, %v3861_v27 }
 0x496   : > { %5286 = vst [vmem:[%s8132_s28 + $0x8] sm:$0xff] %v5134_v15  }
 0x497   : > { %5130 = vst [vmem:[%s8132_s28] sm:$0xff] %v5129_v59   ;;  %v5978_v46 = vpop.f32.mrb[164].mxu0 }
 0x498   : > { %v3876_v57 = vpop.f32.mrb[165].mxu0  ;;  %v3885_v62 = vadd.f32 %v5978_v46, %v8125_v49 }
 0x499   : > { %v5979_v23 = vpop.f32.mrb[166].mxu0  ;;  %v3877_v0 = vadd.f32 %v8125_v49, %v3876_v57 }
 0x49a   : > { %v3888_v20 = vadd.f32 %v5979_v23, %v8125_v49  ;;  %v3879_v51 = vpop.f32.mrb[167].mxu0 }
 0x49b   : > { %v3880_v28 = vadd.f32 %v8125_v49, %v3879_v51 }
 0x49c   : > { %v5144_v52 = vpack.c.bf16 %v3888_v20, %v3885_v62 }
 0x49d   : > { %v5139_v63 = vpack.c.bf16 %v3880_v28, %v3877_v0 }
 0x49e   : > { %5288 = vst [vmem:[%s8132_s28 + $0x18] sm:$0xff] %v5144_v52  }
 0x49f   : > { %5287 = vst [vmem:[%s8132_s28 + $0x10] sm:$0xff] %v5139_v63   ;;  %v5982_v10 = vpop.f32.mrb[168].mxu0 }
 0x4a0   : > { %v3892_v24 = vpop.f32.mrb[169].mxu0  ;;  %v3901_v60 = vadd.f32 %v5982_v10, %v8125_v49 }
 0x4a1   : > { %v5983_v50 = vpop.f32.mrb[170].mxu0  ;;  %v3893_v18 = vadd.f32 %v8125_v49, %v3892_v24 }
 0x4a2   : > { %v3904_v35 = vadd.f32 %v5983_v50, %v8125_v49  ;;  %v3895_v44 = vpop.f32.mrb[171].mxu0 }
 0x4a3   : > { %v3896_v58 = vadd.f32 %v8125_v49, %v3895_v44 }
 0x4a4   : > { %v5154_v48 = vpack.c.bf16 %v3904_v35, %v3901_v60 }
 0x4a5   : > { %v5149_v21 = vpack.c.bf16 %v3896_v58, %v3893_v18 }
 0x4a6   : > { %5290 = vst [vmem:[%s8132_s28 + $0x28] sm:$0xff] %v5154_v48  }
 0x4a7   : > { %5289 = vst [vmem:[%s8132_s28 + $0x20] sm:$0xff] %v5149_v21   ;;  %v5986_v16 = vpop.f32.mrb[172].mxu0 }
 0x4a8   : > { %v3908_v4 = vpop.f32.mrb[173].mxu0  ;;  %v3917_v33 = vadd.f32 %v5986_v16, %v8125_v49 }
 0x4a9   : > { %v5987_v55 = vpop.f32.mrb[174].mxu0  ;;  %v3909_v13 = vadd.f32 %v8125_v49, %v3908_v4 }
 0x4aa   : > { %v3920_v37 = vadd.f32 %v5987_v55, %v8125_v49  ;;  %v3911_v53 = vpop.f32.mrb[175].mxu0 }
 0x4ab   : > { %v3912_v9 = vadd.f32 %v8125_v49, %v3911_v53 }
 0x4ac   : > { %v5164_v56 = vpack.c.bf16 %v3920_v37, %v3917_v33 }
 0x4ad   : > { %v5159_v38 = vpack.c.bf16 %v3912_v9, %v3909_v13 }
 0x4ae   : > { %5292 = vst [vmem:[%s8132_s28 + $0x38] sm:$0xff] %v5164_v56  }
 0x4af   : > { %5291 = vst [vmem:[%s8132_s28 + $0x30] sm:$0xff] %v5159_v38   ;;  %v5990_v47 = vpop.f32.mrb[176].mxu0 }
 0x4b0   : > { %v3924_v19 = vpop.f32.mrb[177].mxu0  ;;  %v3933_v2 = vadd.f32 %v5990_v47, %v8125_v49 }
 0x4b1   : > { %v5991_v42 = vpop.f32.mrb[178].mxu0  ;;  %v3925_v29 = vadd.f32 %v8125_v49, %v3924_v19 }
 0x4b2   : > { %v3936_v3 = vadd.f32 %v5991_v42, %v8125_v49  ;;  %v3927_v26 = vpop.f32.mrb[179].mxu0 }
 0x4b3   : > { %v3928_v43 = vadd.f32 %v8125_v49, %v3927_v26 }
 0x4b4   : > { %v5174_v61 = vpack.c.bf16 %v3936_v3, %v3933_v2 }
 0x4b5   : > { %v5169_v5 = vpack.c.bf16 %v3928_v43, %v3925_v29 }
 0x4b6   : > { %5294 = vst [vmem:[%s8132_s28 + $0x48] sm:$0xff] %v5174_v61  }
 0x4b7   : > { %5293 = vst [vmem:[%s8132_s28 + $0x40] sm:$0xff] %v5169_v5   ;;  %v5994_v40 = vpop.f32.mrb[180].mxu0 }
 0x4b8   : > { %v3940_v25 = vpop.f32.mrb[181].mxu0  ;;  %v3949_v1 = vadd.f32 %v5994_v40, %v8125_v49 }
 0x4b9   : > { %v5995_v45 = vpop.f32.mrb[182].mxu0  ;;  %v3941_v12 = vadd.f32 %v8125_v49, %v3940_v25 }
 0x4ba   : > { %v3952_v39 = vadd.f32 %v5995_v45, %v8125_v49  ;;  %v3943_v31 = vpop.f32.mrb[183].mxu0 }
 0x4bb   : > { %v3944_v32 = vadd.f32 %v8125_v49, %v3943_v31 }
 0x4bc   : > { %v5184_v34 = vpack.c.bf16 %v3952_v39, %v3949_v1 }
 0x4bd   : > { %v5179_v8 = vpack.c.bf16 %v3944_v32, %v3941_v12 }
 0x4be   : > { %5296 = vst [vmem:[%s8132_s28 + $0x58] sm:$0xff] %v5184_v34  }
 0x4bf   : > { %5295 = vst [vmem:[%s8132_s28 + $0x50] sm:$0xff] %v5179_v8   ;;  %v5998_v14 = vpop.f32.mrb[184].mxu0 }
 0x4c0   : > { %v3956_v7 = vpop.f32.mrb[185].mxu0  ;;  %v3965_v11 = vadd.f32 %v5998_v14, %v8125_v49 }
 0x4c1   : > { %v5999_v54 = vpop.f32.mrb[186].mxu0  ;;  %v3957_v30 = vadd.f32 %v8125_v49, %v3956_v7 }
 0x4c2   : > { %v3968_v17 = vadd.f32 %v5999_v54, %v8125_v49  ;;  %v3959_v6 = vpop.f32.mrb[187].mxu0 }
 0x4c3   : > { %v3960_v22 = vadd.f32 %v8125_v49, %v3959_v6 }
 0x4c4   : > { %v5194_v36 = vpack.c.bf16 %v3968_v17, %v3965_v11 }
 0x4c5   : > { %v5189_v27 = vpack.c.bf16 %v3960_v22, %v3957_v30 }
 0x4c6   : > { %5298 = vst [vmem:[%s8132_s28 + $0x68] sm:$0xff] %v5194_v36  }
 0x4c7   : > { %5297 = vst [vmem:[%s8132_s28 + $0x60] sm:$0xff] %v5189_v27   ;;  %v6002_v41 = vpop.f32.mrb[188].mxu0 }
 0x4c8   : > { %v3972_v15 = vpop.f32.mrb[189].mxu0  ;;  %v3981_v46 = vadd.f32 %v6002_v41, %v8125_v49 }
 0x4c9   : > { %v6003_v59 = vpop.f32.mrb[190].mxu0  ;;  %v3973_v62 = vadd.f32 %v8125_v49, %v3972_v15 }
 0x4ca   : > { %v3984_v57 = vadd.f32 %v6003_v59, %v8125_v49  ;;  %v3975_v23 = vpop.f32.mrb[191].mxu0 }
 0x4cb   : > { %v3976_v20 = vadd.f32 %v8125_v49, %v3975_v23 }
 0x4cc   : > { %v5204_v51 = vpack.c.bf16 %v3984_v57, %v3981_v46 }
 0x4cd   : > { %v5199_v0 = vpack.c.bf16 %v3976_v20, %v3973_v62 }
 0x4ce   : > { %5300 = vst [vmem:[%s8132_s28 + $0x78] sm:$0xff] %v5204_v51  }
 0x4cf   : > { %5299 = vst [vmem:[%s8132_s28 + $0x70] sm:$0xff] %v5199_v0  }
 0x4d0   : > { %6480 = shalt.err (!%p6477_p11)
}
 0x4d1   : > { %s6481_s13 = scalar_lea.hbm %s8182_s29, 2048  ;;  %s6485_s19 = scalar_lea.hbm %s8321_s25, 4096 }
 0x4d2   : > { %p6482_p4 = scmp.ne.s32.totalorder %s8182_s29, %s6481_s13  ;;  %p6486_p3 = scmp.lt.u32.totalorder %s8182_s29, %s8321_s25 }
 0x4d3   : > { %p6487_p5 = scmp.lt.u32.totalorder %s6485_s19, %s6481_s13  ;;  %p6489_p12 = scmp.lt.u32.totalorder %s6481_s13, %s8182_s29 }
 0x4d4   : > { %p6483_p8 = pnand %p6482_p4, %p6785_p10 }
 0x4d5   : > { %p6488_p7 = por %p6487_p5, %p6486_p3 }
 0x4d6   : > { %p6484_p6 = pneg %p6483_p8 }
 0x4d7   : > { %p6490_p1 = por %p6489_p12, %p6488_p7 }
 0x4d9   : > { %p6491_p2 = pnand %p6490_p1, %p6484_p6 }
 0x4db   : > { %6494 = shalt.err (!%p6491_p2)
}
 0x4dc   : > { %6070 = dma.vmem_to_hbm [thread:$0]  (%p6785_p10), %s8184_s27, 2048, %s8182_s29, %s4540_s6, %s6556_s30, %s6556_s30, %s6557_s23  }
 0x4dd PF: > { %s8322_s11 = sld [smem:[#allocation20_spill]]  ;;  %s8323_s17 = sld [smem:[#allocation21_spill]] }
 0x4de   : > { %p8325_p9 = scmp.ge.s32.totalorder %s6545_s16, 2 }
 0x4e3   : > { %s4589_s18 = sand.u32 1, %s8322_s11   ;;  %p8324_p13 = scmp.ne.s32.totalorder %s8323_s17, 0 }
 0x4e4   : > { %s4590_s13 = scalar_lea.sflag [#allocation5], %s4589_s18 }
 0x4e5   : > { %p6092_p0 = pnand %p8325_p9, %p8324_p13 }
 0x4e7   : > { %6524 = dma.done.wait (!%p6092_p0), %s4590_s13, 2048  }
 0x4e8   : > { %6526 = vsyncadd (!%p6092_p0), %s4590_s13, 4294965248  ;;  %s4599_s20 = scalar_lea.sflag [#allocation14], %s4589_s18 }
 0x4e9   : > { %6528 = dma.done.wait (!%p6092_p0), %s4599_s20, 2048  }
 0x4ea   : > { %6530 = vsyncadd (!%p6092_p0), %s4599_s20, 4294965248  ;;  %p29_p10 = scmp.ge.s32.totalorder %s6775_s22, 4   ;;  %s8326_s13 = smov %s6537_s14 }
 0x4eb   : > { %s8327_s14 = smov %s6541_s15  ;;  %s8328_s15 = smov %s6791_s12 }
 0x4ec   : > { %s8329_s16 = smov %s6775_s22  ;;  %31 = sbr.rel (!%p29_p10) target bundleno = 12 (0xc), region = 135 }
 0x4f3   :  { %4604 = vsyncpa [#allocation4], 1 }
 0x4f4   :  { %4606 = vsyncpa [#allocation4 + $0x1], 1 }
 0x4f5   :  { %4607 = vsyncpa [#allocation7], 1 }
 0x4f6   :  { %4608 = vsyncpa [#allocation10], 1 }
 0x4f7   :  { %4609 = vsyncpa [#allocation5], 1 }
 0x4f8   :  { %4611 = vsyncpa [#allocation5 + $0x1], 1 }
 0x4f9   :  { %4612 = vsyncpa [#allocation14], 1 }
 0x4fa   :  { %4614 = vsyncpa [#allocation14 + $0x1], 1 }

</bundles_post_ra>
